<compile_context>
chip_gen: v7x
topology: tpu7x:2x2x1
jax: 0.10.0
libtpu: 0.0.40
codegen_flags: <defaults>
</compile_context>

<pallas_src>
import math

import jax
import jax.numpy as jnp
from jax.experimental import pallas as pl
from jax.experimental.pallas import tpu as pltpu

# ----------------------------- configuration -------------------------------
D_MODEL = 32
N_LAYER = 2
D_STATE = 16
D_CONV = 4
EXPAND = 2
D_INNER = EXPAND * D_MODEL
DT_RANK = math.ceil(D_MODEL / 16)
EPS = 1e-5

BATCH = 2
SEQLEN = 8

WEIGHT_ORDER = ("in_proj", "conv_ws", "xdbc", "negA_T", "out_proj", "vecs")


# ------------------------------- kernel -------------------------------------
def _layernorm(x, w, b):
    mean = jnp.mean(x, axis=-1, keepdims=True)
    var = jnp.mean((x - mean) ** 2, axis=-1, keepdims=True)
    return (x - mean) * jax.lax.rsqrt(var + EPS) * w + b


def fused_mamba_kernel(
    h_ref,            # (L, 1, BS, D_MODEL)  activations, time-major rows
    in_proj_ref,      # (NL, D_MODEL, 2*D_INNER)
    conv_w_ref,       # (NL, D_CONV, D_INNER)     row s multiplies x[t-s]
    xdbc_ref,         # (NL, D_INNER, D_INNER+2*D_STATE)  [dt_pre | B | C]
    negA_T_ref,       # (NL, D_STATE, D_INNER)    = -exp(A_log).T
    out_proj_ref,     # (NL, D_INNER, D_MODEL)
    vecs_ref,         # (NL, 5, D_INNER)  rows: norm_w, norm_b, conv_b, dt_b, D
    normf_ref,        # (2, D_MODEL)      rows: norm_f_w, norm_f_b
    o_ref,            # (L, 1, BS, D_MODEL)
):
    L = h_ref.shape[0]
    BS = h_ref.shape[2]
    D_M = h_ref.shape[3]
    R = L * BS                                    # folded rows, r = t*BS + b

    hidden = h_ref[...].reshape(R, D_M)           # (R, D_MODEL)
    residual = hidden                             # first layer: residual = hidden

    # zero block for the causal-conv shifts (constant across layers)
    conv_pad = jnp.zeros(((D_CONV - 1) * BS, D_INNER), jnp.float32)

    for l in range(N_LAYER):                      # static unroll, layer-stacked weights
        if l > 0:
            residual = hidden + residual

        vecs = vecs_ref[l]                        # (5, D_INNER)
        norm_w = vecs[0:1, :D_M]
        norm_b = vecs[1:2, :D_M]
        conv_b = vecs[2:3, :]
        dt_b = vecs[3:4, :]
        D_vec = vecs[4:5, :]

        xn = _layernorm(residual, norm_w, norm_b)                       # (R, D_MODEL)

        # in_proj: (R, D) @ (D, 2*D_INNER)
        xz = jnp.dot(xn, in_proj_ref[l], preferred_element_type=jnp.float32)
        x = xz[:, :D_INNER]
        z = xz[:, D_INNER:]

        # causal depthwise conv over time: zero-filled sublane shifts + VPU FMA.
        # Rows are time-major (r = t*BS + b), so shifting by s*BS rows never
        # crosses a batch boundary; the zero fill realizes the causal mask.
        conv_w = conv_w_ref[l]                                          # (D_CONV, D_INNER)
        xp = jnp.concatenate([conv_pad, x], axis=0)                     # (R+(K-1)*BS, D_INNER)
        x_conv = x * conv_w[0:1, :]
        for s in range(1, D_CONV):
            off = (D_CONV - 1 - s) * BS
            x_s = xp[off:off + R, :]                                    # x[t-s] (0 for t<s)
            x_conv = x_conv + x_s * conv_w[s:s + 1, :]
        x_act = jax.nn.silu(x_conv + conv_b)                            # (R, D_INNER)

        # x_proj with dt_proj pre-folded: one matmul -> [dt_pre | B | C]
        x_dbc = jnp.dot(x_act, xdbc_ref[l],
                        preferred_element_type=jnp.float32)             # (R, D_INNER+2N)
        dt = jax.nn.softplus(x_dbc[:, :D_INNER] + dt_b)                 # (R, D_INNER)
        Bmat = x_dbc[:, D_INNER:D_INNER + D_STATE]                      # (R, D_STATE)
        Cmat = x_dbc[:, D_INNER + D_STATE:]                             # (R, D_STATE)

        negA_T = negA_T_ref[l]                                          # (D_STATE, D_INNER)
        du = dt * x_act                                                 # (R, D_INNER)

        # ---- selective scan, batched over (BS) with precomputed dA / dBx ----
        dt4 = dt.reshape(L, BS, D_INNER)[:, :, None, :]                 # (L,BS,1,Di)
        du4 = du.reshape(L, BS, D_INNER)[:, :, None, :]
        B4 = Bmat.reshape(L, BS, D_STATE)[:, :, :, None]                # (L,BS,N,1)
        C4 = Cmat.reshape(L, BS, D_STATE)[:, :, :, None]
        dA = jnp.exp(dt4 * negA_T[None, None])                          # (L,BS,N,Di)
        dBx = B4 * du4                                                  # (L,BS,N,Di)

        # inclusive scan of affine maps h -> a*h + b over time (log depth)
        a, b = dA, dBx
        d = 1
        while d < L:
            ones = jnp.ones((d, BS, D_STATE, D_INNER), jnp.float32)
            zeros = jnp.zeros((d, BS, D_STATE, D_INNER), jnp.float32)
            a_shift = jnp.concatenate([ones, a[:L - d]], axis=0)
            b_shift = jnp.concatenate([zeros, b[:L - d]], axis=0)
            b = a * b_shift + b
            a = a * a_shift
            d *= 2
        h_all = b                                                       # h[t] = scan state

        y = jnp.sum(C4 * h_all, axis=2).reshape(R, D_INNER)             # (R, D_INNER)
        y = y + x_act * D_vec                                           # skip connection
        y = y * jax.nn.silu(z)                                          # gate

        hidden = jnp.dot(y, out_proj_ref[l],
                         preferred_element_type=jnp.float32)            # (R, D_MODEL)

    # final add + LayerNorm_f
    residual = hidden + residual
    out = _layernorm(residual, normf_ref[0:1, :], normf_ref[1:2, :])
    o_ref[...] = out.reshape(L, 1, BS, D_M)


# ------------------------------- wrapper -------------------------------------
def mamba_blocks_forward(x, stacked, normf, *, num_slabs=1):
    """x: (B, L, D_MODEL).  num_slabs=1 -> single grid step (v5e/v6e single-TC);
    num_slabs=2 on v7x (B even) gives each TensorCore one batch slab."""
    B, L, D = x.shape
    assert B % num_slabs == 0
    BS = B // num_slabs

    # time-major rows so the in-kernel causal shift is a plain row shift
    xt = jnp.transpose(x, (1, 0, 2)).reshape(L, num_slabs, BS, D)

    act_spec = pl.BlockSpec((L, 1, BS, D), lambda i: (0, i, 0, 0))
    weights = [stacked[k] for k in WEIGHT_ORDER] + [normf]
    w_specs = [pl.BlockSpec(w.shape, lambda i, _nd=w.ndim: (0,) * _nd)
               for w in weights]

    out = pl.pallas_call(
        fused_mamba_kernel,
        grid=(num_slabs,),
        in_specs=[act_spec] + w_specs,
        out_specs=act_spec,
        out_shape=jax.ShapeDtypeStruct((L, num_slabs, BS, D), jnp.float32),
        compiler_params=pltpu.CompilerParams(
            dimension_semantics=("parallel",)),
    )(xt, *weights)

    return jnp.transpose(out.reshape(L, B, D), (1, 0, 2))


# --------------------------- parameter handling ------------------------------
def make_layer_params(key):
    """Per-layer weights in natural PyTorch layouts (Linear: (out,in), Conv1d:
    (channels, 1, kernel))."""
    ks = jax.random.split(key, 9)
    f32 = jnp.float32
    dt_init = jnp.exp(jax.random.uniform(
        ks[4], (D_INNER,), f32, minval=math.log(1e-3), maxval=math.log(1e-1)))
    return {
        "norm_w": 1.0 + 0.1 * jax.random.normal(ks[6], (D_MODEL,), f32),
        "norm_b": 0.02 * jax.random.normal(ks[7], (D_MODEL,), f32),
        "in_proj_w": (jax.random.normal(ks[0], (2 * D_INNER, D_MODEL), f32)
                      / math.sqrt(D_MODEL)),
        "conv_w": (jax.random.normal(ks[1], (D_INNER, 1, D_CONV), f32)
                   / math.sqrt(D_CONV)),
        "conv_b": 0.02 * jax.random.normal(ks[8], (D_INNER,), f32),
        "x_proj_w": (jax.random.normal(ks[2], (DT_RANK + 2 * D_STATE, D_INNER),
                                       f32) / math.sqrt(D_INNER)),
        "dt_proj_w": (jax.random.normal(ks[3], (D_INNER, DT_RANK), f32)
                      / math.sqrt(DT_RANK)),
        "dt_proj_b": jnp.log(jnp.expm1(dt_init)),          # inverse softplus
        "A_log": jnp.log(jnp.broadcast_to(
            jnp.arange(1, D_STATE + 1, dtype=f32)[None, :],
            (D_INNER, D_STATE))),
        "D": jnp.ones((D_INNER,), f32),
        "out_proj_w": (jax.random.normal(ks[5], (D_MODEL, D_INNER), f32)
                       / math.sqrt(D_INNER)),
    }


def prepare_params(layer_params, norm_f_w, norm_f_b):
    """Host-side folding into kernel layouts.  Layout contract for real weights:
       * Linear weights (out,in) are transposed to (in,out).
       * dt_proj folded into x_proj: columns [dt_pre(D_INNER) | B(N) | C(N)],
         W_dt = x_proj_w[:DT_RANK].T @ dt_proj_w.T.
       * conv taps reindexed so row s multiplies x[t-s] (s = d_conv-1-k).
       * A materialized as -exp(A_log).T with shape (d_state, d_inner)."""
    def prep(p):
        w_dt = jnp.dot(p["x_proj_w"][:DT_RANK, :].T, p["dt_proj_w"].T)
        xdbc = jnp.concatenate([w_dt, p["x_proj_w"][DT_RANK:, :].T], axis=1)
        conv_ws = jnp.flip(p["conv_w"][:, 0, :], axis=-1).T      # (D_CONV, D_INNER)
        pad = D_INNER - D_MODEL
        vecs = jnp.stack([
            jnp.pad(p["norm_w"], (0, pad)),
            jnp.pad(p["norm_b"], (0, pad)),
            p["conv_b"], p["dt_proj_b"], p["D"]])
        return {
            "in_proj": p["in_proj_w"].T,                 # (D_MODEL, 2*D_INNER)
            "conv_ws": conv_ws,                          # (D_CONV, D_INNER)
            "xdbc": xdbc,                                # (D_INNER, D_INNER+2N)
            "negA_T": -jnp.exp(p["A_log"]).T,            # (D_STATE, D_INNER)
            "out_proj": p["out_proj_w"].T,               # (D_INNER, D_MODEL)
            "vecs": vecs,                                # (5, D_INNER)
        }
    preps = [prep(p) for p in layer_params]
    stacked = {k: jnp.stack([pp[k] for pp in preps]) for k in WEIGHT_ORDER}
    normf = jnp.stack([norm_f_w, norm_f_b])              # (2, D_MODEL)
    return stacked, normf


# --------------------------- pure-JAX reference -------------------------------
def mamba_blocks_reference(x, layer_params, norm_f_w, norm_f_b):
    def layernorm(v, w, b):
        mu = v.mean(-1, keepdims=True)
        var = ((v - mu) ** 2).mean(-1, keepdims=True)
        return (v - mu) / jnp.sqrt(var + EPS) * w + b

    def mamba(p, u):                                     # u: (B, L, D_MODEL)
        L = u.shape[1]
        xz = u @ p["in_proj_w"].T
        xs, z = xz[..., :D_INNER], xz[..., D_INNER:]
        w = p["conv_w"][:, 0, :]                         # (D_INNER, D_CONV)
        xp = jnp.pad(xs, ((0, 0), (D_CONV - 1, 0), (0, 0)))
        x_conv = sum(xp[:, k:k + L, :] * w[:, k] for k in range(D_CONV))
        x_act = jax.nn.silu(x_conv + p["conv_b"])
        x_dbl = x_act @ p["x_proj_w"].T
        dt = jax.nn.softplus(x_dbl[..., :DT_RANK] @ p["dt_proj_w"].T
                             + p["dt_proj_b"])
        Bm = x_dbl[..., DT_RANK:DT_RANK + D_STATE]
        Cm = x_dbl[..., DT_RANK + D_STATE:]
        A = -jnp.exp(p["A_log"])                         # (D_INNER, D_STATE)

        def step(h, inp):
            dt_t, B_t, C_t, u_t = inp
            dA = jnp.exp(dt_t[:, :, None] * A[None])
            dBu = dt_t[:, :, None] * B_t[:, None, :] * u_t[:, :, None]
            h = dA * h + dBu
            return h, jnp.einsum("bdn,bn->bd", h, C_t)

        h0 = jnp.zeros((u.shape[0], D_INNER, D_STATE), jnp.float32)
        _, ys = jax.lax.scan(step, h0, (dt.transpose(1, 0, 2),
                                        Bm.transpose(1, 0, 2),
                                        Cm.transpose(1, 0, 2),
                                        x_act.transpose(1, 0, 2)))
        y = ys.transpose(1, 0, 2) + x_act * p["D"]
        y = y * jax.nn.silu(z)
        return y @ p["out_proj_w"].T

    hidden, residual = x, None
    for p in layer_params:
        residual = hidden + residual if residual is not None else hidden
        hidden = mamba(p, layernorm(residual, p["norm_w"], p["norm_b"]))
    residual = hidden + residual
    return layernorm(residual, norm_f_w, norm_f_b)


# --------------------------------- main --------------------------------------
if __name__ == "__main__":
    key = jax.random.PRNGKey(0)
    x = jax.random.normal(key, (BATCH, SEQLEN, D_MODEL), jnp.float32)

    layer_keys = jax.random.split(jax.random.PRNGKey(1), N_LAYER)
    layer_params = [make_layer_params(k) for k in layer_keys]
    norm_f_w = 1.0 + 0.1 * jax.random.normal(jax.random.PRNGKey(2),
                                             (D_MODEL,), jnp.float32)
    norm_f_b = 0.02 * jax.random.normal(jax.random.PRNGKey(3),
                                        (D_MODEL,), jnp.float32)
    stacked, normf = prepare_params(layer_params, norm_f_w, norm_f_b)

    out = mamba_blocks_forward(x, stacked, normf, num_slabs=1)
    out = jax.block_until_ready(out)
    assert out.shape == (BATCH, SEQLEN, D_MODEL)

    ref = mamba_blocks_reference(x, layer_params, norm_f_w, norm_f_b)
    assert jnp.allclose(out, ref, atol=1e-3, rtol=1e-3), \
        float(jnp.max(jnp.abs(out - ref)))
    print("KERNEL_OK")
</pallas_src>

<mosaic_0001>
module attributes {stable_mosaic.version = 11 : i64} {
  func.func @fused_mamba_kernel(%arg0: i32, %arg1: memref<8x1x2x32xf32, #tpu.memory_space<vmem>>, %arg2: memref<2x32x128xf32, #tpu.memory_space<vmem>>, %arg3: memref<2x4x64xf32, #tpu.memory_space<vmem>>, %arg4: memref<2x64x96xf32, #tpu.memory_space<vmem>>, %arg5: memref<2x16x64xf32, #tpu.memory_space<vmem>>, %arg6: memref<2x64x32xf32, #tpu.memory_space<vmem>>, %arg7: memref<2x5x64xf32, #tpu.memory_space<vmem>>, %arg8: memref<2x32xf32, #tpu.memory_space<vmem>>, %arg9: memref<8x1x2x32xf32, #tpu.memory_space<vmem>>) attributes {dimension_semantics = [#tpu.dimension_semantics<parallel>], iteration_bounds = array<i64: 1>, scalar_prefetch = 0 : i64, scratch_operands = 0 : i64, tpu.core_type = #tpu.core_type<tc>, window_params = [{transform_indices = @transform_0, window_bounds = array<i64: 8, 1, 2, 32>}, {pipeline_mode = #tpu.pipeline_mode<synchronous>, transform_indices = @transform_1, window_bounds = array<i64: 2, 32, 128>}, {pipeline_mode = #tpu.pipeline_mode<synchronous>, transform_indices = @transform_2, window_bounds = array<i64: 2, 4, 64>}, {pipeline_mode = #tpu.pipeline_mode<synchronous>, transform_indices = @transform_3, window_bounds = array<i64: 2, 64, 96>}, {pipeline_mode = #tpu.pipeline_mode<synchronous>, transform_indices = @transform_4, window_bounds = array<i64: 2, 16, 64>}, {pipeline_mode = #tpu.pipeline_mode<synchronous>, transform_indices = @transform_5, window_bounds = array<i64: 2, 64, 32>}, {pipeline_mode = #tpu.pipeline_mode<synchronous>, transform_indices = @transform_6, window_bounds = array<i64: 2, 5, 64>}, {pipeline_mode = #tpu.pipeline_mode<synchronous>, transform_indices = @transform_7, window_bounds = array<i64: 2, 32>}, {transform_indices = @transform_8, window_bounds = array<i64: 8, 1, 2, 32>}]} {
    %c0 = arith.constant 0 : index
    %c0_0 = arith.constant 0 : index
    %c0_1 = arith.constant 0 : index
    %c0_2 = arith.constant 0 : index
    %0 = vector.load %arg1[%c0, %c0_0, %c0_1, %c0_2] : memref<8x1x2x32xf32, #tpu.memory_space<vmem>>, vector<8x1x2x32xf32>
    %1 = vector.shape_cast %0 : vector<8x1x2x32xf32> to vector<16x32xf32>
    %cst = arith.constant 0.000000e+00 : f32
    %2 = vector.broadcast %cst : f32 to vector<6x64xf32>
    %c0_3 = arith.constant 0 : index
    %c0_4 = arith.constant 0 : index
    %c0_5 = arith.constant 0 : index
    %3 = vector.load %arg7[%c0_3, %c0_4, %c0_5] : memref<2x5x64xf32, #tpu.memory_space<vmem>>, vector<1x5x64xf32>
    %4 = vector.shape_cast %3 : vector<1x5x64xf32> to vector<5x64xf32>
    %5 = vector.extract_strided_slice %4 {offsets = [0, 0], sizes = [1, 32], strides = [1, 1]} : vector<5x64xf32> to vector<1x32xf32>
    %6 = vector.extract_strided_slice %4 {offsets = [1, 0], sizes = [1, 32], strides = [1, 1]} : vector<5x64xf32> to vector<1x32xf32>
    %7 = vector.extract_strided_slice %4 {offsets = [2, 0], sizes = [1, 64], strides = [1, 1]} : vector<5x64xf32> to vector<1x64xf32>
    %8 = vector.extract_strided_slice %4 {offsets = [3, 0], sizes = [1, 64], strides = [1, 1]} : vector<5x64xf32> to vector<1x64xf32>
    %9 = vector.extract_strided_slice %4 {offsets = [4, 0], sizes = [1, 64], strides = [1, 1]} : vector<5x64xf32> to vector<1x64xf32>
    %cst_6 = arith.constant dense<0.000000e+00> : vector<16xf32>
    %10 = vector.multi_reduction <add>, %1, %cst_6 [1] : vector<16x32xf32> to vector<16xf32>
    %11 = vector.shape_cast %10 : vector<16xf32> to vector<16x1xf32>
    %cst_7 = arith.constant 3.200000e+01 : f32
    %12 = vector.broadcast %cst_7 : f32 to vector<16x1xf32>
    %13 = arith.divf %11, %12 : vector<16x1xf32>
    %14 = vector.broadcast %13 : vector<16x1xf32> to vector<16x32xf32>
    %15 = arith.subf %1, %14 : vector<16x32xf32>
    %16 = arith.mulf %15, %15 : vector<16x32xf32>
    %cst_8 = arith.constant dense<0.000000e+00> : vector<16xf32>
    %17 = vector.multi_reduction <add>, %16, %cst_8 [1] : vector<16x32xf32> to vector<16xf32>
    %18 = vector.shape_cast %17 : vector<16xf32> to vector<16x1xf32>
    %cst_9 = arith.constant 3.200000e+01 : f32
    %19 = vector.broadcast %cst_9 : f32 to vector<16x1xf32>
    %20 = arith.divf %18, %19 : vector<16x1xf32>
    %21 = vector.broadcast %13 : vector<16x1xf32> to vector<16x32xf32>
    %22 = arith.subf %1, %21 : vector<16x32xf32>
    %cst_10 = arith.constant 9.99999974E-6 : f32
    %23 = vector.broadcast %cst_10 : f32 to vector<16x1xf32>
    %24 = arith.addf %20, %23 : vector<16x1xf32>
    %25 = math.rsqrt %24 : vector<16x1xf32>
    %26 = vector.broadcast %25 : vector<16x1xf32> to vector<16x32xf32>
    %27 = arith.mulf %22, %26 : vector<16x32xf32>
    %28 = vector.broadcast %5 : vector<1x32xf32> to vector<16x32xf32>
    %29 = arith.mulf %27, %28 : vector<16x32xf32>
    %30 = vector.broadcast %6 : vector<1x32xf32> to vector<16x32xf32>
    %31 = arith.addf %29, %30 : vector<16x32xf32>
    %c0_11 = arith.constant 0 : index
    %c0_12 = arith.constant 0 : index
    %c0_13 = arith.constant 0 : index
    %32 = vector.load %arg2[%c0_11, %c0_12, %c0_13] : memref<2x32x128xf32, #tpu.memory_space<vmem>>, vector<1x32x128xf32>
    %33 = vector.shape_cast %32 : vector<1x32x128xf32> to vector<32x128xf32>
    %cst_14 = arith.constant dense<0.000000e+00> : vector<16x128xf32>
    %34 = tpu.matmul %31, %33, %cst_14 {dimension_numbers = #tpu.dot_dimension_numbers<[1], [0], [0], [1], [0, 0, 1, 1], [], []>} : vector<16x32xf32>, vector<32x128xf32>, vector<16x128xf32> -> vector<16x128xf32>
    %35 = vector.extract_strided_slice %34 {offsets = [0, 0], sizes = [16, 64], strides = [1, 1]} : vector<16x128xf32> to vector<16x64xf32>
    %36 = vector.extract_strided_slice %34 {offsets = [0, 64], sizes = [16, 64], strides = [1, 1]} : vector<16x128xf32> to vector<16x64xf32>
    %c0_15 = arith.constant 0 : index
    %c0_16 = arith.constant 0 : index
    %c0_17 = arith.constant 0 : index
    %37 = vector.load %arg3[%c0_15, %c0_16, %c0_17] : memref<2x4x64xf32, #tpu.memory_space<vmem>>, vector<1x4x64xf32>
    %38 = vector.shape_cast %37 : vector<1x4x64xf32> to vector<4x64xf32>
    %39 = tpu.concatenate %2, %35 in 0 : vector<6x64xf32>, vector<16x64xf32> -> vector<22x64xf32>
    %40 = vector.extract_strided_slice %38 {offsets = [0, 0], sizes = [1, 64], strides = [1, 1]} : vector<4x64xf32> to vector<1x64xf32>
    %41 = vector.broadcast %40 : vector<1x64xf32> to vector<16x64xf32>
    %42 = arith.mulf %35, %41 : vector<16x64xf32>
    %43 = vector.extract_strided_slice %39 {offsets = [4, 0], sizes = [16, 64], strides = [1, 1]} : vector<22x64xf32> to vector<16x64xf32>
    %44 = vector.extract_strided_slice %38 {offsets = [1, 0], sizes = [1, 64], strides = [1, 1]} : vector<4x64xf32> to vector<1x64xf32>
    %45 = vector.broadcast %44 : vector<1x64xf32> to vector<16x64xf32>
    %46 = arith.mulf %43, %45 : vector<16x64xf32>
    %47 = arith.addf %42, %46 : vector<16x64xf32>
    %48 = vector.extract_strided_slice %39 {offsets = [2, 0], sizes = [16, 64], strides = [1, 1]} : vector<22x64xf32> to vector<16x64xf32>
    %49 = vector.extract_strided_slice %38 {offsets = [2, 0], sizes = [1, 64], strides = [1, 1]} : vector<4x64xf32> to vector<1x64xf32>
    %50 = vector.broadcast %49 : vector<1x64xf32> to vector<16x64xf32>
    %51 = arith.mulf %48, %50 : vector<16x64xf32>
    %52 = arith.addf %47, %51 : vector<16x64xf32>
    %53 = vector.extract_strided_slice %39 {offsets = [0, 0], sizes = [16, 64], strides = [1, 1]} : vector<22x64xf32> to vector<16x64xf32>
    %54 = vector.extract_strided_slice %38 {offsets = [3, 0], sizes = [1, 64], strides = [1, 1]} : vector<4x64xf32> to vector<1x64xf32>
    %55 = vector.broadcast %54 : vector<1x64xf32> to vector<16x64xf32>
    %56 = arith.mulf %53, %55 : vector<16x64xf32>
    %57 = arith.addf %52, %56 : vector<16x64xf32>
    %58 = vector.broadcast %7 : vector<1x64xf32> to vector<16x64xf32>
    %59 = arith.addf %57, %58 : vector<16x64xf32>
    %60 = arith.negf %59 : vector<16x64xf32>
    %61 = math.exp %60 : vector<16x64xf32>
    %cst_18 = arith.constant 1.000000e+00 : f32
    %62 = vector.broadcast %cst_18 : f32 to vector<16x64xf32>
    %63 = arith.addf %62, %61 : vector<16x64xf32>
    %64 = arith.divf %62, %63 : vector<16x64xf32>
    %65 = arith.mulf %59, %64 : vector<16x64xf32>
    %c0_19 = arith.constant 0 : index
    %c0_20 = arith.constant 0 : index
    %c0_21 = arith.constant 0 : index
    %66 = vector.load %arg4[%c0_19, %c0_20, %c0_21] : memref<2x64x96xf32, #tpu.memory_space<vmem>>, vector<1x64x96xf32>
    %67 = vector.shape_cast %66 : vector<1x64x96xf32> to vector<64x96xf32>
    %cst_22 = arith.constant dense<0.000000e+00> : vector<16x96xf32>
    %68 = tpu.matmul %65, %67, %cst_22 {dimension_numbers = #tpu.dot_dimension_numbers<[1], [0], [0], [1], [0, 0, 1, 1], [], []>} : vector<16x64xf32>, vector<64x96xf32>, vector<16x96xf32> -> vector<16x96xf32>
    %69 = vector.extract_strided_slice %68 {offsets = [0, 0], sizes = [16, 64], strides = [1, 1]} : vector<16x96xf32> to vector<16x64xf32>
    %70 = vector.broadcast %8 : vector<1x64xf32> to vector<16x64xf32>
    %71 = arith.addf %69, %70 : vector<16x64xf32>
    %cst_23 = arith.constant 0.000000e+00 : f32
    %72 = vector.broadcast %cst_23 : f32 to vector<16x64xf32>
    %73 = arith.maximumf %71, %72 : vector<16x64xf32>
    %74 = vector.broadcast %cst_23 : f32 to vector<16x64xf32>
    %75 = arith.subf %71, %74 : vector<16x64xf32>
    %76 = arith.cmpf one, %75, %75 : vector<16x64xf32>
    %77 = vector.broadcast %cst_23 : f32 to vector<16x64xf32>
    %78 = arith.addf %71, %77 : vector<16x64xf32>
    %79 = math.absf %75 : vector<16x64xf32>
    %cst_24 = arith.constant 0.000000e+00 : f32
    %80 = vector.broadcast %cst_24 : f32 to vector<16x64xf32>
    %81 = arith.subf %80, %79 : vector<16x64xf32>
    %82 = math.exp %81 : vector<16x64xf32>
    %83 = math.log1p %82 : vector<16x64xf32>
    %84 = arith.addf %73, %83 : vector<16x64xf32>
    %85 = arith.select %76, %78, %84 : vector<16x64xi1>, vector<16x64xf32>
    %86 = vector.extract_strided_slice %68 {offsets = [0, 64], sizes = [16, 16], strides = [1, 1]} : vector<16x96xf32> to vector<16x16xf32>
    %87 = vector.extract_strided_slice %68 {offsets = [0, 80], sizes = [16, 16], strides = [1, 1]} : vector<16x96xf32> to vector<16x16xf32>
    %c0_25 = arith.constant 0 : index
    %c0_26 = arith.constant 0 : index
    %c0_27 = arith.constant 0 : index
    %88 = vector.load %arg5[%c0_25, %c0_26, %c0_27] : memref<2x16x64xf32, #tpu.memory_space<vmem>>, vector<1x16x64xf32>
    %89 = vector.shape_cast %88 : vector<1x16x64xf32> to vector<16x64xf32>
    %90 = arith.mulf %85, %65 : vector<16x64xf32>
    %91 = vector.shape_cast %85 : vector<16x64xf32> to vector<8x2x64xf32>
    %92 = vector.shape_cast %91 : vector<8x2x64xf32> to vector<8x2x1x64xf32>
    %93 = vector.shape_cast %90 : vector<16x64xf32> to vector<8x2x64xf32>
    %94 = vector.shape_cast %93 : vector<8x2x64xf32> to vector<8x2x1x64xf32>
    %95 = vector.shape_cast %86 : vector<16x16xf32> to vector<8x2x16xf32>
    %96 = vector.shape_cast %95 : vector<8x2x16xf32> to vector<8x2x16x1xf32>
    %97 = vector.shape_cast %87 : vector<16x16xf32> to vector<8x2x16xf32>
    %98 = vector.shape_cast %97 : vector<8x2x16xf32> to vector<8x2x16x1xf32>
    %99 = vector.shape_cast %89 : vector<16x64xf32> to vector<1x1x16x64xf32>
    %100 = vector.broadcast %92 : vector<8x2x1x64xf32> to vector<8x2x16x64xf32>
    %101 = vector.broadcast %99 : vector<1x1x16x64xf32> to vector<8x2x16x64xf32>
    %102 = arith.mulf %100, %101 : vector<8x2x16x64xf32>
    %103 = math.exp %102 : vector<8x2x16x64xf32>
    %104 = vector.broadcast %96 : vector<8x2x16x1xf32> to vector<8x2x16x64xf32>
    %105 = vector.broadcast %94 : vector<8x2x1x64xf32> to vector<8x2x16x64xf32>
    %106 = arith.mulf %104, %105 : vector<8x2x16x64xf32>
    %cst_28 = arith.constant 1.000000e+00 : f32
    %107 = vector.broadcast %cst_28 : f32 to vector<1x2x16x64xf32>
    %cst_29 = arith.constant 0.000000e+00 : f32
    %108 = vector.broadcast %cst_29 : f32 to vector<1x2x16x64xf32>
    %109 = vector.extract_strided_slice %103 {offsets = [0, 0, 0, 0], sizes = [7, 2, 16, 64], strides = [1, 1, 1, 1]} : vector<8x2x16x64xf32> to vector<7x2x16x64xf32>
    %110 = tpu.concatenate %107, %109 in 0 : vector<1x2x16x64xf32>, vector<7x2x16x64xf32> -> vector<8x2x16x64xf32>
    %111 = vector.extract_strided_slice %106 {offsets = [0, 0, 0, 0], sizes = [7, 2, 16, 64], strides = [1, 1, 1, 1]} : vector<8x2x16x64xf32> to vector<7x2x16x64xf32>
    %112 = tpu.concatenate %108, %111 in 0 : vector<1x2x16x64xf32>, vector<7x2x16x64xf32> -> vector<8x2x16x64xf32>
    %113 = arith.mulf %103, %112 : vector<8x2x16x64xf32>
    %114 = arith.addf %113, %106 : vector<8x2x16x64xf32>
    %115 = arith.mulf %103, %110 : vector<8x2x16x64xf32>
    %cst_30 = arith.constant 1.000000e+00 : f32
    %116 = vector.broadcast %cst_30 : f32 to vector<2x2x16x64xf32>
    %cst_31 = arith.constant 0.000000e+00 : f32
    %117 = vector.broadcast %cst_31 : f32 to vector<2x2x16x64xf32>
    %118 = vector.extract_strided_slice %115 {offsets = [0, 0, 0, 0], sizes = [6, 2, 16, 64], strides = [1, 1, 1, 1]} : vector<8x2x16x64xf32> to vector<6x2x16x64xf32>
    %119 = tpu.concatenate %116, %118 in 0 : vector<2x2x16x64xf32>, vector<6x2x16x64xf32> -> vector<8x2x16x64xf32>
    %120 = vector.extract_strided_slice %114 {offsets = [0, 0, 0, 0], sizes = [6, 2, 16, 64], strides = [1, 1, 1, 1]} : vector<8x2x16x64xf32> to vector<6x2x16x64xf32>
    %121 = tpu.concatenate %117, %120 in 0 : vector<2x2x16x64xf32>, vector<6x2x16x64xf32> -> vector<8x2x16x64xf32>
    %122 = arith.mulf %115, %121 : vector<8x2x16x64xf32>
    %123 = arith.addf %122, %114 : vector<8x2x16x64xf32>
    %124 = arith.mulf %115, %119 : vector<8x2x16x64xf32>
    %cst_32 = arith.constant 0.000000e+00 : f32
    %125 = vector.broadcast %cst_32 : f32 to vector<4x2x16x64xf32>
    %126 = vector.extract_strided_slice %123 {offsets = [0, 0, 0, 0], sizes = [4, 2, 16, 64], strides = [1, 1, 1, 1]} : vector<8x2x16x64xf32> to vector<4x2x16x64xf32>
    %127 = tpu.concatenate %125, %126 in 0 : vector<4x2x16x64xf32>, vector<4x2x16x64xf32> -> vector<8x2x16x64xf32>
    %128 = arith.mulf %124, %127 : vector<8x2x16x64xf32>
    %129 = arith.addf %128, %123 : vector<8x2x16x64xf32>
    %130 = vector.broadcast %98 : vector<8x2x16x1xf32> to vector<8x2x16x64xf32>
    %131 = arith.mulf %130, %129 : vector<8x2x16x64xf32>
    %cst_33 = arith.constant dense<0.000000e+00> : vector<8x2x64xf32>
    %132 = vector.multi_reduction <add>, %131, %cst_33 [2] : vector<8x2x16x64xf32> to vector<8x2x64xf32>
    %133 = vector.shape_cast %132 : vector<8x2x64xf32> to vector<16x64xf32>
    %134 = vector.broadcast %9 : vector<1x64xf32> to vector<16x64xf32>
    %135 = arith.mulf %65, %134 : vector<16x64xf32>
    %136 = arith.addf %133, %135 : vector<16x64xf32>
    %137 = arith.negf %36 : vector<16x64xf32>
    %138 = math.exp %137 : vector<16x64xf32>
    %cst_34 = arith.constant 1.000000e+00 : f32
    %139 = vector.broadcast %cst_34 : f32 to vector<16x64xf32>
    %140 = arith.addf %139, %138 : vector<16x64xf32>
    %141 = arith.divf %139, %140 : vector<16x64xf32>
    %142 = arith.mulf %36, %141 : vector<16x64xf32>
    %143 = arith.mulf %136, %142 : vector<16x64xf32>
    %c0_35 = arith.constant 0 : index
    %c0_36 = arith.constant 0 : index
    %c0_37 = arith.constant 0 : index
    %144 = vector.load %arg6[%c0_35, %c0_36, %c0_37] : memref<2x64x32xf32, #tpu.memory_space<vmem>>, vector<1x64x32xf32>
    %145 = vector.shape_cast %144 : vector<1x64x32xf32> to vector<64x32xf32>
    %cst_38 = arith.constant dense<0.000000e+00> : vector<16x32xf32>
    %146 = tpu.matmul %143, %145, %cst_38 {dimension_numbers = #tpu.dot_dimension_numbers<[1], [0], [0], [1], [0, 0, 1, 1], [], []>} : vector<16x64xf32>, vector<64x32xf32>, vector<16x32xf32> -> vector<16x32xf32>
    %147 = arith.addf %146, %1 : vector<16x32xf32>
    %c1 = arith.constant 1 : index
    %c0_39 = arith.constant 0 : index
    %c0_40 = arith.constant 0 : index
    %148 = vector.load %arg7[%c1, %c0_39, %c0_40] : memref<2x5x64xf32, #tpu.memory_space<vmem>>, vector<1x5x64xf32>
    %149 = vector.shape_cast %148 : vector<1x5x64xf32> to vector<5x64xf32>
    %150 = vector.extract_strided_slice %149 {offsets = [0, 0], sizes = [1, 32], strides = [1, 1]} : vector<5x64xf32> to vector<1x32xf32>
    %151 = vector.extract_strided_slice %149 {offsets = [1, 0], sizes = [1, 32], strides = [1, 1]} : vector<5x64xf32> to vector<1x32xf32>
    %152 = vector.extract_strided_slice %149 {offsets = [2, 0], sizes = [1, 64], strides = [1, 1]} : vector<5x64xf32> to vector<1x64xf32>
    %153 = vector.extract_strided_slice %149 {offsets = [3, 0], sizes = [1, 64], strides = [1, 1]} : vector<5x64xf32> to vector<1x64xf32>
    %154 = vector.extract_strided_slice %149 {offsets = [4, 0], sizes = [1, 64], strides = [1, 1]} : vector<5x64xf32> to vector<1x64xf32>
    %cst_41 = arith.constant dense<0.000000e+00> : vector<16xf32>
    %155 = vector.multi_reduction <add>, %147, %cst_41 [1] : vector<16x32xf32> to vector<16xf32>
    %156 = vector.shape_cast %155 : vector<16xf32> to vector<16x1xf32>
    %cst_42 = arith.constant 3.200000e+01 : f32
    %157 = vector.broadcast %cst_42 : f32 to vector<16x1xf32>
    %158 = arith.divf %156, %157 : vector<16x1xf32>
    %159 = vector.broadcast %158 : vector<16x1xf32> to vector<16x32xf32>
    %160 = arith.subf %147, %159 : vector<16x32xf32>
    %161 = arith.mulf %160, %160 : vector<16x32xf32>
    %cst_43 = arith.constant dense<0.000000e+00> : vector<16xf32>
    %162 = vector.multi_reduction <add>, %161, %cst_43 [1] : vector<16x32xf32> to vector<16xf32>
    %163 = vector.shape_cast %162 : vector<16xf32> to vector<16x1xf32>
    %cst_44 = arith.constant 3.200000e+01 : f32
    %164 = vector.broadcast %cst_44 : f32 to vector<16x1xf32>
    %165 = arith.divf %163, %164 : vector<16x1xf32>
    %166 = vector.broadcast %158 : vector<16x1xf32> to vector<16x32xf32>
    %167 = arith.subf %147, %166 : vector<16x32xf32>
    %cst_45 = arith.constant 9.99999974E-6 : f32
    %168 = vector.broadcast %cst_45 : f32 to vector<16x1xf32>
    %169 = arith.addf %165, %168 : vector<16x1xf32>
    %170 = math.rsqrt %169 : vector<16x1xf32>
    %171 = vector.broadcast %170 : vector<16x1xf32> to vector<16x32xf32>
    %172 = arith.mulf %167, %171 : vector<16x32xf32>
    %173 = vector.broadcast %150 : vector<1x32xf32> to vector<16x32xf32>
    %174 = arith.mulf %172, %173 : vector<16x32xf32>
    %175 = vector.broadcast %151 : vector<1x32xf32> to vector<16x32xf32>
    %176 = arith.addf %174, %175 : vector<16x32xf32>
    %c1_46 = arith.constant 1 : index
    %c0_47 = arith.constant 0 : index
    %c0_48 = arith.constant 0 : index
    %177 = vector.load %arg2[%c1_46, %c0_47, %c0_48] : memref<2x32x128xf32, #tpu.memory_space<vmem>>, vector<1x32x128xf32>
    %178 = vector.shape_cast %177 : vector<1x32x128xf32> to vector<32x128xf32>
    %cst_49 = arith.constant dense<0.000000e+00> : vector<16x128xf32>
    %179 = tpu.matmul %176, %178, %cst_49 {dimension_numbers = #tpu.dot_dimension_numbers<[1], [0], [0], [1], [0, 0, 1, 1], [], []>} : vector<16x32xf32>, vector<32x128xf32>, vector<16x128xf32> -> vector<16x128xf32>
    %180 = vector.extract_strided_slice %179 {offsets = [0, 0], sizes = [16, 64], strides = [1, 1]} : vector<16x128xf32> to vector<16x64xf32>
    %181 = vector.extract_strided_slice %179 {offsets = [0, 64], sizes = [16, 64], strides = [1, 1]} : vector<16x128xf32> to vector<16x64xf32>
    %c1_50 = arith.constant 1 : index
    %c0_51 = arith.constant 0 : index
    %c0_52 = arith.constant 0 : index
    %182 = vector.load %arg3[%c1_50, %c0_51, %c0_52] : memref<2x4x64xf32, #tpu.memory_space<vmem>>, vector<1x4x64xf32>
    %183 = vector.shape_cast %182 : vector<1x4x64xf32> to vector<4x64xf32>
    %184 = tpu.concatenate %2, %180 in 0 : vector<6x64xf32>, vector<16x64xf32> -> vector<22x64xf32>
    %185 = vector.extract_strided_slice %183 {offsets = [0, 0], sizes = [1, 64], strides = [1, 1]} : vector<4x64xf32> to vector<1x64xf32>
    %186 = vector.broadcast %185 : vector<1x64xf32> to vector<16x64xf32>
    %187 = arith.mulf %180, %186 : vector<16x64xf32>
    %188 = vector.extract_strided_slice %184 {offsets = [4, 0], sizes = [16, 64], strides = [1, 1]} : vector<22x64xf32> to vector<16x64xf32>
    %189 = vector.extract_strided_slice %183 {offsets = [1, 0], sizes = [1, 64], strides = [1, 1]} : vector<4x64xf32> to vector<1x64xf32>
    %190 = vector.broadcast %189 : vector<1x64xf32> to vector<16x64xf32>
    %191 = arith.mulf %188, %190 : vector<16x64xf32>
    %192 = arith.addf %187, %191 : vector<16x64xf32>
    %193 = vector.extract_strided_slice %184 {offsets = [2, 0], sizes = [16, 64], strides = [1, 1]} : vector<22x64xf32> to vector<16x64xf32>
    %194 = vector.extract_strided_slice %183 {offsets = [2, 0], sizes = [1, 64], strides = [1, 1]} : vector<4x64xf32> to vector<1x64xf32>
    %195 = vector.broadcast %194 : vector<1x64xf32> to vector<16x64xf32>
    %196 = arith.mulf %193, %195 : vector<16x64xf32>
    %197 = arith.addf %192, %196 : vector<16x64xf32>
    %198 = vector.extract_strided_slice %184 {offsets = [0, 0], sizes = [16, 64], strides = [1, 1]} : vector<22x64xf32> to vector<16x64xf32>
    %199 = vector.extract_strided_slice %183 {offsets = [3, 0], sizes = [1, 64], strides = [1, 1]} : vector<4x64xf32> to vector<1x64xf32>
    %200 = vector.broadcast %199 : vector<1x64xf32> to vector<16x64xf32>
    %201 = arith.mulf %198, %200 : vector<16x64xf32>
    %202 = arith.addf %197, %201 : vector<16x64xf32>
    %203 = vector.broadcast %152 : vector<1x64xf32> to vector<16x64xf32>
    %204 = arith.addf %202, %203 : vector<16x64xf32>
    %205 = arith.negf %204 : vector<16x64xf32>
    %206 = math.exp %205 : vector<16x64xf32>
    %cst_53 = arith.constant 1.000000e+00 : f32
    %207 = vector.broadcast %cst_53 : f32 to vector<16x64xf32>
    %208 = arith.addf %207, %206 : vector<16x64xf32>
    %209 = arith.divf %207, %208 : vector<16x64xf32>
    %210 = arith.mulf %204, %209 : vector<16x64xf32>
    %c1_54 = arith.constant 1 : index
    %c0_55 = arith.constant 0 : index
    %c0_56 = arith.constant 0 : index
    %211 = vector.load %arg4[%c1_54, %c0_55, %c0_56] : memref<2x64x96xf32, #tpu.memory_space<vmem>>, vector<1x64x96xf32>
    %212 = vector.shape_cast %211 : vector<1x64x96xf32> to vector<64x96xf32>
    %cst_57 = arith.constant dense<0.000000e+00> : vector<16x96xf32>
    %213 = tpu.matmul %210, %212, %cst_57 {dimension_numbers = #tpu.dot_dimension_numbers<[1], [0], [0], [1], [0, 0, 1, 1], [], []>} : vector<16x64xf32>, vector<64x96xf32>, vector<16x96xf32> -> vector<16x96xf32>
    %214 = vector.extract_strided_slice %213 {offsets = [0, 0], sizes = [16, 64], strides = [1, 1]} : vector<16x96xf32> to vector<16x64xf32>
    %215 = vector.broadcast %153 : vector<1x64xf32> to vector<16x64xf32>
    %216 = arith.addf %214, %215 : vector<16x64xf32>
    %cst_58 = arith.constant 0.000000e+00 : f32
    %217 = vector.broadcast %cst_58 : f32 to vector<16x64xf32>
    %218 = arith.maximumf %216, %217 : vector<16x64xf32>
    %219 = vector.broadcast %cst_58 : f32 to vector<16x64xf32>
    %220 = arith.subf %216, %219 : vector<16x64xf32>
    %221 = arith.cmpf one, %220, %220 : vector<16x64xf32>
    %222 = vector.broadcast %cst_58 : f32 to vector<16x64xf32>
    %223 = arith.addf %216, %222 : vector<16x64xf32>
    %224 = math.absf %220 : vector<16x64xf32>
    %cst_59 = arith.constant 0.000000e+00 : f32
    %225 = vector.broadcast %cst_59 : f32 to vector<16x64xf32>
    %226 = arith.subf %225, %224 : vector<16x64xf32>
    %227 = math.exp %226 : vector<16x64xf32>
    %228 = math.log1p %227 : vector<16x64xf32>
    %229 = arith.addf %218, %228 : vector<16x64xf32>
    %230 = arith.select %221, %223, %229 : vector<16x64xi1>, vector<16x64xf32>
    %231 = vector.extract_strided_slice %213 {offsets = [0, 64], sizes = [16, 16], strides = [1, 1]} : vector<16x96xf32> to vector<16x16xf32>
    %232 = vector.extract_strided_slice %213 {offsets = [0, 80], sizes = [16, 16], strides = [1, 1]} : vector<16x96xf32> to vector<16x16xf32>
    %c1_60 = arith.constant 1 : index
    %c0_61 = arith.constant 0 : index
    %c0_62 = arith.constant 0 : index
    %233 = vector.load %arg5[%c1_60, %c0_61, %c0_62] : memref<2x16x64xf32, #tpu.memory_space<vmem>>, vector<1x16x64xf32>
    %234 = vector.shape_cast %233 : vector<1x16x64xf32> to vector<16x64xf32>
    %235 = arith.mulf %230, %210 : vector<16x64xf32>
    %236 = vector.shape_cast %230 : vector<16x64xf32> to vector<8x2x64xf32>
    %237 = vector.shape_cast %236 : vector<8x2x64xf32> to vector<8x2x1x64xf32>
    %238 = vector.shape_cast %235 : vector<16x64xf32> to vector<8x2x64xf32>
    %239 = vector.shape_cast %238 : vector<8x2x64xf32> to vector<8x2x1x64xf32>
    %240 = vector.shape_cast %231 : vector<16x16xf32> to vector<8x2x16xf32>
    %241 = vector.shape_cast %240 : vector<8x2x16xf32> to vector<8x2x16x1xf32>
    %242 = vector.shape_cast %232 : vector<16x16xf32> to vector<8x2x16xf32>
    %243 = vector.shape_cast %242 : vector<8x2x16xf32> to vector<8x2x16x1xf32>
    %244 = vector.shape_cast %234 : vector<16x64xf32> to vector<1x1x16x64xf32>
    %245 = vector.broadcast %237 : vector<8x2x1x64xf32> to vector<8x2x16x64xf32>
    %246 = vector.broadcast %244 : vector<1x1x16x64xf32> to vector<8x2x16x64xf32>
    %247 = arith.mulf %245, %246 : vector<8x2x16x64xf32>
    %248 = math.exp %247 : vector<8x2x16x64xf32>
    %249 = vector.broadcast %241 : vector<8x2x16x1xf32> to vector<8x2x16x64xf32>
    %250 = vector.broadcast %239 : vector<8x2x1x64xf32> to vector<8x2x16x64xf32>
    %251 = arith.mulf %249, %250 : vector<8x2x16x64xf32>
    %cst_63 = arith.constant 1.000000e+00 : f32
    %252 = vector.broadcast %cst_63 : f32 to vector<1x2x16x64xf32>
    %cst_64 = arith.constant 0.000000e+00 : f32
    %253 = vector.broadcast %cst_64 : f32 to vector<1x2x16x64xf32>
    %254 = vector.extract_strided_slice %248 {offsets = [0, 0, 0, 0], sizes = [7, 2, 16, 64], strides = [1, 1, 1, 1]} : vector<8x2x16x64xf32> to vector<7x2x16x64xf32>
    %255 = tpu.concatenate %252, %254 in 0 : vector<1x2x16x64xf32>, vector<7x2x16x64xf32> -> vector<8x2x16x64xf32>
    %256 = vector.extract_strided_slice %251 {offsets = [0, 0, 0, 0], sizes = [7, 2, 16, 64], strides = [1, 1, 1, 1]} : vector<8x2x16x64xf32> to vector<7x2x16x64xf32>
    %257 = tpu.concatenate %253, %256 in 0 : vector<1x2x16x64xf32>, vector<7x2x16x64xf32> -> vector<8x2x16x64xf32>
    %258 = arith.mulf %248, %257 : vector<8x2x16x64xf32>
    %259 = arith.addf %258, %251 : vector<8x2x16x64xf32>
    %260 = arith.mulf %248, %255 : vector<8x2x16x64xf32>
    %cst_65 = arith.constant 1.000000e+00 : f32
    %261 = vector.broadcast %cst_65 : f32 to vector<2x2x16x64xf32>
    %cst_66 = arith.constant 0.000000e+00 : f32
    %262 = vector.broadcast %cst_66 : f32 to vector<2x2x16x64xf32>
    %263 = vector.extract_strided_slice %260 {offsets = [0, 0, 0, 0], sizes = [6, 2, 16, 64], strides = [1, 1, 1, 1]} : vector<8x2x16x64xf32> to vector<6x2x16x64xf32>
    %264 = tpu.concatenate %261, %263 in 0 : vector<2x2x16x64xf32>, vector<6x2x16x64xf32> -> vector<8x2x16x64xf32>
    %265 = vector.extract_strided_slice %259 {offsets = [0, 0, 0, 0], sizes = [6, 2, 16, 64], strides = [1, 1, 1, 1]} : vector<8x2x16x64xf32> to vector<6x2x16x64xf32>
    %266 = tpu.concatenate %262, %265 in 0 : vector<2x2x16x64xf32>, vector<6x2x16x64xf32> -> vector<8x2x16x64xf32>
    %267 = arith.mulf %260, %266 : vector<8x2x16x64xf32>
    %268 = arith.addf %267, %259 : vector<8x2x16x64xf32>
    %269 = arith.mulf %260, %264 : vector<8x2x16x64xf32>
    %cst_67 = arith.constant 0.000000e+00 : f32
    %270 = vector.broadcast %cst_67 : f32 to vector<4x2x16x64xf32>
    %271 = vector.extract_strided_slice %268 {offsets = [0, 0, 0, 0], sizes = [4, 2, 16, 64], strides = [1, 1, 1, 1]} : vector<8x2x16x64xf32> to vector<4x2x16x64xf32>
    %272 = tpu.concatenate %270, %271 in 0 : vector<4x2x16x64xf32>, vector<4x2x16x64xf32> -> vector<8x2x16x64xf32>
    %273 = arith.mulf %269, %272 : vector<8x2x16x64xf32>
    %274 = arith.addf %273, %268 : vector<8x2x16x64xf32>
    %275 = vector.broadcast %243 : vector<8x2x16x1xf32> to vector<8x2x16x64xf32>
    %276 = arith.mulf %275, %274 : vector<8x2x16x64xf32>
    %cst_68 = arith.constant dense<0.000000e+00> : vector<8x2x64xf32>
    %277 = vector.multi_reduction <add>, %276, %cst_68 [2] : vector<8x2x16x64xf32> to vector<8x2x64xf32>
    %278 = vector.shape_cast %277 : vector<8x2x64xf32> to vector<16x64xf32>
    %279 = vector.broadcast %154 : vector<1x64xf32> to vector<16x64xf32>
    %280 = arith.mulf %210, %279 : vector<16x64xf32>
    %281 = arith.addf %278, %280 : vector<16x64xf32>
    %282 = arith.negf %181 : vector<16x64xf32>
    %283 = math.exp %282 : vector<16x64xf32>
    %cst_69 = arith.constant 1.000000e+00 : f32
    %284 = vector.broadcast %cst_69 : f32 to vector<16x64xf32>
    %285 = arith.addf %284, %283 : vector<16x64xf32>
    %286 = arith.divf %284, %285 : vector<16x64xf32>
    %287 = arith.mulf %181, %286 : vector<16x64xf32>
    %288 = arith.mulf %281, %287 : vector<16x64xf32>
    %c1_70 = arith.constant 1 : index
    %c0_71 = arith.constant 0 : index
    %c0_72 = arith.constant 0 : index
    %289 = vector.load %arg6[%c1_70, %c0_71, %c0_72] : memref<2x64x32xf32, #tpu.memory_space<vmem>>, vector<1x64x32xf32>
    %290 = vector.shape_cast %289 : vector<1x64x32xf32> to vector<64x32xf32>
    %cst_73 = arith.constant dense<0.000000e+00> : vector<16x32xf32>
    %291 = tpu.matmul %288, %290, %cst_73 {dimension_numbers = #tpu.dot_dimension_numbers<[1], [0], [0], [1], [0, 0, 1, 1], [], []>} : vector<16x64xf32>, vector<64x32xf32>, vector<16x32xf32> -> vector<16x32xf32>
    %292 = arith.addf %291, %147 : vector<16x32xf32>
    %c0_74 = arith.constant 0 : index
    %c0_75 = arith.constant 0 : index
    %293 = vector.load %arg8[%c0_74, %c0_75] : memref<2x32xf32, #tpu.memory_space<vmem>>, vector<1x32xf32>
    %c1_76 = arith.constant 1 : index
    %c0_77 = arith.constant 0 : index
    %294 = vector.load %arg8[%c1_76, %c0_77] : memref<2x32xf32, #tpu.memory_space<vmem>>, vector<1x32xf32>
    %cst_78 = arith.constant dense<0.000000e+00> : vector<16xf32>
    %295 = vector.multi_reduction <add>, %292, %cst_78 [1] : vector<16x32xf32> to vector<16xf32>
    %296 = vector.shape_cast %295 : vector<16xf32> to vector<16x1xf32>
    %cst_79 = arith.constant 3.200000e+01 : f32
    %297 = vector.broadcast %cst_79 : f32 to vector<16x1xf32>
    %298 = arith.divf %296, %297 : vector<16x1xf32>
    %299 = vector.broadcast %298 : vector<16x1xf32> to vector<16x32xf32>
    %300 = arith.subf %292, %299 : vector<16x32xf32>
    %301 = arith.mulf %300, %300 : vector<16x32xf32>
    %cst_80 = arith.constant dense<0.000000e+00> : vector<16xf32>
    %302 = vector.multi_reduction <add>, %301, %cst_80 [1] : vector<16x32xf32> to vector<16xf32>
    %303 = vector.shape_cast %302 : vector<16xf32> to vector<16x1xf32>
    %cst_81 = arith.constant 3.200000e+01 : f32
    %304 = vector.broadcast %cst_81 : f32 to vector<16x1xf32>
    %305 = arith.divf %303, %304 : vector<16x1xf32>
    %306 = vector.broadcast %298 : vector<16x1xf32> to vector<16x32xf32>
    %307 = arith.subf %292, %306 : vector<16x32xf32>
    %cst_82 = arith.constant 9.99999974E-6 : f32
    %308 = vector.broadcast %cst_82 : f32 to vector<16x1xf32>
    %309 = arith.addf %305, %308 : vector<16x1xf32>
    %310 = math.rsqrt %309 : vector<16x1xf32>
    %311 = vector.broadcast %310 : vector<16x1xf32> to vector<16x32xf32>
    %312 = arith.mulf %307, %311 : vector<16x32xf32>
    %313 = vector.broadcast %293 : vector<1x32xf32> to vector<16x32xf32>
    %314 = arith.mulf %312, %313 : vector<16x32xf32>
    %315 = vector.broadcast %294 : vector<1x32xf32> to vector<16x32xf32>
    %316 = arith.addf %314, %315 : vector<16x32xf32>
    %317 = vector.shape_cast %316 : vector<16x32xf32> to vector<8x1x2x32xf32>
    %c0_83 = arith.constant 0 : index
    %c0_84 = arith.constant 0 : index
    %c0_85 = arith.constant 0 : index
    %c0_86 = arith.constant 0 : index
    %318 = vector.load %arg9[%c0_83, %c0_84, %c0_85, %c0_86] : memref<8x1x2x32xf32, #tpu.memory_space<vmem>>, vector<8x1x2x32xf32>
    tpu.vector_store %arg9[%c0_83, %c0_84, %c0_85, %c0_86], %317 {strides = array<i32>} : memref<8x1x2x32xf32, #tpu.memory_space<vmem>>, vector<8x1x2x32xf32>,
    return
  }
  func.func @transform_0(%arg0: i32) -> (i32, i32, i32, i32) {
    %c0_i32 = arith.constant 0 : i32
    %c0_i32_0 = arith.constant 0 : i32
    %c0_i32_1 = arith.constant 0 : i32
    %c0_i32_2 = arith.constant 0 : i32
    return %c0_i32, %arg0, %c0_i32_0, %c0_i32_1 : i32, i32, i32, i32
  }
  func.func @transform_1(%arg0: i32) -> (i32, i32, i32) {
    %c0_i32 = arith.constant 0 : i32
    %c0_i32_0 = arith.constant 0 : i32
    %c0_i32_1 = arith.constant 0 : i32
    %c0_i32_2 = arith.constant 0 : i32
    return %c0_i32, %c0_i32_0, %c0_i32_1 : i32, i32, i32
  }
  func.func @transform_2(%arg0: i32) -> (i32, i32, i32) {
    %c0_i32 = arith.constant 0 : i32
    %c0_i32_0 = arith.constant 0 : i32
    %c0_i32_1 = arith.constant 0 : i32
    %c0_i32_2 = arith.constant 0 : i32
    return %c0_i32, %c0_i32_0, %c0_i32_1 : i32, i32, i32
  }
  func.func @transform_3(%arg0: i32) -> (i32, i32, i32) {
    %c0_i32 = arith.constant 0 : i32
    %c0_i32_0 = arith.constant 0 : i32
    %c0_i32_1 = arith.constant 0 : i32
    %c0_i32_2 = arith.constant 0 : i32
    return %c0_i32, %c0_i32_0, %c0_i32_1 : i32, i32, i32
  }
  func.func @transform_4(%arg0: i32) -> (i32, i32, i32) {
    %c0_i32 = arith.constant 0 : i32
    %c0_i32_0 = arith.constant 0 : i32
    %c0_i32_1 = arith.constant 0 : i32
    %c0_i32_2 = arith.constant 0 : i32
    return %c0_i32, %c0_i32_0, %c0_i32_1 : i32, i32, i32
  }
  func.func @transform_5(%arg0: i32) -> (i32, i32, i32) {
    %c0_i32 = arith.constant 0 : i32
    %c0_i32_0 = arith.constant 0 : i32
    %c0_i32_1 = arith.constant 0 : i32
    %c0_i32_2 = arith.constant 0 : i32
    return %c0_i32, %c0_i32_0, %c0_i32_1 : i32, i32, i32
  }
  func.func @transform_6(%arg0: i32) -> (i32, i32, i32) {
    %c0_i32 = arith.constant 0 : i32
    %c0_i32_0 = arith.constant 0 : i32
    %c0_i32_1 = arith.constant 0 : i32
    %c0_i32_2 = arith.constant 0 : i32
    return %c0_i32, %c0_i32_0, %c0_i32_1 : i32, i32, i32
  }
  func.func @transform_7(%arg0: i32) -> (i32, i32) {
    %c0_i32 = arith.constant 0 : i32
    %c0_i32_0 = arith.constant 0 : i32
    %c0_i32_1 = arith.constant 0 : i32
    return %c0_i32, %c0_i32_0 : i32, i32
  }
  func.func @transform_8(%arg0: i32) -> (i32, i32, i32, i32) {
    %c0_i32 = arith.constant 0 : i32
    %c0_i32_0 = arith.constant 0 : i32
    %c0_i32_1 = arith.constant 0 : i32
    %c0_i32_2 = arith.constant 0 : i32
    return %c0_i32, %arg0, %c0_i32_0, %c0_i32_1 : i32, i32, i32, i32
  }
}

</mosaic_0001>

<bundles_post_ra>
// kernel: tpu_custom_call.1
= control target key start
LH: loop header
LB: loop body
LE: loop exit
PB: predicated region body
PF: predicated region fallthrough
CT: control target
= control target key end

     0   :  { %13 = vsyncpa [#allocation3], 0  ;;  %s7367_s0 = inlined_call_operand.hbm [shape: f32[8,1,2,32], index: 0, kind: input, shape index: {}]   ;;  %s7368_s1 = inlined_call_operand.vmem [shape: f32[2,32,128], index: 1, kind: input, shape index: {}]   ;;  %s7369_s2 = inlined_call_operand.hbm [shape: f32[2,4,64], index: 2, kind: input, shape index: {}]   ;;  %s7370_s3 = inlined_call_operand.vmem [shape: f32[2,64,96], index: 3, kind: input, shape index: {}]   ;;  %s7371_s4 = inlined_call_operand.vmem [shape: f32[2,16,64], index: 4, kind: input, shape index: {}]   ;;  %s7372_s5 = inlined_call_operand.vmem [shape: f32[2,64,32], index: 5, kind: input, shape index: {}]   ;;  %s7373_s6 = inlined_call_operand.vmem [shape: f32[2,5,64], index: 6, kind: input, shape index: {}]   ;;  %s7374_s7 = inlined_call_operand.vmem [shape: f32[2,32], index: 7, kind: input, shape index: {}]   ;;  %s7375_s8 = inlined_call_operand.hbm [shape: f32[8,1,2,32], index: 8, kind: output, shape index: {}]  }
   0x1   :  { %14 = vsyncpa [#allocation6], 0 }
   0x2   :  { %15 = vsyncpa [#allocation4], 0  ;;  %s4751_s27 = smov [#allocation2]   ;;  %s4679_s9 = scalar_lea.hbm %s7367_s0, 256 }
   0x3   :  { %s21_s28 = sshll.u32 %s4751_s27, 4  ;;  %p4680_p0 = scmp.ne.s32.totalorder %s7367_s0, %s4679_s9  ;;  %s22_s28 = int_to_ptr.vmem [resolvable:$true] %s21_s28 }
   0x4   :  { %p4683_p1 = scmp.lt.u32.totalorder %s4679_s9, %s7367_s0 }
   0x6   :  { %p4685_p2 = pnand %p4683_p1, %p4680_p0 }
   0x8   :  { %4688 = shalt.err (!%p4685_p2)
}
   0x9   :  { %s4689_s14 = scalar_lea.vmem %s22_s28, 256  ;;  %p4694_p4 = scmp.lt.s32.totalorder %s22_s28, %s22_s28 }
   0xa   :  { %p4690_p3 = scmp.ne.s32.totalorder %s22_s28, %s4689_s14  ;;  %p4695_p5 = scmp.lt.s32.totalorder %s4689_s14, %s4689_s14 }
   0xc   :  { %p4696_p6 = por %p4695_p5, %p4694_p4 }
   0xe   :  { %p4697_p7 = pnand %p4696_p6, %p4690_p3 }
  0x10   :  { %4700 = shalt.err (!%p4697_p7)
}
  0x11   :  { %s4752_s15 = smov 32   ;;  %s4753_s16 = smov 2  }
  0x12   :  { %27 = dma.hbm_to_vmem [thread:$0]  %s7367_s0, 256, %s22_s28, [#allocation3], %s4752_s15, %s4752_s15, %s4753_s16  }
  0x13   :  { %s4754_s19 = smov [#allocation5]   ;;  %s4701_s23 = scalar_lea.hbm %s7369_s2, 128 }
  0x14   :  { %s35_s20 = sshll.u32 %s4754_s19, 4  ;;  %p4702_p8 = scmp.ne.s32.totalorder %s7369_s2, %s4701_s23  ;;  %s36_s20 = int_to_ptr.vmem [resolvable:$true] %s35_s20 }
  0x15   :  { %p4705_p9 = scmp.lt.u32.totalorder %s4701_s23, %s7369_s2 }
  0x17   :  { %p4707_p10 = pnand %p4705_p9, %p4702_p8 }
  0x19   :  { %4710 = shalt.err (!%p4707_p10)
}
  0x1a   :  { %s4711_s29 = scalar_lea.vmem %s36_s20, 128  ;;  %p4716_p12 = scmp.lt.s32.totalorder %s36_s20, %s36_s20 }
  0x1b   :  { %p4712_p11 = scmp.ne.s32.totalorder %s36_s20, %s4711_s29  ;;  %p4717_p13 = scmp.lt.s32.totalorder %s4711_s29, %s4711_s29 }
  0x1d   :  { %p4718_p0 = por %p4717_p13, %p4716_p12 }
  0x1f   :  { %p4719_p1 = pnand %p4718_p0, %p4712_p11 }
  0x21   :  { %4722 = shalt.err (!%p4719_p1)
}
  0x22   :  { %s4755_s0 = smov 64   ;;  %s4756_s28 = smov 4  }
  0x23   :  { %41 = dma.hbm_to_vmem [thread:$0]  %s7369_s2, 128, %s36_s20, [#allocation6], %s4755_s0, %s4755_s0, %s4756_s28  }
  0x24   :  { %4745 = dma.done.wait [#allocation3], 256  }
  0x25   :  { %4746 = vsyncadd [#allocation3], 4294967040 }
  0x26   :  { %4747 = dma.done.wait [#allocation6], 128  }
  0x27   :  { %4748 = vsyncadd [#allocation6], 4294967168  ;;  %v80_v0 = vlaneseq  ;;  %v4757_v1 = vmov 1983009808   ;;  %v58_v6 = vld [vmem:[#allocation2] sm:$0x3] }
  0x28   :  { %v78_v2 = vunpack.c.l.s4 %v4757_v1  ;;  %v59_v7 = vld [vmem:[#allocation2 + $0x2] sm:$0x3]  ;;  %v60_v8 = vld [vmem:[#allocation2 + $0x4] sm:$0x3]  ;;  %v61_v9 = vld [vmem:[#allocation2 + $0x6] sm:$0x3] }
  0x29   :  { %v4838_v3 = vshrl.u32 %v80_v0, 7  ;;  %v75_v10 = vcombine.low %v58_v6, %v59_v7  ;;  %v62_v11 = vld [vmem:[#allocation2 + $0x8] sm:$0x3]  ;;  %v63_v12 = vld [vmem:[#allocation2 + $0xa] sm:$0x3]  ;;  %v76_v13 = vcombine.low %v60_v8, %v61_v9  ;;  %vm111_vm0 = vcmask 261120  }
  0x2a   :  { %v79_v4 = vunpack.c.0.s8 %v78_v2  ;;  %v64_v14 = vld [vmem:[#allocation2 + $0xc] sm:$0x3]  ;;  %v65_v15 = vld [vmem:[#allocation2 + $0xe] sm:$0x3]  ;;  %v92_v16 = vcombine.low %v62_v11, %v63_v12  ;;  %v4758_v26 = vmov 269488144  }
  0x2b   :  { %v93_v18 = vcombine.low %v64_v14, %v65_v15  ;;  %v124_v27 = vunpack.c.l.s4 %v4758_v26  ;;  %v4759_v28 = vmov 842150450   ;;  %v4760_v30 = vmov 1414812756   ;;  %v404_v26 = vld [vmem:[%s7368_s1 + $0x18] sm:$0xff] }
  0x2c   :  { %v4841_v5 = vsub.s32 %v79_v4, %v4838_v3  ;;  %v131_v29 = vunpack.c.l.s4 %v4759_v28  ;;  %v138_v31 = vunpack.c.l.s4 %v4760_v30  ;;  %v4761_v32 = vmov 1987475062  }
  0x2d   :  { %v145_v33 = vunpack.c.l.s4 %v4761_v32  ;;  %v125_v34 = vunpack.c.0.s8 %v124_v27  ;;  %vm529_vm1 = vcmask 1045504   ;;  %vm553_vm2 = vcmask 1043456  }
  0x2e   :  { %7475 = vst [vmem:[#allocation11_spill] sm:$0xff] %v4841_v5  ;;  %v83_v17 = vrot.slane %v75_v10, %v4841_v5  ;;  %v90_v19 = vrot.slane %v76_v13, %v4841_v5  ;;  %v100_v20 = vrot.slane %v92_v16, %v4841_v5  ;;  %v107_v21 = vrot.slane %v93_v18, %v4841_v5 }
  0x2f   :  { %v132_v35 = vunpack.c.0.s8 %v131_v29  ;;  %v139_v36 = vunpack.c.0.s8 %v138_v31  ;;  %v146_v37 = vunpack.c.0.s8 %v145_v33  ;;  %v4856_v38 = vsub.s32 %v125_v34, %v4838_v3  ;;  %v4931_v31 = vld [vmem:[%s7373_s6] sm:$0x1f] }
  0x30   :  { %v4847_v22 = vcombine.low %v83_v17, %v90_v19  ;;  %v4849_v23 = vcombine.low %v100_v20, %v107_v21  ;;  %v401_v20 = vld [vmem:[%s7368_s1] sm:$0xff]  ;;  %v402_v21 = vld [vmem:[%s7368_s1 + $0x8] sm:$0xff]  ;;  %v4926_v29 = vsub.s32 0, %v4838_v3  ;;  %v4934_v33 = vsub.s32 1, %v4838_v3 }
  0x31   :  { %v4859_v39 = vsub.s32 %v132_v35, %v4838_v3  ;;  %v4862_v40 = vsub.s32 %v139_v36, %v4838_v3  ;;  %v4865_v41 = vsub.s32 %v146_v37, %v4838_v3  ;;  %vm618_vm3 = vcmask 523264  }
  0x32   :  { %7476 = vst [vmem:[#allocation12_spill] sm:$0xff] %v4847_v22  ;;  %7477 = vst [vmem:[#allocation13_spill] sm:$0xff] %v4849_v23  ;;  %v112_v24 = vsel %vm111_vm0, %v4847_v22, 0.0  ;;  %v115_v25 = vsel %vm111_vm0, %v4849_v23, 0.0  ;;  %v336_v36 = vrot.slane %v4931_v31, %v4926_v29  ;;  %vm2135_vm8 = vcmask 1041409  }
  0x33   :  { %113 = vadd.xlane.f32.xlu0 %v112_v24  ;;  %v403_v24 = vld [vmem:[%s7368_s1 + $0x10] sm:$0xff]  ;;  %7478 = vst [vmem:[#allocation14_spill] sm:$0xff] %v4926_v29  ;;  %7479 = vst [vmem:[#allocation15_spill] sm:$0xff] %v4934_v33  ;;  %vm2138_vm9 = vcmask 1042434   ;;  %vm2141_vm10 = vcmask 1043459   ;;  %vm2144_vm11 = vcmask 1044484  }
  0x34   :  { %v4400_v27 = vpack.c.bf16 %v404_v26, %v403_v24  ;;  %vm2147_vm12 = vcmask 1045509   ;;  %vm2150_vm13 = vcmask 1046534   ;;  %vm2153_vm14 = vcmask 1047559  }
  0x37   :  { %116 = vadd.xlane.f32.xlu0 %v115_v25  ;;  %v4396_v25 = vpack.c.bf16 %v402_v21, %v401_v20 }
  0x39   :  { %4397 = vmatprep.subr.bf16.mxu0 %v4396_v25 }
  0x3a   :  { %4399 = vmatpush3.bf16.msra.mxu0 %v4396_v25 }
  0x3b   :  { %4401 = vmatprep.subr.bf16.mxu0 %v4400_v27 }
  0x3e   :  { %4403 = vmatpush3.bf16.msra.mxu0 %v4400_v27 }
  0xc0   :  { %v114_v42 = vpop.xlane.xlu0 %113 }
  0xc1   :  { %v119_v43 = vmul.f32 0.03125, %v114_v42  ;;  %v370_v42 = vrot.slane %v4931_v31, %v4934_v33 }
  0xc3   :  { %v129_v44 = vrot.slane %v119_v43, %v4856_v38  ;;  %v136_v45 = vrot.slane %v119_v43, %v4859_v39  ;;  %v143_v46 = vrot.slane %v119_v43, %v4862_v40  ;;  %v150_v47 = vrot.slane %v119_v43, %v4865_v41 }
  0xc4   :  { %v117_v48 = vpop.xlane.xlu0 %116  ;;  %v338_v43 = vcombine.high %v336_v36, %v336_v36 }
  0xc5   :  { %v120_v49 = vmul.f32 0.03125, %v117_v48  ;;  %v4871_v50 = vsub.f32 %v58_v6, %v129_v44  ;;  %v4873_v51 = vsub.f32 %v59_v7, %v136_v45  ;;  %v4875_v52 = vsub.f32 %v60_v8, %v143_v46 }
  0xc6   :  { %v4877_v53 = vsub.f32 %v61_v9, %v150_v47  ;;  %v345_v44 = vrot.slane %v336_v36, %v4841_v5  ;;  %v372_v45 = vcombine.high %v370_v42, %v370_v42  ;;  %v352_v46 = vrot.slane %v338_v43, %v4841_v5  ;;  %v610_v36 = vld [vmem:[%s7370_s3] sm:$0xff]  ;;  %v612_v43 = vld [vmem:[%s7370_s3 + $0x10] sm:$0xff] }
  0xc7   :  { %v157_v54 = vrot.slane %v120_v49, %v4856_v38  ;;  %v164_v55 = vrot.slane %v120_v49, %v4859_v39  ;;  %v171_v56 = vrot.slane %v120_v49, %v4862_v40  ;;  %v178_v57 = vrot.slane %v120_v49, %v4865_v41 }
  0xc8   :  { %v195_v58 = vmul.f32 %v4871_v50, %v4871_v50  ;;  %v196_v59 = vmul.f32 %v4873_v51, %v4873_v51  ;;  %v197_v60 = vmul.f32 %v4875_v52, %v4875_v52  ;;  %v198_v61 = vmul.f32 %v4877_v53, %v4877_v53 }
  0xc9   :  { %v4891_v62 = vsub.f32 %v62_v11, %v157_v54  ;;  %v4893_v63 = vsub.f32 %v63_v12, %v164_v55  ;;  %v4895_v0 = vsub.f32 %v64_v14, %v171_v56  ;;  %v4897_v1 = vsub.f32 %v65_v15, %v178_v57 }
  0xca   :  { %v211_v2 = vcombine.low %v195_v58, %v196_v59  ;;  %v212_v4 = vcombine.low %v197_v60, %v198_v61  ;;  %v379_v47 = vrot.slane %v370_v42, %v4841_v5  ;;  %v353_v49 = vcombine.high %v345_v44, %v345_v44 }
  0xcb   :  { %v199_v6 = vmul.f32 %v4891_v62, %v4891_v62  ;;  %v200_v7 = vmul.f32 %v4893_v63, %v4893_v63  ;;  %v201_v8 = vmul.f32 %v4895_v0, %v4895_v0  ;;  %v202_v9 = vmul.f32 %v4897_v1, %v4897_v1 }
  0xcc   :  { %v219_v10 = vrot.slane %v211_v2, %v4841_v5  ;;  %v226_v11 = vrot.slane %v212_v4, %v4841_v5  ;;  %v386_v54 = vrot.slane %v372_v45, %v4841_v5  ;;  %v354_v59 = vcombine.high %v352_v46, %v352_v46 }
  0xcd   :  { %v228_v12 = vcombine.low %v199_v6, %v200_v7  ;;  %v229_v13 = vcombine.low %v201_v8, %v202_v9  ;;  %v387_v60 = vcombine.high %v379_v47, %v379_v47 }
  0xce   :  { %v227_v14 = vcombine.low %v219_v10, %v226_v11  ;;  %v388_v8 = vcombine.high %v386_v54, %v386_v54 }
  0xcf   :  { %v236_v15 = vrot.slane %v228_v12, %v4841_v5  ;;  %v243_v16 = vrot.slane %v229_v13, %v4841_v5 }
  0xd0   :  { %v247_v17 = vsel %vm111_vm0, %v227_v14, 0.0 }
  0xd1   :  { %248 = vadd.xlane.f32.xlu1 %v247_v17  ;;  %v244_v18 = vcombine.low %v236_v15, %v243_v16 }
  0xd3   :  { %v250_v19 = vsel %vm111_vm0, %v244_v18, 0.0 }
  0xd5   :  { %251 = vadd.xlane.f32.xlu1 %v250_v19 }
 0x15e   :  { %v249_v28 = vpop.xlane.xlu1 %248 }
 0x15f   :  { %v253_v30 = vmul.f32 0.03125, %v249_v28 }
 0x161   :  { %v255_v32 = vadd.f32 1e-05, %v253_v30 }
 0x162   :  { %v252_v34 = vpop.xlane.xlu1 %251 }
 0x163   :  { %4489 = vrsqrt.f32 %v255_v32  ;;  %v254_v35 = vmul.f32 0.03125, %v252_v34 }
 0x165   :  { %v256_v37 = vadd.f32 1e-05, %v254_v35 }
 0x167   :  { %4491 = vrsqrt.f32 %v256_v37  ;;  %v611_v37 = vld [vmem:[%s7370_s3 + $0x8] sm:$0xff] }
 0x168   :  { %v4404_v42 = vpack.c.bf16 %v611_v37, %v610_v36 }
 0x16a   :  { %4405 = vmatprep.subr.bf16.mxu1 %v4404_v42 }
 0x16b   :  { %4407 = vmatpush3.bf16.msra.mxu1 %v4404_v42 }
 0x16d   :  { %v4490_v48 = vpop.eup %4489 }
 0x16e   :  { %v267_v55 = vrot.slane %v4490_v48, %v4856_v38  ;;  %v274_v56 = vrot.slane %v4490_v48, %v4859_v39  ;;  %v281_v57 = vrot.slane %v4490_v48, %v4862_v40  ;;  %v288_v58 = vrot.slane %v4490_v48, %v4865_v41 }
 0x170   :  { %v325_v61 = vmul.f32 %v267_v55, %v4871_v50  ;;  %v326_v2 = vmul.f32 %v274_v56, %v4873_v51  ;;  %v327_v4 = vmul.f32 %v281_v57, %v4875_v52  ;;  %v328_v6 = vmul.f32 %v288_v58, %v4877_v53  ;;  %v526_v57 = vld [vmem:[#allocation5] sm:$0xf] }
 0x171   :  { %v4492_v7 = vpop.eup %4491  ;;  %v4991_v56 = vsub.s32 2, %v4838_v3  ;;  %v546_v58 = vrot.slane %v526_v57, %v4934_v33 }
 0x172   :  { %v302_v9 = vrot.slane %v4492_v7, %v4859_v39  ;;  %v316_v10 = vrot.slane %v4492_v7, %v4865_v41  ;;  %v359_v11 = vmul.f32 %v345_v44, %v325_v61  ;;  %v360_v12 = vmul.f32 %v353_v49, %v326_v2 }
 0x173   :  { %v361_v13 = vmul.f32 %v352_v46, %v327_v4  ;;  %v362_v14 = vmul.f32 %v354_v59, %v328_v6  ;;  %v295_v15 = vrot.slane %v4492_v7, %v4856_v38  ;;  %v309_v50 = vrot.slane %v4492_v7, %v4862_v40  ;;  %7480 = vst [vmem:[#allocation16_spill] sm:$0xff] %v4991_v56 }
 0x174   :  { %v330_v51 = vmul.f32 %v302_v9, %v4893_v63  ;;  %v332_v52 = vmul.f32 %v316_v10, %v4897_v1  ;;  %v393_v16 = vadd.f32 %v379_v47, %v359_v11  ;;  %v394_v53 = vadd.f32 %v387_v60, %v360_v12 }
 0x175   :  { %v395_v17 = vadd.f32 %v386_v54, %v361_v13  ;;  %v396_v18 = vadd.f32 %v388_v8, %v362_v14  ;;  %v329_v39 = vmul.f32 %v295_v15, %v4891_v62  ;;  %v331_v41 = vmul.f32 %v309_v50, %v4895_v0 }
 0x176   :  { %v364_v19 = vmul.f32 %v353_v49, %v330_v51  ;;  %v366_v20 = vmul.f32 %v354_v59, %v332_v52  ;;  %v413_v21 = vcombine.low %v393_v16, %v394_v53  ;;  %v616_v49 = vld [vmem:[%s7370_s3 + $0x30] sm:$0xff]  ;;  %v540_v9 = vrot.slane %v526_v57, %v4926_v29 }
 0x177   :  { %v414_v24 = vcombine.low %v395_v17, %v396_v18  ;;  %v363_v25 = vmul.f32 %v345_v44, %v329_v39  ;;  %v365_v38 = vmul.f32 %v352_v46, %v331_v41  ;;  %v613_v44 = vld [vmem:[%s7370_s3 + $0x18] sm:$0xff]  ;;  %v614_v46 = vld [vmem:[%s7370_s3 + $0x20] sm:$0xff] }
 0x178   :  { %v398_v26 = vadd.f32 %v387_v60, %v364_v19  ;;  %v400_v40 = vadd.f32 %v388_v8, %v366_v20  ;;  %v421_v63 = vrot.slane %v413_v21, %v4841_v5  ;;  %v4408_v45 = vpack.c.bf16 %v613_v44, %v612_v43 }
 0x179   :  { %v428_v1 = vrot.slane %v414_v24, %v4841_v5  ;;  %v397_v27 = vadd.f32 %v379_v47, %v363_v25  ;;  %v399_v28 = vadd.f32 %v386_v54, %v365_v38  ;;  %v615_v47 = vld [vmem:[%s7370_s3 + $0x28] sm:$0xff]  ;;  %v617_v54 = vld [vmem:[%s7370_s3 + $0x38] sm:$0xff]  ;;  %v566_v60 = vrot.slane %v526_v57, %v4991_v56 }
 0x17a   :  { %4409 = vmatprep.subr.bf16.mxu1 %v4408_v45  ;;  %v4412_v48 = vpack.c.bf16 %v615_v47, %v614_v46  ;;  %v4416_v55 = vpack.c.bf16 %v617_v54, %v616_v49  ;;  %v4996_v8 = vsub.s32 3, %v4838_v3 }
 0x17b   :  { %v429_v30 = vcombine.low %v421_v63, %v428_v1  ;;  %v430_v32 = vcombine.low %v397_v27, %v398_v26  ;;  %v431_v34 = vcombine.low %v399_v28, %v400_v40  ;;  %4411 = vmatpush3.bf16.msra.mxu1 %v4408_v45  ;;  %v593_v63 = vrot.slane %v4931_v31, %v4991_v56 }
 0x17c   :  { %4413 = vmatprep.subr.bf16.mxu1 %v4412_v48  ;;  %7481 = vst [vmem:[#allocation17_spill] sm:$0xff] %v4996_v8  ;;  %v585_v52 = vrot.slane %v526_v57, %v4996_v8 }
 0x17d   :  { %4306 = vmatprep.mubr.msk.f32.mxu0 %vm111_vm0, %v429_v30  ;;  %v438_v62 = vrot.slane %v430_v32, %v4841_v5  ;;  %v445_v0 = vrot.slane %v431_v34, %v4841_v5 }
 0x17f   :  { %v446_v35 = vcombine.low %v438_v62, %v445_v0  ;;  %4415 = vmatpush3.bf16.msra.mxu1 %v4412_v48 }
 0x180   :  { %4417 = vmatprep.subr.bf16.mxu1 %v4416_v55 }
 0x181   :  { %4307 = vmatmul.mubr.msk.f32.vlgmr.msra.gmra.mrb[0].mxu0 %vm111_vm0, %v446_v35 }
 0x183   :  { %4419 = vmatpush3.bf16.msra.mxu1 %v4416_v55 }
 0x254   :  { %v4308_v59 = vpop.f32.mrb[0].mxu0 }
 0x255   :  { %v531_v61 = vrot.slane %v4308_v59, 2  ;;  %v4208_v2 = vmul.f32 -1.442695, %v4308_v59  ;;  %v517_v4 = vpop.f32.mrb[1].mxu0  ;;  %v542_v16 = vmul.f32 %v4308_v59, %v540_v9 }
 0x256   :  { %v530_v6 = vrot.slane %v517_v4, 2  ;;  %v4207_v7 = vmul.f32 -1.442695, %v517_v4  ;;  %v541_v41 = vmul.f32 %v540_v9, %v517_v4 }
 0x257   :  { %v549_v10 = vmul.f32 %v546_v58, %v531_v61  ;;  %4493 = vpow2.f32 %v4208_v2  ;;  %v569_v11 = vmul.f32 %v566_v60, %v531_v61 }
 0x258   :  { %v532_v12 = vsel %vm529_vm1, %v530_v6, %v531_v61  ;;  %v536_v13 = vsel %vm529_vm1, 0.0, %v530_v6  ;;  %4495 = vpow2.f32 %v4207_v7 }
 0x259   :  { %v547_v14 = vmul.f32 %v546_v58, %v536_v13  ;;  %v548_v15 = vmul.f32 %v546_v58, %v532_v12  ;;  %v567_v50 = vmul.f32 %v566_v60, %v536_v13  ;;  %v568_v51 = vmul.f32 %v566_v60, %v532_v12 }
 0x25a   :  { %v557_v53 = vrot.slane %v549_v10, 4  ;;  %v576_v39 = vrot.slane %v569_v11, 2  ;;  %v586_v27 = vmul.f32 %v585_v52, %v536_v13  ;;  %v587_v30 = vmul.f32 %v585_v52, %v532_v12 }
 0x25b   :  { %v554_v17 = vrot.slane %v547_v14, 4  ;;  %v555_v18 = vrot.slane %v548_v15, 4  ;;  %v573_v19 = vrot.slane %v567_v50, 2  ;;  %v574_v20 = vrot.slane %v568_v51, 2 }
 0x25c   :  { %v703_v10 = vrot.slane %v4931_v31, %v4996_v8 }
 0x25d   :  { %v556_v21 = vsel %vm553_vm2, %v554_v17, %v555_v18  ;;  %v558_v24 = vsel %vm553_vm2, %v555_v18, %v557_v53  ;;  %v575_v38 = vsel %vm529_vm1, %v573_v19, %v574_v20  ;;  %v577_v40 = vsel %vm529_vm1, %v574_v20, %v576_v39 }
 0x25e   :  { %v561_v25 = vadd.f32 %v556_v21, %v541_v41  ;;  %v562_v26 = vadd.f32 %v558_v24, %v542_v16  ;;  %v5052_v41 = vsub.s32 4, %v4838_v3  ;;  %v5058_v20 = vsub.s32 5, %v4838_v3 }
 0x260   :  { %v580_v1 = vadd.f32 %v575_v38, %v561_v25  ;;  %v581_v28 = vadd.f32 %v577_v40, %v562_v26  ;;  %7482 = vst [vmem:[#allocation18_spill] sm:$0xff] %v5052_v41  ;;  %7483 = vst [vmem:[#allocation19_spill] sm:$0xff] %v5058_v20  ;;  %v5066_v40 = vsub.s32 6, %v4838_v3 }
 0x261   :  { %v4494_v32 = vpop.eup %4493 }
 0x262   :  { %v4496_v34 = vpop.eup %4495  ;;  %v2023_v62 = vadd.f32 1.0, %v4494_v32  ;;  %v588_v0 = vadd.f32 %v586_v27, %v580_v1  ;;  %v589_v35 = vadd.f32 %v587_v30, %v581_v28  ;;  %7484 = vst [vmem:[#allocation20_spill] sm:$0xff] %v5066_v40  ;;  %v5074_v27 = vsub.s32 7, %v4838_v3 }
 0x263   :  { %v2022_v36 = vadd.f32 1.0, %v4496_v34  ;;  %v4762_v32 = vmov 1966171168  }
 0x264   :  { %4497 = vrcp.f32 %v2023_v62  ;;  %v594_v37 = vadd.f32 %v593_v63, %v588_v0  ;;  %v595_v42 = vadd.f32 %v593_v63, %v589_v35  ;;  %7485 = vst [vmem:[#allocation21_spill] sm:$0xff] %v5074_v27  ;;  %v750_v34 = vunpack.c.l.s4 %v4762_v32 }
 0x265   :  { %4499 = vrcp.f32 %v2022_v36 }
 0x266   :  { %v4203_v43 = vmul.f32 -1.442695, %v594_v37  ;;  %v4204_v44 = vmul.f32 -1.442695, %v595_v42 }
 0x268   :  { %4501 = vpow2.f32 %v4203_v43  ;;  %v751_v43 = vunpack.c.0.s8 %v750_v34 }
 0x269   :  { %4503 = vpow2.f32 %v4204_v44 }
 0x26e   :  { %v4498_v45 = vpop.eup %4497 }
 0x26f   :  { %v4500_v46 = vpop.eup %4499  ;;  %v5008_v47 = vmul.f32 %v4498_v45, %v4308_v59 }
 0x270   :  { %v5010_v48 = vmul.f32 %v4500_v46, %v517_v4 }
 0x271   :  { %v2039_v49 = vrot.slane %v5008_v47, 1  ;;  %v2040_v58 = vrot.slane %v5008_v47, 2 }
 0x272   :  { %v4502_v54 = vpop.eup %4501  ;;  %2046 = vrot.lane.b32.xlu1 %v5010_v48, %s4755_s0  ;;  %v2032_v61 = vrot.slane %v5010_v48, 1  ;;  %v2033_v59 = vrot.slane %v5010_v48, 2  ;;  %v2034_v2 = vrot.slane %v5010_v48, 3 }
 0x273   :  { %v4504_v55 = vpop.eup %4503  ;;  %2064 = vrot.lane.b32.xlu0 %v2039_v49, %s4755_s0  ;;  %v602_v57 = vadd.f32 1.0, %v4502_v54 }
 0x274   :  { %v603_v60 = vadd.f32 1.0, %v4504_v55 }
 0x275   :  { %4505 = vrcp.f32 %v602_v57  ;;  %v5085_v57 = vsub.s32 %v751_v43, %v4838_v3 }
 0x276   :  { %2066 = vrot.lane.b32.xlu1 %v2040_v58, %s4755_s0  ;;  %4507 = vrcp.f32 %v603_v60 }
 0x277   :  { %2048 = vrot.lane.b32.xlu0 %v2032_v61, %s4755_s0  ;;  %7486 = vst [vmem:[#allocation22_spill] sm:$0xff] %v5085_v57 }
 0x27a   :  { %2050 = vrot.lane.b32.xlu1 %v2033_v59, %s4755_s0 }
 0x27b   :  { %2052 = vrot.lane.b32.xlu0 %v2034_v2, %s4755_s0 }
 0x27f   :  { %v4506_v4 = vpop.eup %4505 }
 0x280   :  { %v4508_v6 = vpop.eup %4507  ;;  %v5024_v7 = vmul.f32 %v4506_v4, %v594_v37 }
 0x281   :  { %v5026_v9 = vmul.f32 %v4508_v6, %v595_v42 }
 0x282   :  { %4325 = vmatprep.mubr.msk.f32.mxu1 %vm618_vm3, %v5024_v7 }
 0x283   :  { %4326 = vmatmul.mubr.msk.f32.vlgmr.msra.gmra.mrb[0].mxu1 %vm618_vm3, %v5026_v9 }
 0x356   :  { %v4327_v11 = vpop.f32.mrb[0].mxu1 }
 0x357   :  { %v5034_v12 = vadd.f32 %v4327_v11, %v703_v10  ;;  %v5036_v13 = vpop.f32.mrb[1].mxu1  ;;  %v5039_v14 = vrot.slane %v4327_v11, %v4926_v29  ;;  %v1057_v52 = vrot.slane %v4327_v11, %v4934_v33  ;;  %v1069_v18 = vrot.slane %v4327_v11, %v4991_v56 }
 0x358   :  { %v5042_v15 = vadd.f32 %v703_v10, %v5036_v13  ;;  %v1081_v39 = vrot.slane %v4327_v11, %v4996_v8  ;;  %v5055_v19 = vrot.slane %v4327_v11, %v5052_v41  ;;  %v5063_v26 = vrot.slane %v4327_v11, %v5058_v20 }
 0x359   :  { %v713_v50 = vand.u32 2147483647, %v5034_v12  ;;  %1052 = vbcast.lane.b32.xlu1 %v5039_v14, 328  ;;  %1048 = vbcast.lane.b32.xlu0 %v5039_v14, 320  ;;  %v5071_v1 = vrot.slane %v4327_v11, %v5066_v40  ;;  %v5079_v30 = vrot.slane %v4327_v11, %v5074_v27  ;;  %v707_v44 = vmax.f32 %v5034_v12, 0.0 }
 0x35a   :  { %v712_v51 = vand.u32 2147483647, %v5042_v15  ;;  %vm709_vm5 = vcmp.ne.f32.partialorder %v5034_v12, %v5034_v12  ;;  %v706_v2 = vmax.f32 %v5042_v15, 0.0  ;;  %vm708_vm7 = vcmp.ne.f32.partialorder %v5042_v15, %v5042_v15 }
 0x35b   :  { %v715_v31 = vsub.f32 0.0, %v713_v50 }
 0x35c   :  { %v714_v16 = vsub.f32 0.0, %v712_v51 }
 0x35d   :  { %v718_v53 = vmul.f32 1.442695, %v715_v31  ;;  %1064 = vbcast.lane.b32.xlu1 %v1057_v52, 328  ;;  %1060 = vbcast.lane.b32.xlu0 %v1057_v52, 320 }
 0x35e   :  { %v716_v17 = vmul.f32 1.442695, %v714_v16 }
 0x35f   :  { %4509 = vpow2.f32 %v718_v53 }
 0x360   :  { %4511 = vpow2.f32 %v716_v17 }
 0x361   :  { %1076 = vbcast.lane.b32.xlu1 %v1069_v18, 328  ;;  %1072 = vbcast.lane.b32.xlu0 %v1069_v18, 320 }
 0x365   :  { %1088 = vbcast.lane.b32.xlu1 %v1081_v39, 328  ;;  %1084 = vbcast.lane.b32.xlu0 %v1081_v39, 320 }
 0x369   :  { %v4510_v21 = vpop.eup %4509  ;;  %1100 = vbcast.lane.b32.xlu1 %v5055_v19, 328  ;;  %1096 = vbcast.lane.b32.xlu0 %v5055_v19, 320 }
 0x36a   :  { %v4512_v24 = vpop.eup %4511  ;;  %v729_v25 = vadd.f32 1.0, %v4510_v21  ;;  %v732_v63 = vmul.f32 -0.5, %v4510_v21  ;;  %v735_v62 = vand.u32 2147483647, %v4510_v21 }
 0x36b   :  { %v720_v38 = vadd.f32 1.0, %v4512_v24  ;;  %v723_v0 = vmul.f32 -0.5, %v4512_v24  ;;  %v726_v54 = vand.u32 2147483647, %v4512_v24 }
 0x36c   :  { %4513 = vlog2.f32 %v729_v25  ;;  %v733_v28 = vadd.f32 1.0, %v732_v63  ;;  %vm736_vm4 = vcmp.lt.f32.partialorder %v735_v62, 0.0004427343  ;;  %v5145_v25 = vld [vmem:[%s7371_s4] sm:$0xff] }
 0x36d   :  { %1112 = vbcast.lane.b32.xlu1 %v5063_v26, 328  ;;  %1108 = vbcast.lane.b32.xlu0 %v5063_v26, 320  ;;  %4515 = vlog2.f32 %v720_v38  ;;  %v724_v46 = vadd.f32 1.0, %v723_v0  ;;  %vm727_vm6 = vcmp.lt.f32.partialorder %v726_v54, 0.0004427343 }
 0x36e   :  { %v734_v37 = vmul.f32 %v4510_v21, %v733_v28 }
 0x36f   :  { %v725_v60 = vmul.f32 %v4512_v24, %v724_v46 }
 0x371   :  { %1124 = vbcast.lane.b32.xlu1 %v5071_v1, 328  ;;  %1120 = vbcast.lane.b32.xlu0 %v5071_v1, 320 }
 0x375   :  { %1136 = vbcast.lane.b32.xlu1 %v5079_v30, 328  ;;  %1132 = vbcast.lane.b32.xlu0 %v5079_v30, 320 }
 0x376   :  { %v4514_v35 = vpop.eup %4513 }
 0x377   :  { %v731_v36 = vmul.f32 0.6931472, %v4514_v35  ;;  %v4516_v42 = vpop.eup %4515 }
 0x378   :  { %v722_v55 = vmul.f32 0.6931472, %v4516_v42 }
 0x379   :  { %v737_v45 = vsel %vm736_vm4, %v734_v37, %v731_v36  ;;  %1216 = vbcast.lane.b32.xlu1 %v1057_v52, 344  ;;  %1212 = vbcast.lane.b32.xlu0 %v1057_v52, 336 }
 0x37a   :  { %v739_v49 = vadd.f32 %v737_v45, %v707_v44  ;;  %v728_v61 = vsel %vm727_vm6, %v725_v60, %v722_v55 }
 0x37b   :  { %v738_v3 = vadd.f32 %v728_v61, %v706_v2  ;;  %v5180_v2 = vrot.slane %v5036_v13, %v5052_v41 }
 0x37c   :  { %v5090_v58 = vsel %vm709_vm5, %v5034_v12, %v739_v49  ;;  %v5170_v49 = vrot.slane %v5036_v13, %v4996_v8 }
 0x37d   :  { %1224 = vbcast.lane.b32.xlu1 %v1069_v18, 344  ;;  %1220 = vbcast.lane.b32.xlu0 %v1069_v18, 336  ;;  %v804_v59 = vrot.slane %v5090_v58, %v5085_v57  ;;  %v797_v4 = vcombine.high %v5090_v58, %v5090_v58  ;;  %v5105_v11 = vsel %vm708_vm7, %v5042_v15, %v738_v3 }
 0x37e   :  { %v748_v50 = vcombine.high %v5105_v11, %v5105_v11 }
 0x37f   :  { %v812_v6 = vcombine.high %v804_v59, %v804_v59  ;;  %v5100_v10 = vrot.slane %v804_v59, %v5085_v57  ;;  %v811_v12 = vrot.slane %v797_v4, %v5085_v57 }
 0x380   :  { %v762_v16 = vrot.slane %v748_v50, %v5085_v57 }
 0x381   :  { %1208 = vbcast.lane.b32.xlu1 %v5039_v14, 344  ;;  %1204 = vbcast.lane.b32.xlu0 %v5039_v14, 336  ;;  %v5109_v14 = vrot.slane %v812_v6, %v5085_v57  ;;  %v842_v51 = vcombine.high %v5100_v10, %v5100_v10  ;;  %v5118_v31 = vrot.slane %v811_v12, %v5085_v57 }
 0x382   :  { %v813_v15 = vcombine.high %v811_v12, %v811_v12  ;;  %v764_v38 = vcombine.high %v762_v16, %v762_v16  ;;  %v778_v63 = vrot.slane %v762_v16, %v5085_v57  ;;  %v5185_v6 = vrot.slane %v5036_v13, %v4926_v29 }
 0x383   :  { %v844_v52 = vcombine.high %v5109_v14, %v5109_v14  ;;  %v1309_v53 = vrot.slane %v842_v51, %v4926_v29  ;;  %v1317_v17 = vrot.slane %v5118_v31, %v4926_v29 }
 0x384   :  { %v5129_v18 = vrot.slane %v813_v15, %v5085_v57  ;;  %v5153_v34 = vrot.slane %v764_v38, %v5085_v57  ;;  %v794_v62 = vcombine.high %v778_v63, %v778_v63  ;;  %v1285_v59 = vrot.slane %v778_v63, %v4926_v29 }
 0x385   :  { %1232 = vbcast.lane.b32.xlu1 %v1081_v39, 344  ;;  %1228 = vbcast.lane.b32.xlu0 %v1081_v39, 336  ;;  %v755_v39 = vrot.slane %v5105_v11, %v5085_v57  ;;  %v1313_v21 = vrot.slane %v844_v52, %v4926_v29  ;;  %v1370_v43 = vmul.f32 %v1317_v17, %v5145_v25 }
 0x386   :  { %v1321_v32 = vrot.slane %v5129_v18, %v4926_v29  ;;  %v1289_v37 = vrot.slane %v5153_v34, %v4926_v29  ;;  %v1293_v44 = vrot.slane %v794_v62, %v4926_v29 }
 0x387   :  { %v5157_v0 = vrot.slane %v755_v39, %v5085_v57  ;;  %v1368_v36 = vmul.f32 %v1313_v21, %v5145_v25  ;;  %v763_v46 = vcombine.high %v755_v39, %v755_v39  ;;  %v1426_v12 = vmul.f32 1.442695, %v1370_v43 }
 0x388   :  { %v1372_v60 = vmul.f32 %v1321_v32, %v5145_v25  ;;  %v1356_v4 = vmul.f32 %v1289_v37, %v5145_v25  ;;  %v1358_v50 = vmul.f32 %v1293_v44, %v5145_v25  ;;  %v796_v43 = vcombine.high %v5153_v34, %v5153_v34 }
 0x389   :  { %1240 = vbcast.lane.b32.xlu1 %v5055_v19, 344  ;;  %1236 = vbcast.lane.b32.xlu0 %v5055_v19, 336  ;;  %v5136_v19 = vld [vmem:[%s7371_s4 + $0x8] sm:$0xff]  ;;  %v793_v45 = vcombine.high %v5157_v0, %v5157_v0  ;;  %v1422_v3 = vmul.f32 1.442695, %v1368_v36  ;;  %v5190_v52 = vrot.slane %v763_v46, %v5085_v57  ;;  %v5219_v46 = vrot.slane %v5036_v13, %v4991_v56 }
 0x38a   :  { %v1367_v24 = vmul.f32 %v1309_v53, %v5136_v19  ;;  %v1371_v28 = vmul.f32 %v1317_v17, %v5136_v19  ;;  %v1373_v54 = vmul.f32 %v1321_v32, %v5136_v19  ;;  %v1430_v16 = vmul.f32 1.442695, %v1372_v60 }
 0x38b   :  { %v1277_v61 = vrot.slane %v793_v45, %v4926_v29  ;;  %v1301_v17 = vrot.slane %v5100_v10, %v4926_v29  ;;  %v1398_v39 = vmul.f32 1.442695, %v1356_v4  ;;  %v1355_v32 = vmul.f32 %v1285_v59, %v5136_v19 }
 0x38c   :  { %v1420_v35 = vmul.f32 1.442695, %v1367_v24  ;;  %v1432_v51 = vmul.f32 1.442695, %v1373_v54  ;;  %v1402_v24 = vmul.f32 1.442695, %v1358_v50  ;;  %v1359_v36 = vmul.f32 %v1293_v44, %v5136_v19 }
 0x38d   :  { %1248 = vbcast.lane.b32.xlu1 %v5063_v26, 344  ;;  %1244 = vbcast.lane.b32.xlu0 %v5063_v26, 336  ;;  %v1366_v26 = vmul.f32 %v1309_v53, %v5145_v25  ;;  %v1350_v15 = vmul.f32 %v1277_v61, %v5145_v25  ;;  %v1354_v53 = vmul.f32 %v1285_v59, %v5145_v25  ;;  %v1396_v44 = vmul.f32 1.442695, %v1355_v32 }
 0x38e   :  { %4517 = vpow2.f32 %v1420_v35  ;;  %v1351_v38 = vmul.f32 %v1277_v61, %v5136_v19  ;;  %v1362_v35 = vmul.f32 %v1301_v17, %v5145_v25  ;;  %v1357_v60 = vmul.f32 %v1289_v37, %v5136_v19 }
 0x38f   :  { %v1418_v42 = vmul.f32 1.442695, %v1366_v26  ;;  %v5202_v26 = vrot.slane %v5036_v13, %v4934_v33  ;;  %v1386_v63 = vmul.f32 1.442695, %v1350_v15  ;;  %v1404_v34 = vmul.f32 1.442695, %v1359_v36 }
 0x390   :  { %v1388_v62 = vmul.f32 1.442695, %v1351_v38  ;;  %v1410_v54 = vmul.f32 1.442695, %v1362_v35  ;;  %v1297_v59 = vrot.slane %v796_v43, %v4926_v29  ;;  %v5237_v50 = vrot.slane %v5036_v13, %v5058_v20 }
 0x391   :  { %1256 = vbcast.lane.b32.xlu1 %v5071_v1, 344  ;;  %1252 = vbcast.lane.b32.xlu0 %v5071_v1, 336  ;;  %v1369_v1 = vmul.f32 %v1313_v21, %v5136_v19  ;;  %4519 = vpow2.f32 %v1418_v42  ;;  %v795_v21 = vcombine.high %v5190_v52, %v5190_v52  ;;  %v1305_v42 = vrot.slane %v5109_v14, %v4926_v29 }
 0x393   :  { %v1424_v55 = vmul.f32 1.442695, %v1369_v1  ;;  %v1281_v10 = vrot.slane %v795_v21, %v4926_v29  ;;  %v1364_v14 = vmul.f32 %v1305_v42, %v5145_v25 }
 0x395   :  { %1264 = vbcast.lane.b32.xlu1 %v5079_v30, 344  ;;  %1260 = vbcast.lane.b32.xlu0 %v5079_v30, 336  ;;  %v1428_v30 = vmul.f32 1.442695, %v1371_v28  ;;  %v1394_v28 = vmul.f32 1.442695, %v1354_v53  ;;  %v1352_v1 = vmul.f32 %v1281_v10, %v5145_v25  ;;  %v1353_v37 = vmul.f32 %v1281_v10, %v5136_v19 }
 0x396   :  { %v1414_v4 = vmul.f32 1.442695, %v1364_v14  ;;  %v1363_v53 = vmul.f32 %v1301_v17, %v5136_v19  ;;  %v1365_v17 = vmul.f32 %v1305_v42, %v5136_v19  ;;  %v5269_v42 = vrot.slane %v5036_v13, %v5066_v40 }
 0x397   :  { %4521 = vpow2.f32 %v1428_v30  ;;  %v1390_v30 = vmul.f32 1.442695, %v1352_v1  ;;  %v1392_v38 = vmul.f32 1.442695, %v1353_v37  ;;  %v1361_v1 = vmul.f32 %v1297_v59, %v5136_v19 }
 0x398   :  { %4523 = vpow2.f32 %v1424_v55  ;;  %v5215_v45 = vpop.eup %4517  ;;  %v1416_v35 = vmul.f32 1.442695, %v1365_v17 }
 0x399   :  { %992 = vbcast.lane.b32.xlu1 %v5170_v49, 328  ;;  %988 = vbcast.lane.b32.xlu0 %v5170_v49, 320  ;;  %4525 = vpow2.f32 %v1422_v3  ;;  %v1408_v43 = vmul.f32 1.442695, %v1361_v1 }
 0x39a   :  { %4527 = vpow2.f32 %v1426_v12 }
 0x39b   :  { %4529 = vpow2.f32 %v1432_v51  ;;  %v5221_v55 = vpop.eup %4519  ;;  %v1360_v51 = vmul.f32 %v1297_v59, %v5145_v25 }
 0x39c   :  { %4531 = vpow2.f32 %v1430_v16  ;;  %v1400_v16 = vmul.f32 1.442695, %v1357_v60 }
 0x39d   :  { %1000 = vbcast.lane.b32.xlu0 %v5180_v2, 320  ;;  %952 = vbcast.lane.b32.xlu1 %v5185_v6, 320  ;;  %4533 = vpow2.f32 %v1398_v39  ;;  %v1406_v21 = vmul.f32 1.442695, %v1360_v51 }
 0x39e   :  { %4535 = vpow2.f32 %v1402_v24 }
 0x39f   :  { %4537 = vpow2.f32 %v1386_v63  ;;  %v1412_v63 = vmul.f32 1.442695, %v1363_v53 }
 0x3a0   :  { %4539 = vpow2.f32 %v1394_v28  ;;  %v5253_v28 = vrot.slane %v5036_v13, %v5074_v27 }
 0x3a1   :  { %964 = vbcast.lane.b32.xlu0 %v5202_v26, 320  ;;  %956 = vbcast.lane.b32.xlu1 %v5185_v6, 328  ;;  %v5225_v61 = vpop.eup %4521  ;;  %4541 = vpow2.f32 %v1388_v62 }
 0x3a2   :  { %v5230_v3 = vpop.eup %4523  ;;  %4543 = vpow2.f32 %v1390_v30  ;;  %v5353_v8 = vmul.f32 %v5225_v61, %v5215_v45 }
 0x3a3   :  { %v5233_v12 = vpop.eup %4525  ;;  %4545 = vpow2.f32 %v1410_v54 }
 0x3a4   :  { %v5240_v15 = vpop.eup %4527  ;;  %4547 = vpow2.f32 %v1396_v44  ;;  %7509 = vst [vmem:[#allocation45_spill] sm:$0xff] %v5353_v8 }
 0x3a5   :  { %976 = vbcast.lane.b32.xlu0 %v5219_v46, 320  ;;  %1004 = vbcast.lane.b32.xlu1 %v5180_v2, 328  ;;  %7487 = vst [vmem:[#allocation23_spill] sm:$0xff] %v5240_v15  ;;  %v5243_v39 = vpop.eup %4529  ;;  %4549 = vpow2.f32 %v1404_v34 }
 0x3a6   :  { %v5247_v24 = vpop.eup %4531  ;;  %4551 = vpow2.f32 %v1414_v4  ;;  %v5297_v4 = vmul.f32 %v5240_v15, %v5221_v55 }
 0x3a7   :  { %v5249_v10 = vpop.eup %4533  ;;  %4553 = vpow2.f32 %v1406_v21  ;;  %v5349_v20 = vmul.f32 %v5247_v24, %v5233_v12 }
 0x3a8   :  { %7488 = vst [vmem:[#allocation24_spill] sm:$0xff] %v5249_v10  ;;  %v5256_v32 = vpop.eup %4535  ;;  %4555 = vpow2.f32 %v1400_v16  ;;  %7498 = vst [vmem:[#allocation34_spill] sm:$0xff] %v5297_v4 }
 0x3a9   :  { %1012 = vbcast.lane.b32.xlu0 %v5237_v50, 320  ;;  %968 = vbcast.lane.b32.xlu1 %v5202_v26, 328  ;;  %7489 = vst [vmem:[#allocation25_spill] sm:$0xff] %v5256_v32  ;;  %v5259_v62 = vpop.eup %4537  ;;  %4557 = vpow2.f32 %v1412_v63  ;;  %7508 = vst [vmem:[#allocation44_spill] sm:$0xff] %v5349_v20 }
 0x3aa   :  { %7490 = vst [vmem:[#allocation26_spill] sm:$0xff] %v5259_v62  ;;  %v5263_v36 = vpop.eup %4539  ;;  %4559 = vpow2.f32 %v1392_v38 }
 0x3ab   :  { %7491 = vst [vmem:[#allocation27_spill] sm:$0xff] %v5263_v36  ;;  %v5265_v30 = vpop.eup %4541  ;;  %4561 = vpow2.f32 %v1416_v35  ;;  %v5275_v60 = vmul.f32 %v5263_v36, %v5256_v32  ;;  %v5285_v13 = vmul.f32 %v5263_v36, %v5259_v62  ;;  %v2037_v36 = vrot.slane %v5010_v48, 6 }
 0x3ac   :  { %7492 = vst [vmem:[#allocation28_spill] sm:$0xff] %v5265_v30  ;;  %v5271_v54 = vpop.eup %4543  ;;  %4563 = vpow2.f32 %v1408_v43 }
 0x3ad   :  { %1036 = vbcast.lane.b32.xlu0 %v5253_v28, 320  ;;  %980 = vbcast.lane.b32.xlu1 %v5219_v46, 328  ;;  %7493 = vst [vmem:[#allocation29_spill] sm:$0xff] %v5275_v60  ;;  %v5277_v44 = vpop.eup %4545  ;;  %7496 = vst [vmem:[#allocation32_spill] sm:$0xff] %v5285_v13  ;;  %v5321_v63 = vmul.f32 %v5271_v54, %v5249_v10 }
 0x3ae   :  { %7494 = vst [vmem:[#allocation30_spill] sm:$0xff] %v5277_v44  ;;  %v5281_v14 = vpop.eup %4547  ;;  %v5289_v34 = vmul.f32 %v5277_v44, %v5256_v32  ;;  %v5293_v59 = vmul.f32 %v5277_v44, %v5221_v55 }
 0x3af   :  { %7495 = vst [vmem:[#allocation31_spill] sm:$0xff] %v5281_v14  ;;  %v5299_v37 = vpop.eup %4549  ;;  %v5345_v40 = vmul.f32 %v5281_v14, %v5265_v30 }
 0x3b0   :  { %7497 = vst [vmem:[#allocation33_spill] sm:$0xff] %v5289_v34  ;;  %7499 = vst [vmem:[#allocation35_spill] sm:$0xff] %v5299_v37  ;;  %v5301_v51 = vpop.eup %4551  ;;  %v5305_v16 = vmul.f32 %v5293_v59, %v5275_v60  ;;  %v5309_v53 = vmul.f32 %v5289_v34, %v5285_v13  ;;  %v5313_v21 = vmul.f32 %v5297_v4, %v5289_v34 }
 0x3b1   :  { %1024 = vbcast.lane.b32.xlu0 %v5269_v42, 320  ;;  %1016 = vbcast.lane.b32.xlu1 %v5237_v50, 328  ;;  %7500 = vst [vmem:[#allocation36_spill] sm:$0xff] %v5301_v51  ;;  %v5315_v38 = vpop.eup %4553  ;;  %v5331_v35 = vmul.f32 %v5301_v51, %v5233_v12  ;;  %v5335_v43 = vmul.f32 %v5299_v37, %v5281_v14 }
 0x3b2   :  { %7501 = vst [vmem:[#allocation37_spill] sm:$0xff] %v5305_v16  ;;  %7502 = vst [vmem:[#allocation38_spill] sm:$0xff] %v5309_v53  ;;  %v5323_v17 = vpop.eup %4555  ;;  %v5327_v1 = vmul.f32 %v5315_v38, %v5301_v51  ;;  %v5339_v5 = vmul.f32 %v5315_v38, %v5249_v10  ;;  %v845_v34 = vcombine.high %v5129_v18, %v5129_v18 }
 0x3b3   :  { %7503 = vst [vmem:[#allocation39_spill] sm:$0xff] %v5313_v21  ;;  %7504 = vst [vmem:[#allocation40_spill] sm:$0xff] %v5315_v38  ;;  %v5341_v27 = vpop.eup %4557  ;;  %v1269_v10 = vrot.slane %v5157_v0, %v4926_v29 }
 0x3b4   :  { %7505 = vst [vmem:[#allocation41_spill] sm:$0xff] %v5323_v17  ;;  %7506 = vst [vmem:[#allocation42_spill] sm:$0xff] %v5327_v1  ;;  %v5355_v56 = vpop.eup %4559  ;;  %v5359_v33 = vmul.f32 %v5341_v27, %v5299_v37  ;;  %v5363_v22 = vmul.f32 %v5327_v1, %v5321_v63  ;;  %v5367_v23 = vmul.f32 %v5341_v27, %v5215_v45 }
 0x3b5   :  { %1148 = vbcast.lane.b32.xlu0 %v5202_v26, 336  ;;  %1040 = vbcast.lane.b32.xlu1 %v5253_v28, 328  ;;  %7507 = vst [vmem:[#allocation43_spill] sm:$0xff] %v5341_v27  ;;  %v5371_v4 = vmul.f32 %v5331_v35, %v5339_v5  ;;  %v5373_v44 = vpop.eup %4561  ;;  %v5379_v14 = vmul.f32 %v5349_v20, %v5327_v1  ;;  %v5399_v20 = vpop.permute.xlu1 %2046 }
 0x3b6   :  { %7510 = vst [vmem:[#allocation46_spill] sm:$0xff] %v5359_v33  ;;  %7511 = vst [vmem:[#allocation47_spill] sm:$0xff] %v5363_v22  ;;  %v5381_v51 = vpop.eup %4563  ;;  %v5385_v27 = vmul.f32 %v5243_v39, %v5230_v3  ;;  %v5389_v21 = vmul.f32 %v5367_v23, %v5335_v43  ;;  %v5393_v38 = vmul.f32 %v5359_v33, %v5345_v40  ;;  %v2044_v22 = vrot.slane %v5008_v47, 6 }
 0x3b7   :  { %7512 = vst [vmem:[#allocation48_spill] sm:$0xff] %v5367_v23  ;;  %7513 = vst [vmem:[#allocation49_spill] sm:$0xff] %v5371_v4  ;;  %v5397_v16 = vmul.f32 %v5353_v8, %v5359_v33  ;;  %v5405_v1 = vmul.f32 %v5355_v56, %v5323_v17  ;;  %v5409_v37 = vmul.f32 %v5381_v51, %v5373_v44 }
 0x3b8   :  { %7514 = vst [vmem:[#allocation50_spill] sm:$0xff] %v5373_v44  ;;  %7515 = vst [vmem:[#allocation51_spill] sm:$0xff] %v5379_v14  ;;  %v5401_v14 = vpop.permute.xlu0 %2064  ;;  %v5417_v8 = vmul.f32 %v5381_v51, %v5323_v17  ;;  %v1329_v32 = vrot.slane %v845_v34, %v4926_v29  ;;  %v744_v34 = vmul.f32 %v5105_v11, %v5024_v7  ;;  %v4677_v17 = vld [vmem:[%s7373_s6] sm:$0x1f] }
 0x3b9   :  { %1156 = vbcast.lane.b32.xlu0 %v5219_v46, 336  ;;  %1028 = vbcast.lane.b32.xlu1 %v5269_v42, 328  ;;  %7516 = vst [vmem:[#allocation52_spill] sm:$0xff] %v5381_v51  ;;  %7517 = vst [vmem:[#allocation53_spill] sm:$0xff] %v5385_v27 }
 0x3ba   :  { %7518 = vst [vmem:[#allocation54_spill] sm:$0xff] %v5389_v21  ;;  %7519 = vst [vmem:[#allocation55_spill] sm:$0xff] %v5393_v38  ;;  %v5413_v21 = vmul.f32 %v5373_v44, %v5230_v3  ;;  %v5433_v44 = vpop.permute.xlu1 %2066  ;;  %v1376_v0 = vmul.f32 %v1329_v32, %v5145_v25 }
 0x3bb   :  { %7520 = vst [vmem:[#allocation56_spill] sm:$0xff] %v5397_v16  ;;  %7521 = vst [vmem:[#allocation57_spill] sm:$0xff] %v5399_v20  ;;  %v5431_v16 = vmul.f32 %v5385_v27, %v5409_v37 }
 0x3bc   :  { %7522 = vst [vmem:[#allocation58_spill] sm:$0xff] %v5401_v14  ;;  %7523 = vst [vmem:[#allocation59_spill] sm:$0xff] %v5409_v37  ;;  %v5423_v14 = vmul.f32 %v5409_v37, %v5405_v1  ;;  %v5427_v20 = vmul.f32 %v5413_v21, %v5417_v8  ;;  %v5435_v51 = vpop.permute.xlu0 %2048  ;;  %v2042_v37 = vrot.slane %v5008_v47, 4 }
 0x3bd   :  { %7524 = vst [vmem:[#allocation60_spill] sm:$0xff] %v5417_v8  ;;  %1140 = vbcast.lane.b32.xlu0 %v5185_v6, 336  ;;  %1152 = vbcast.lane.b32.xlu1 %v5202_v26, 344  ;;  %7527 = vst [vmem:[#allocation63_spill] sm:$0xff] %v5431_v16 }
 0x3be   :  { %7525 = vst [vmem:[#allocation61_spill] sm:$0xff] %v5423_v14  ;;  %7526 = vst [vmem:[#allocation62_spill] sm:$0xff] %v5427_v20  ;;  %v5441_v26 = vpop.permute.xlu1 %2050  ;;  %v2041_v20 = vrot.slane %v5008_v47, 3 }
 0x3bf   :  { %7528 = vst [vmem:[#allocation64_spill] sm:$0xff] %v5433_v44  ;;  %7529 = vst [vmem:[#allocation65_spill] sm:$0xff] %v5435_v51 }
 0x3c0   :  { %7530 = vst [vmem:[#allocation66_spill] sm:$0xff] %v5441_v26  ;;  %v5443_v33 = vpop.permute.xlu0 %2052 }
 0x3c1   :  { %1164 = vbcast.lane.b32.xlu0 %v5170_v49, 336  ;;  %1160 = vbcast.lane.b32.xlu1 %v5219_v46, 344  ;;  %7531 = vst [vmem:[#allocation67_spill] sm:$0xff] %v5443_v33 }
 0x3c5   :  { %1172 = vbcast.lane.b32.xlu0 %v5180_v2, 336  ;;  %1144 = vbcast.lane.b32.xlu1 %v5185_v6, 344 }
 0x3c9   :  { %1180 = vbcast.lane.b32.xlu0 %v5237_v50, 336  ;;  %1168 = vbcast.lane.b32.xlu1 %v5170_v49, 344  ;;  %v2035_v49 = vrot.slane %v5010_v48, 4 }
 0x3cb   :  { %v5447_v16 = vpop.permute.xlu1 %1052  ;;  %v5449_v44 = vpop.permute.xlu0 %1048 }
 0x3cd   :  { %1188 = vbcast.lane.b32.xlu0 %v5269_v42, 336  ;;  %1176 = vbcast.lane.b32.xlu1 %v5180_v2, 344 }
 0x3cf   :  { %v5453_v46 = vpop.permute.xlu1 %1064  ;;  %v5455_v51 = vpop.permute.xlu0 %1060 }
 0x3d1   :  { %1196 = vbcast.lane.b32.xlu0 %v5253_v28, 336  ;;  %1184 = vbcast.lane.b32.xlu1 %v5237_v50, 344 }
 0x3d3   :  { %v5459_v6 = vpop.permute.xlu1 %1076  ;;  %v5461_v33 = vpop.permute.xlu0 %1072 }
 0x3d5   :  { %2054 = vrot.lane.b32.xlu0 %v2035_v49, %s4755_s0  ;;  %1192 = vbcast.lane.b32.xlu1 %v5269_v42, 344  ;;  %v843_v42 = vcombine.high %v5118_v31, %v5118_v31 }
 0x3d7   :  { %v5466_v26 = vpop.permute.xlu1 %1088  ;;  %v5468_v2 = vpop.permute.xlu0 %1084  ;;  %v1325_v31 = vrot.slane %v843_v42, %v4926_v29 }
 0x3d9   :  { %2068 = vrot.lane.b32.xlu0 %v2041_v20, %s4755_s0  ;;  %1200 = vbcast.lane.b32.xlu1 %v5253_v28, 344  ;;  %v2043_v20 = vrot.slane %v5008_v47, 5  ;;  %v2036_v28 = vrot.slane %v5010_v48, 5  ;;  %v1375_v18 = vmul.f32 %v1325_v31, %v5136_v19  ;;  %v1374_v53 = vmul.f32 %v1325_v31, %v5145_v25 }
 0x3da   :  { %v2045_v31 = vrot.slane %v5008_v47, 7 }
 0x3db   :  { %v5473_v50 = vpop.permute.xlu1 %1100  ;;  %v5475_v27 = vpop.permute.xlu0 %1096  ;;  %v1436_v11 = vmul.f32 1.442695, %v1375_v18 }
 0x3dd   :  { %2070 = vrot.lane.b32.xlu0 %v2042_v37, %s4755_s0  ;;  %2062 = vrot.lane.b32.xlu1 %v5008_v47, %s4755_s0  ;;  %v745_v37 = vmul.f32 %v5090_v58, %v5026_v9  ;;  %v848_v47 = vcombine.high %v744_v34, %v744_v34  ;;  %4565 = vpow2.f32 %v1436_v11 }
 0x3df   :  { %v5483_v49 = vpop.permute.xlu1 %1112  ;;  %v5485_v14 = vpop.permute.xlu0 %1108 }
 0x3e0   :  { %7532 = vst [vmem:[#allocation68_spill] sm:$0xff] %v5483_v49  ;;  %7533 = vst [vmem:[#allocation69_spill] sm:$0xff] %v5485_v14  ;;  %v5534_v14 = vrot.slane %v744_v34, %v5085_v57 }
 0x3e1   :  { %2072 = vrot.lane.b32.xlu0 %v2043_v20, %s4755_s0  ;;  %2056 = vrot.lane.b32.xlu1 %v2036_v28, %s4755_s0  ;;  %v897_v20 = vcombine.high %v745_v37, %v745_v37  ;;  %v2038_v28 = vrot.slane %v5010_v48, 7  ;;  %v1965_v48 = vrot.slane %v4677_v17, %v5052_v41  ;;  %v1347_v17 = vmul.f32 %v1269_v10, %v5136_v19 }
 0x3e3   :  { %v5496_v4 = vpop.permute.xlu1 %1124  ;;  %v5498_v38 = vpop.permute.xlu0 %1120  ;;  %v5540_v18 = vmul.f32 %v1965_v48, %v5024_v7  ;;  %v862_v7 = vrot.slane %v848_v47, %v5085_v57 }
 0x3e4   :  { %7534 = vst [vmem:[#allocation70_spill] sm:$0xff] %v5496_v4  ;;  %7535 = vst [vmem:[#allocation71_spill] sm:$0xff] %v5498_v38  ;;  %v1434_v4 = vmul.f32 1.442695, %v1374_v53 }
 0x3e5   :  { %2074 = vrot.lane.b32.xlu0 %v2044_v22, %s4755_s0  ;;  %2058 = vrot.lane.b32.xlu1 %v2037_v36, %s4755_s0  ;;  %v1377_v22 = vmul.f32 %v1329_v32, %v5136_v19  ;;  %v1273_v36 = vrot.slane %v5190_v52, %v4926_v29  ;;  %v1346_v52 = vmul.f32 %v1269_v10, %v5145_v25 }
 0x3e6   :  { %7540 = vst [vmem:[#allocation76_spill] sm:$0xff] %v5540_v18  ;;  %4567 = vpow2.f32 %v1434_v4  ;;  %v863_v10 = vcombine.high %v5534_v14, %v5534_v14 }
 0x3e7   :  { %v5506_v58 = vpop.permute.xlu1 %1136  ;;  %v5508_v42 = vpop.permute.xlu0 %1132  ;;  %v1440_v32 = vmul.f32 1.442695, %v1377_v22  ;;  %v1378_v49 = vmul.f32 1.442695, %v1346_v52  ;;  %v1380_v22 = vmul.f32 1.442695, %v1347_v17  ;;  %v1349_v34 = vmul.f32 %v1273_v36, %v5136_v19 }
 0x3e8   :  { %7536 = vst [vmem:[#allocation72_spill] sm:$0xff] %v5506_v58  ;;  %7537 = vst [vmem:[#allocation73_spill] sm:$0xff] %v5508_v42  ;;  %v904_v42 = vrot.slane %v745_v37, %v5085_v57  ;;  %v911_v58 = vrot.slane %v897_v20, %v5085_v57  ;;  %v1348_v37 = vmul.f32 %v1273_v36, %v5145_v25  ;;  %v1438_v20 = vmul.f32 1.442695, %v1376_v0  ;;  %v2110_v52 = vld [vmem:[%s7372_s5] sm:$0xff] }
 0x3e9   :  { %2060 = vrot.lane.b32.xlu1 %v2038_v28, %s4755_s0  ;;  %v5550_v25 = vmul.f32 %v1965_v48, %v5026_v9  ;;  %4569 = vpow2.f32 %v1440_v32  ;;  %v2111_v9 = vld [vmem:[%s7372_s5 + $0x8] sm:$0xff]  ;;  %v5570_v47 = vrot.slane %v863_v10, %v5085_v57 }
 0x3ea   :  { %v912_v41 = vcombine.high %v904_v42, %v904_v42  ;;  %v1382_v0 = vmul.f32 1.442695, %v1348_v37  ;;  %4571 = vpow2.f32 %v1438_v20  ;;  %v927_v36 = vrot.slane %v911_v58, %v5085_v57 }
 0x3eb   :  { %v5528_v38 = vpop.permute.xlu1 %1216  ;;  %v5530_v28 = vpop.permute.xlu0 %1212  ;;  %7543 = vst [vmem:[#allocation79_spill] sm:$0xff] %v5550_v25  ;;  %4573 = vpow2.f32 %v1378_v49  ;;  %v4420_v17 = vpack.c.bf16 %v2111_v9, %v2110_v52  ;;  %v1384_v37 = vmul.f32 1.442695, %v1349_v34  ;;  %v864_v20 = vcombine.high %v862_v7, %v862_v7 }
 0x3ec   :  { %7538 = vst [vmem:[#allocation74_spill] sm:$0xff] %v5528_v38  ;;  %7539 = vst [vmem:[#allocation75_spill] sm:$0xff] %v5530_v28  ;;  %v913_v38 = vcombine.high %v911_v58, %v911_v58  ;;  %v934_v19 = vrot.slane %v912_v41, %v5085_v57  ;;  %4575 = vpow2.f32 %v1380_v22  ;;  %v943_v41 = vcombine.high %v927_v36, %v927_v36  ;;  %v5595_v58 = vpop.eup %4565 }
 0x3ed   :  { %2076 = vrot.lane.b32.xlu1 %v2045_v31, %s4755_s0  ;;  %v920_v31 = vrot.slane %v904_v42, %v5085_v57  ;;  %4577 = vpow2.f32 %v1382_v0  ;;  %4421 = vmatprep.subr.bf16.mxu0 %v4420_v17  ;;  %v895_v11 = vcombine.high %v5570_v47, %v5570_v47  ;;  %v2114_v0 = vld [vmem:[%s7372_s5 + $0x20] sm:$0xff]  ;;  %7548 = vst [vmem:[#allocation84_spill] sm:$0xff] %v5595_v58 }
 0x3ee   :  { %v941_v32 = vrot.slane %v913_v38, %v5085_v57  ;;  %4423 = vmatpush3.bf16.msra.mxu0 %v4420_v17  ;;  %v944_v52 = vcombine.high %v934_v19, %v934_v19  ;;  %4579 = vpow2.f32 %v1384_v37  ;;  %v2112_v17 = vld [vmem:[%s7372_s5 + $0x10] sm:$0xff]  ;;  %v2113_v38 = vld [vmem:[%s7372_s5 + $0x18] sm:$0xff]  ;;  %v878_v9 = vrot.slane %v862_v7, %v5085_v57 }
 0x3ef   :  { %v5542_v28 = vpop.permute.xlu1 %1224  ;;  %v5544_v53 = vpop.permute.xlu0 %1220  ;;  %v942_v10 = vcombine.high %v920_v31, %v920_v31  ;;  %v871_v49 = vrot.slane %v5534_v14, %v5085_v57  ;;  %v892_v37 = vrot.slane %v864_v20, %v5085_v57  ;;  %v4424_v25 = vpack.c.bf16 %v2113_v38, %v2112_v17 }
 0x3f0   :  { %7541 = vst [vmem:[#allocation77_spill] sm:$0xff] %v5542_v28  ;;  %7542 = vst [vmem:[#allocation78_spill] sm:$0xff] %v5544_v53  ;;  %v945_v4 = vcombine.high %v941_v32, %v941_v32  ;;  %v5607_v28 = vrot.slane %v920_v31, %v4926_v29  ;;  %v5614_v14 = vrot.slane %v934_v19, %v4926_v29 }
 0x3f1   :  { %v5617_v20 = vrot.slane %v942_v10, %v4926_v29  ;;  %v5620_v38 = vrot.slane %v944_v52, %v4926_v29  ;;  %v5623_v17 = vrot.slane %v927_v36, %v4926_v29  ;;  %4425 = vmatprep.subr.bf16.mxu0 %v4424_v25  ;;  %v5635_v19 = vrot.slane %v943_v41, %v4926_v29 }
 0x3f2   :  { %v5638_v10 = vrot.slane %v945_v4, %v4926_v29  ;;  %v5641_v52 = vrot.slane %v895_v11, %v4926_v29  ;;  %4427 = vmatpush3.bf16.msra.mxu0 %v4424_v25  ;;  %v5648_v57 = vrot.slane %v878_v9, %v4926_v29  ;;  %v5655_v11 = vrot.slane %v871_v49, %v4926_v29 }
 0x3f3   :  { %v5564_v48 = vpop.permute.xlu1 %1208  ;;  %v5566_v42 = vpop.permute.xlu0 %1204  ;;  %v894_v25 = vcombine.high %v878_v9, %v878_v9 }
 0x3f4   :  { %7544 = vst [vmem:[#allocation80_spill] sm:$0xff] %v5564_v48  ;;  %7545 = vst [vmem:[#allocation81_spill] sm:$0xff] %v5566_v42  ;;  %v5604_v48 = vpop.eup %4567 }
 0x3f5   :  { %7549 = vst [vmem:[#allocation85_spill] sm:$0xff] %v5604_v48  ;;  %v5611_v53 = vpop.eup %4569  ;;  %7553 = vst [vmem:[#allocation89_spill] sm:$0xff] %v5638_v10  ;;  %v5652_v4 = vmul.f32 %v5604_v48, %v5240_v15 }
 0x3f6   :  { %7554 = vst [vmem:[#allocation90_spill] sm:$0xff] %v5641_v52  ;;  %7555 = vst [vmem:[#allocation91_spill] sm:$0xff] %v5648_v57  ;;  %v2117_v57 = vld [vmem:[%s7372_s5 + $0x38] sm:$0xff]  ;;  %v5676_v48 = vmul.f32 %v5611_v53, %v5243_v39 }
 0x3f7   :  { %v5578_v22 = vpop.permute.xlu1 %1232  ;;  %v5580_v34 = vpop.permute.xlu0 %1228  ;;  %7556 = vst [vmem:[#allocation92_spill] sm:$0xff] %v5655_v11 }
 0x3f8   :  { %7546 = vst [vmem:[#allocation82_spill] sm:$0xff] %v5578_v22  ;;  %7547 = vst [vmem:[#allocation83_spill] sm:$0xff] %v5580_v34  ;;  %v2115_v22 = vld [vmem:[%s7372_s5 + $0x28] sm:$0xff]  ;;  %v5645_v34 = vmul.f32 %v5595_v58, %v5225_v61 }
 0x3f9   :  { %v4428_v7 = vpack.c.bf16 %v2115_v22, %v2114_v0  ;;  %v5629_v22 = vpop.eup %4571  ;;  %v5632_v0 = vrot.slane %v941_v32, %v4926_v29  ;;  %v893_v32 = vcombine.high %v871_v49, %v871_v49  ;;  %v5670_v49 = vrot.slane %v5570_v47, %v4926_v29 }
 0x3fa   :  { %7552 = vst [vmem:[#allocation88_spill] sm:$0xff] %v5629_v22  ;;  %v4574_v36 = vpop.eup %4573  ;;  %v5680_v15 = vmul.f32 %v5629_v22, %v5247_v24 }
 0x3fb   :  { %v5625_v31 = vpop.permute.xlu1 %1240  ;;  %v5627_v42 = vpop.permute.xlu0 %1236  ;;  %4429 = vmatprep.subr.bf16.mxu0 %v4428_v7  ;;  %v1618_v18 = vmul.f32 %v4574_v36, %v5259_v62  ;;  %7559 = vst [vmem:[#allocation95_spill] sm:$0xff] %v5670_v49  ;;  %v1706_v62 = vmul.f32 %v4574_v36, %v5285_v13  ;;  %v5684_v47 = vmul.f32 0.0, %v4574_v36 }
 0x3fc   :  { %7550 = vst [vmem:[#allocation86_spill] sm:$0xff] %v5625_v31  ;;  %7551 = vst [vmem:[#allocation87_spill] sm:$0xff] %v5627_v42  ;;  %v896_v31 = vcombine.high %v892_v37, %v892_v37  ;;  %v4576_v41 = vpop.eup %4575  ;;  %v2116_v42 = vld [vmem:[%s7372_s5 + $0x30] sm:$0xff]  ;;  %4431 = vmatpush3.bf16.msra.mxu0 %v4428_v7 }
 0x3fd   :  { %v4578_v52 = vpop.eup %4577  ;;  %v1619_v9 = vmul.f32 %v4576_v41, %v5265_v30  ;;  %v4432_v11 = vpack.c.bf16 %v2117_v57, %v2116_v42  ;;  %v5687_v30 = vrot.slane %v893_v32, %v4926_v29  ;;  %v5690_v57 = vrot.slane %v892_v37, %v4926_v29 }
 0x3fe   :  { %v5693_v42 = vrot.slane %v896_v31, %v4926_v29  ;;  %v4580_v13 = vpop.eup %4579  ;;  %v5695_v49 = vmul.f32 0.0, %v4578_v52  ;;  %v5697_v22 = vmul.f32 0.0, %v4576_v41  ;;  %v1708_v7 = vmul.f32 %v4578_v52, %v5321_v63 }
 0x3ff   :  { %v5664_v10 = vpop.permute.xlu1 %1248  ;;  %v5666_v58 = vpop.permute.xlu0 %1244  ;;  %7560 = vst [vmem:[#allocation96_spill] sm:$0xff] %v5687_v30  ;;  %7561 = vst [vmem:[#allocation97_spill] sm:$0xff] %v5690_v57  ;;  %4433 = vmatprep.subr.bf16.mxu0 %v4432_v11  ;;  %v5707_v37 = vmul.f32 0.0, %v1618_v18  ;;  %v5709_v57 = vmul.f32 0.0, %v1619_v9  ;;  %v5711_v31 = vmul.f32 0.0, %v1706_v62  ;;  %v5716_v30 = vmul.f32 %v5607_v28, %v5447_v16 }
 0x400   :  { %7557 = vst [vmem:[#allocation93_spill] sm:$0xff] %v5664_v10  ;;  %7558 = vst [vmem:[#allocation94_spill] sm:$0xff] %v5666_v58  ;;  %v1620_v10 = vmul.f32 %v4578_v52, %v5271_v54  ;;  %v1710_v58 = vmul.f32 %v5275_v60, %v1618_v18  ;;  %v5700_v60 = vrot.slane %v894_v25, %v4926_v29  ;;  %4435 = vmatpush3.bf16.msra.mxu0 %v4432_v11 }
 0x401   :  { %7562 = vst [vmem:[#allocation98_spill] sm:$0xff] %v5693_v42  ;;  %v1707_v42 = vmul.f32 %v4576_v41, %v5345_v40  ;;  %7565 = vst [vmem:[#allocation101_spill] sm:$0xff] %v5716_v30  ;;  %v1621_v52 = vmul.f32 %v4580_v13, %v5355_v56  ;;  %v5725_v18 = vmul.f32 %v5607_v28, %v5449_v44 }
 0x402   :  { %v5718_v25 = vmul.f32 0.0, %v1620_v10  ;;  %v5721_v29 = vmul.f32 0.0, %v1710_v58  ;;  %v1712_v62 = vmul.f32 %v5339_v5, %v1620_v10  ;;  %v1709_v41 = vmul.f32 %v4580_v13, %v5405_v1 }
 0x403   :  { %v5703_v36 = vpop.permute.xlu1 %1256  ;;  %v5705_v32 = vpop.permute.xlu0 %1252  ;;  %v1543_v16 = vmul.f32 %v5617_v20, %v5459_v6  ;;  %v5737_v58 = vmul.f32 %v5652_v4, %v5293_v59  ;;  %v1711_v11 = vmul.f32 %v5335_v43, %v1619_v9  ;;  %v5742_v44 = vmul.f32 %v5614_v14, %v5453_v46 }
 0x404   :  { %7563 = vst [vmem:[#allocation99_spill] sm:$0xff] %v5703_v36  ;;  %7564 = vst [vmem:[#allocation100_spill] sm:$0xff] %v5705_v32  ;;  %v5727_v36 = vmul.f32 0.0, %v4580_v13  ;;  %v5733_v32 = vmul.f32 0.0, %v1708_v7  ;;  %v1542_v28 = vmul.f32 %v5617_v20, %v5461_v33  ;;  %v5750_v6 = vmul.f32 0.0, %v1707_v42 }
 0x405   :  { %7566 = vst [vmem:[#allocation102_spill] sm:$0xff] %v5721_v29  ;;  %7568 = vst [vmem:[#allocation104_spill] sm:$0xff] %v5737_v58  ;;  %v5754_v7 = vmul.f32 %v5680_v15, %v5331_v35  ;;  %v1575_v9 = vmul.f32 %v5215_v45, %v5716_v30  ;;  %v5760_v46 = vmul.f32 %v5614_v14, %v5455_v51  ;;  %v5762_v29 = vmul.f32 0.0, %v1621_v52 }
 0x406   :  { %7567 = vst [vmem:[#allocation103_spill] sm:$0xff] %v5733_v32  ;;  %7571 = vst [vmem:[#allocation107_spill] sm:$0xff] %v5750_v6  ;;  %v1713_v33 = vmul.f32 %v5417_v8, %v1621_v52  ;;  %v1574_v20 = vmul.f32 %v5221_v55, %v5725_v18  ;;  %v1545_v42 = vmul.f32 %v5620_v38, %v5466_v26  ;;  %v5781_v14 = vmul.f32 0.0, %v1711_v11  ;;  %v7580_v8 = vld [vmem:[#allocation68_spill] sm:$0xff]  ;;  %v7588_v6 = vld [vmem:[#allocation73_spill] sm:$0xff] }
 0x407   :  { %v5746_v10 = vpop.permute.xlu1 %1264  ;;  %v5748_v13 = vpop.permute.xlu0 %1260  ;;  %7572 = vst [vmem:[#allocation108_spill] sm:$0xff] %v5754_v7  ;;  %v5773_v7 = vadd.f32 %v1575_v9, %v1543_v16  ;;  %v1544_v45 = vmul.f32 %v5620_v38, %v5468_v2  ;;  %v5779_v51 = vmul.f32 %v5645_v34, %v5367_v23  ;;  %v1577_v55 = vmul.f32 %v5230_v3, %v5742_v44 }
 0x408   :  { %7569 = vst [vmem:[#allocation105_spill] sm:$0xff] %v5746_v10  ;;  %7570 = vst [vmem:[#allocation106_spill] sm:$0xff] %v5748_v13  ;;  %v5769_v10 = vmul.f32 0.0, %v1712_v62  ;;  %v5771_v13 = vmul.f32 0.0, %v1709_v41  ;;  %v5785_v52 = vadd.f32 %v1574_v20, %v1542_v28  ;;  %v1547_v26 = vmul.f32 %v5623_v17, %v5473_v50 }
 0x409   :  { %7575 = vst [vmem:[#allocation111_spill] sm:$0xff] %v5773_v7  ;;  %7576 = vst [vmem:[#allocation112_spill] sm:$0xff] %v5779_v51  ;;  %v5791_v9 = vmul.f32 %v5676_v48, %v5413_v21  ;;  %v1576_v2 = vmul.f32 %v5233_v12, %v5760_v46  ;;  %v1579_v38 = vmul.f32 %v5225_v61, %v1543_v16  ;;  %v5798_v3 = vmul.f32 0.0, %v1713_v33  ;;  %v7583_v61 = vld [vmem:[#allocation23_spill] sm:$0xff] }
 0x40a   :  { %7573 = vst [vmem:[#allocation109_spill] sm:$0xff] %v5769_v10  ;;  %7574 = vst [vmem:[#allocation110_spill] sm:$0xff] %v5771_v13  ;;  %v1546_v11 = vmul.f32 %v5623_v17, %v5475_v27  ;;  %v5800_v20 = vadd.f32 %v1577_v55, %v1545_v42  ;;  %v1549_v50 = vmul.f32 %v5632_v0, %v7580_v8  ;;  %v7582_v13 = vld [vmem:[#allocation70_spill] sm:$0xff]  ;;  %v7584_v27 = vld [vmem:[#allocation71_spill] sm:$0xff] }
 0x40b   :  { %7577 = vst [vmem:[#allocation113_spill] sm:$0xff] %v5781_v14  ;;  %v993_v62 = vpop.permute.xlu1 %992  ;;  %v989_v41 = vpop.permute.xlu0 %988  ;;  %7578 = vst [vmem:[#allocation114_spill] sm:$0xff] %v5791_v9  ;;  %v7581_v14 = vld [vmem:[#allocation69_spill] sm:$0xff]  ;;  %v1551_v9 = vmul.f32 %v5635_v19, %v7582_v13  ;;  %v1671_v12 = vmul.f32 %v5645_v34, %v5773_v7  ;;  %v1578_v16 = vmul.f32 %v7583_v61, %v1542_v28  ;;  %v7585_v8 = vld [vmem:[#allocation84_spill] sm:$0xff] }
 0x40c   :  { %7579 = vst [vmem:[#allocation115_spill] sm:$0xff] %v5798_v3  ;;  %v1548_v51 = vmul.f32 %v5632_v0, %v7581_v14  ;;  %v5811_v10 = vadd.f32 %v1576_v2, %v1544_v45  ;;  %v1550_v17 = vmul.f32 %v5635_v19, %v7584_v27  ;;  %v1670_v33 = vmul.f32 %v5652_v4, %v5785_v52  ;;  %v7586_v3 = vld [vmem:[#allocation72_spill] sm:$0xff]  ;;  %v7587_v0 = vld [vmem:[#allocation89_spill] sm:$0xff] }
 0x40d   :  { %v1583_v55 = vmul.f32 %v7585_v8, %v1547_v26  ;;  %v1553_v14 = vmul.f32 %v7587_v0, %v7586_v3  ;;  %v1552_v13 = vmul.f32 %v7587_v0, %v7588_v6  ;;  %v1581_v28 = vmul.f32 %v5243_v39, %v1545_v42  ;;  %v7589_v61 = vld [vmem:[#allocation85_spill] sm:$0xff]  ;;  %v7590_v19 = vld [vmem:[#allocation92_spill] sm:$0xff] }
 0x40e   :  { %v1580_v2 = vmul.f32 %v5247_v24, %v1544_v45  ;;  %v1582_v32 = vmul.f32 %v7589_v61, %v1546_v11  ;;  %v1673_v4 = vmul.f32 %v5676_v48, %v5800_v20  ;;  %v1585_v8 = vmul.f32 %v5611_v53, %v1549_v50  ;;  %v7591_v7 = vld [vmem:[#allocation88_spill] sm:$0xff]  ;;  %v7593_v61 = vld [vmem:[#allocation90_spill] sm:$0xff] }
 0x40f   :  { %v1001_v58 = vpop.permute.xlu0 %1000  ;;  %v953_v34 = vpop.permute.xlu1 %952  ;;  %v1584_v3 = vmul.f32 %v7591_v7, %v1548_v51  ;;  %v1615_v23 = vadd.f32 %v1583_v55, %v1551_v9  ;;  %v1672_v6 = vmul.f32 %v5680_v15, %v5811_v10  ;;  %v5832_v0 = vadd.f32 %v1579_v38, %v1547_v26  ;;  %v7594_v9 = vld [vmem:[#allocation95_spill] sm:$0xff] }
 0x410   :  { %v1522_v27 = vmul.f32 %v7590_v19, %v953_v34  ;;  %v1614_v39 = vadd.f32 %v1582_v32, %v1550_v17  ;;  %v5835_v42 = vadd.f32 %v1578_v16, %v1546_v11  ;;  %v1617_v45 = vadd.f32 %v1585_v8, %v1553_v14  ;;  %v7596_v16 = vld [vmem:[#allocation91_spill] sm:$0xff] }
 0x411   :  { %7592 = vst [vmem:[#allocation68_spill] sm:$0xff] %v5832_v0  ;;  %v1616_v34 = vadd.f32 %v1584_v3, %v1552_v13  ;;  %v5838_v30 = vmul.f32 %v7593_v61, %v993_v62  ;;  %v1528_v7 = vmul.f32 %v7593_v61, %v989_v41  ;;  %v5844_v32 = vadd.f32 %v1581_v28, %v1549_v50  ;;  %v7600_v50 = vld [vmem:[#allocation41_spill] sm:$0xff]  ;;  %v7601_v28 = vld [vmem:[#allocation38_spill] sm:$0xff]  ;;  %v7604_v61 = vld [vmem:[#allocation96_spill] sm:$0xff] }
 0x412   :  { %v1586_v24 = vadd.f32 %v5684_v47, %v1522_v27  ;;  %v5846_v38 = vadd.f32 %v1580_v2, %v1548_v51  ;;  %v5848_v11 = vadd.f32 %v1671_v12, %v1615_v23  ;;  %v1530_v17 = vmul.f32 %v7596_v16, %v1001_v58 }
 0x413   :  { %v965_v48 = vpop.permute.xlu0 %964  ;;  %v957_v53 = vpop.permute.xlu1 %956  ;;  %v5851_v62 = vadd.f32 %v1670_v33, %v1614_v39  ;;  %v5856_v8 = vadd.f32 %v1673_v4, %v1617_v45  ;;  %v5862_v51 = vmul.f32 %v7600_v50, %v5838_v30  ;;  %v7602_v33 = vld [vmem:[#allocation24_spill] sm:$0xff]  ;;  %v7605_v4 = vld [vmem:[#allocation25_spill] sm:$0xff]  ;;  %v7607_v50 = vld [vmem:[#allocation27_spill] sm:$0xff] }
 0x414   :  { %v1524_v55 = vmul.f32 %v7594_v9, %v965_v48  ;;  %v1523_v15 = vmul.f32 %v7590_v19, %v957_v53  ;;  %v1674_v26 = vadd.f32 %v1586_v24, %v5684_v47  ;;  %7595 = vst [vmem:[#allocation69_spill] sm:$0xff] %v5848_v11  ;;  %v5858_v19 = vadd.f32 %v1672_v6, %v1616_v34  ;;  %v7606_v6 = vld [vmem:[#allocation32_spill] sm:$0xff] }
 0x415   :  { %7597 = vst [vmem:[#allocation70_spill] sm:$0xff] %v5851_v62  ;;  %7598 = vst [vmem:[#allocation23_spill] sm:$0xff] %v5856_v8  ;;  %v1564_v2 = vmul.f32 %v7602_v33, %v1528_v7  ;;  %v5871_v45 = vmul.f32 %v7605_v4, %v1530_v17  ;;  %v1650_v34 = vmul.f32 %v7606_v6, %v1586_v24  ;;  %v7611_v24 = vld [vmem:[#allocation55_spill] sm:$0xff] }
 0x416   :  { %v1560_v14 = vmul.f32 %v5271_v54, %v1524_v55  ;;  %v1588_v41 = vadd.f32 %v5695_v49, %v1524_v55  ;;  %v1587_v13 = vadd.f32 %v5697_v22, %v1523_v15  ;;  %7599 = vst [vmem:[#allocation71_spill] sm:$0xff] %v5858_v19  ;;  %v5865_v58 = vmul.f32 %v7601_v28, %v1674_v26  ;;  %v7603_v54 = vld [vmem:[#allocation26_spill] sm:$0xff] }
 0x417   :  { %v977_v23 = vpop.permute.xlu0 %976  ;;  %v1005_v12 = vpop.permute.xlu1 %1004  ;;  %v1558_v3 = vmul.f32 %v7603_v54, %v1522_v27  ;;  %v7608_v27 = vld [vmem:[#allocation28_spill] sm:$0xff]  ;;  %v7609_v54 = vld [vmem:[#allocation47_spill] sm:$0xff]  ;;  %v5882_v19 = vadd.f32 %v1674_v26, %v5684_v47  ;;  %v7617_v26 = vld [vmem:[#allocation33_spill] sm:$0xff] }
 0x418   :  { %v1592_v39 = vadd.f32 %v1560_v14, %v1528_v7  ;;  %v1526_v48 = vmul.f32 %v7604_v61, %v977_v23  ;;  %v1676_v53 = vadd.f32 %v1588_v41, %v5695_v49  ;;  %v1675_v55 = vadd.f32 %v1587_v13, %v5697_v22 }
 0x419   :  { %v1531_v11 = vmul.f32 %v7596_v16, %v1005_v12  ;;  %v1559_v7 = vmul.f32 %v7608_v27, %v1523_v15  ;;  %7610 = vst [vmem:[#allocation84_spill] sm:$0xff] %v5882_v19  ;;  %v1652_v62 = vmul.f32 %v5321_v63, %v1588_v41  ;;  %v5891_v12 = vmul.f32 %v5345_v40, %v1587_v13  ;;  %v7615_v27 = vld [vmem:[#allocation49_spill] sm:$0xff] }
 0x41a   :  { %v1562_v8 = vmul.f32 %v7607_v50, %v1526_v48  ;;  %v1590_v28 = vadd.f32 %v1558_v3, %v1526_v48  ;;  %v1680_v33 = vadd.f32 %v5718_v25, %v1592_v39  ;;  %v1740_v4 = vmul.f32 %v7609_v54, %v1676_v53  ;;  %v7613_v3 = vld [vmem:[#allocation97_spill] sm:$0xff] }
 0x41b   :  { %v1013_v14 = vpop.permute.xlu0 %1012  ;;  %v969_v23 = vpop.permute.xlu1 %968  ;;  %v5885_v6 = vmul.f32 %v7611_v24, %v1675_v55  ;;  %7614 = vst [vmem:[#allocation89_spill] sm:$0xff] %v5891_v12  ;;  %v5896_v47 = vmul.f32 %v5339_v5, %v1592_v39  ;;  %v7621_v39 = vld [vmem:[#allocation42_spill] sm:$0xff] }
 0x41c   :  { %v1594_v50 = vadd.f32 %v1562_v8, %v1530_v17  ;;  %v1532_v48 = vmul.f32 %v7613_v3, %v1013_v14  ;;  %v1525_v16 = vmul.f32 %v7594_v9, %v969_v23  ;;  %v1678_v15 = vadd.f32 %v5707_v37, %v1590_v28  ;;  %v7619_v8 = vld [vmem:[#allocation37_spill] sm:$0xff] }
 0x41d   :  { %7612 = vst [vmem:[#allocation72_spill] sm:$0xff] %v5885_v6  ;;  %v1744_v54 = vmul.f32 %v7615_v27, %v1680_v33  ;;  %7616 = vst [vmem:[#allocation73_spill] sm:$0xff] %v5896_v47  ;;  %v7618_v6 = vld [vmem:[#allocation35_spill] sm:$0xff]  ;;  %v1756_v17 = vadd.f32 %v1676_v53, %v5695_v49  ;;  %v7620_v27 = vld [vmem:[#allocation40_spill] sm:$0xff]  ;;  %v5915_v49 = vadd.f32 %v1680_v33, %v5718_v25 }
 0x41e   :  { %v1658_v24 = vmul.f32 %v7617_v26, %v1594_v50  ;;  %v5900_v0 = vmul.f32 %v7618_v6, %v1531_v11  ;;  %v1596_v63 = vadd.f32 %v1564_v2, %v1532_v48  ;;  %v1561_v9 = vmul.f32 %v5355_v56, %v1525_v16  ;;  %v7622_v26 = vld [vmem:[#allocation98_spill] sm:$0xff]  ;;  %v7623_v2 = vld [vmem:[#allocation29_spill] sm:$0xff]  ;;  %v7624_v53 = vld [vmem:[#allocation39_spill] sm:$0xff] }
 0x41f   :  { %v1589_v40 = vadd.f32 %v5727_v36, %v1525_v16  ;;  %v1037_v41 = vpop.permute.xlu0 %1036  ;;  %v981_v13 = vpop.permute.xlu1 %980  ;;  %v1742_v14 = vmul.f32 %v7619_v8, %v1678_v15  ;;  %v1682_v23 = vadd.f32 %v1650_v34, %v1594_v50  ;;  %v1568_v5 = vmul.f32 %v7620_v27, %v1532_v48  ;;  %v7625_v34 = vld [vmem:[#allocation36_spill] sm:$0xff]  ;;  %v7626_v8 = vld [vmem:[#allocation31_spill] sm:$0xff]  ;;  %v7627_v33 = vld [vmem:[#allocation61_spill] sm:$0xff] }
 0x420   :  { %v1660_v47 = vmul.f32 %v7621_v39, %v1596_v63  ;;  %v1536_v12 = vmul.f32 %v7622_v26, %v1037_v41  ;;  %v1527_v6 = vmul.f32 %v7604_v61, %v981_v13  ;;  %v5911_v19 = vmul.f32 %v7623_v2, %v1590_v28 }
 0x421   :  { %v1677_v56 = vadd.f32 %v1589_v40, %v5727_v36  ;;  %v5918_v16 = vmul.f32 %v7624_v53, %v1682_v23  ;;  %v5925_v41 = vadd.f32 %v1675_v55, %v5697_v22  ;;  %v5928_v61 = vadd.f32 %v1561_v9, %v5838_v30 }
 0x422   :  { %v1572_v50 = vmul.f32 %v7625_v34, %v1536_v12  ;;  %v5921_v48 = vadd.f32 %v1568_v5, %v1536_v12  ;;  %v1563_v27 = vmul.f32 %v7626_v8, %v1527_v6  ;;  %v1758_v25 = vadd.f32 %v1678_v15, %v5707_v37  ;;  %v7631_v34 = vld [vmem:[#allocation30_spill] sm:$0xff] }
 0x423   :  { %v1025_v28 = vpop.permute.xlu0 %1024  ;;  %v1017_v13 = vpop.permute.xlu1 %1016  ;;  %v1741_v39 = vmul.f32 %v7627_v33, %v1677_v56  ;;  %v5932_v2 = vadd.f32 %v1652_v62, %v1596_v63  ;;  %v5935_v53 = vmul.f32 %v5405_v1, %v1589_v40  ;;  %v5945_v37 = vadd.f32 %v5711_v31, %v1682_v23  ;;  %v7628_v62 = vld [vmem:[#allocation51_spill] sm:$0xff]  ;;  %v7629_v1 = vld [vmem:[#allocation44_spill] sm:$0xff] }
 0x424   :  { %v1604_v12 = vadd.f32 %v1572_v50, %v5760_v46  ;;  %v1664_v22 = vmul.f32 %v5331_v35, %v5921_v48  ;;  %v5940_v55 = vadd.f32 %v1563_v27, %v1531_v11  ;;  %v1534_v30 = vmul.f32 %v5700_v60, %v1025_v28  ;;  %v7630_v35 = vld [vmem:[#allocation46_spill] sm:$0xff] }
 0x425   :  { %v1533_v9 = vmul.f32 %v7613_v3, %v1017_v13  ;;  %v5949_v15 = vmul.f32 %v7628_v62, %v5932_v2  ;;  %v1591_v5 = vadd.f32 %v1559_v7, %v1527_v6 }
 0x426   :  { %v1668_v63 = vmul.f32 %v7629_v1, %v1604_v12  ;;  %v1692_v40 = vadd.f32 %v1660_v47, %v1604_v12  ;;  %v1696_v46 = vadd.f32 %v1664_v22, %v5811_v10  ;;  %v1659_v11 = vmul.f32 %v7630_v35, %v5940_v55  ;;  %v7632_v47 = vld [vmem:[#allocation52_spill] sm:$0xff]  ;;  %v7634_v22 = vld [vmem:[#allocation50_spill] sm:$0xff] }
 0x427   :  { %v1570_v50 = vmul.f32 %v7631_v34, %v1534_v30  ;;  %v5957_v3 = vadd.f32 %v5871_v45, %v1534_v30  ;;  %v5960_v31 = vadd.f32 %v5862_v51, %v1533_v9  ;;  %v1149_v23 = vpop.permute.xlu0 %1148  ;;  %v1041_v8 = vpop.permute.xlu1 %1040  ;;  %v1569_v28 = vmul.f32 %v7632_v47, %v1533_v9  ;;  %v7633_v45 = vld [vmem:[#allocation59_spill] sm:$0xff]  ;;  %v7635_v9 = vld [vmem:[#allocation34_spill] sm:$0xff] }
 0x428   :  { %v5963_v27 = vadd.f32 %v1668_v63, %v5846_v38  ;;  %v1772_v10 = vadd.f32 %v1740_v4, %v1692_v40  ;;  %v1537_v13 = vmul.f32 %v7622_v26, %v1041_v8  ;;  %v1776_v51 = vadd.f32 %v1744_v54, %v1696_v46 }
 0x429   :  { %v1602_v7 = vadd.f32 %v1570_v50, %v5725_v18  ;;  %v1662_v6 = vmul.f32 %v5293_v59, %v5957_v3  ;;  %v1661_v33 = vmul.f32 %v7633_v45, %v5960_v31  ;;  %v1788_v12 = vmul.f32 %v1756_v17, %v1149_v23  ;;  %v7636_v18 = vld [vmem:[#allocation75_spill] sm:$0xff] }
 0x42a   :  { %v1573_v30 = vmul.f32 %v7634_v22, %v1537_v13  ;;  %v5973_v62 = vadd.f32 %v1569_v28, %v1537_v13  ;;  %v1757_v38 = vadd.f32 %v1677_v56, %v5727_v36  ;;  %v1804_v63 = vmul.f32 %v1772_v10, %v7636_v18  ;;  %v7638_v28 = vld [vmem:[#allocation43_spill] sm:$0xff]  ;;  %v7642_v22 = vld [vmem:[#allocation54_spill] sm:$0xff] }
 0x42b   :  { %v1666_v4 = vmul.f32 %v7635_v9, %v1602_v7  ;;  %v1690_v1 = vadd.f32 %v1658_v24, %v1602_v7  ;;  %v1694_v26 = vadd.f32 %v1662_v6, %v5785_v52  ;;  %v1157_v40 = vpop.permute.xlu0 %1156  ;;  %v1029_v59 = vpop.permute.xlu1 %1028  ;;  %v1679_v17 = vadd.f32 %v5709_v57, %v1591_v5  ;;  %v7639_v7 = vld [vmem:[#allocation78_spill] sm:$0xff]  ;;  %v7640_v6 = vld [vmem:[#allocation101_spill] sm:$0xff]  ;;  %v7643_v9 = vld [vmem:[#allocation84_spill] sm:$0xff] }
 0x42c   :  { %v1605_v35 = vadd.f32 %v1573_v30, %v5742_v44  ;;  %v1665_v54 = vmul.f32 %v5413_v21, %v5973_v62  ;;  %v5985_v46 = vadd.f32 %v5762_v29, %v5928_v61  ;;  %v1535_v52 = vmul.f32 %v5700_v60, %v1029_v59  ;;  %v7637_v44 = vld [vmem:[#allocation53_spill] sm:$0xff]  ;;  %v7646_v18 = vld [vmem:[#allocation111_spill] sm:$0xff] }
 0x42d   :  { %v1698_v36 = vadd.f32 %v1666_v4, %v5835_v42  ;;  %v1774_v24 = vadd.f32 %v1742_v14, %v1694_v26  ;;  %v1770_v56 = vadd.f32 %v5865_v58, %v1690_v1  ;;  %v5991_v34 = vmul.f32 %v5335_v43, %v1591_v5  ;;  %v7644_v4 = vld [vmem:[#allocation74_spill] sm:$0xff] }
 0x42e   :  { %v1669_v50 = vmul.f32 %v7637_v44, %v1605_v35  ;;  %v1693_v23 = vadd.f32 %v1661_v33, %v1605_v35  ;;  %v5995_v21 = vadd.f32 %v1665_v54, %v5800_v20  ;;  %v1827_v8 = vsel %vm618_vm3, %v1788_v12, 0.0  ;;  %v7641_v33 = vld [vmem:[#allocation48_spill] sm:$0xff] }
 0x42f   :  { %v1899_v47 = vsel %vm618_vm3, %v1804_v63, 0.0  ;;  %v1571_v42 = vmul.f32 %v7638_v28, %v1535_v52  ;;  %v6001_v14 = vadd.f32 %v5900_v0, %v1535_v52  ;;  %v1141_v60 = vpop.permute.xlu0 %1140  ;;  %v1153_v58 = vpop.permute.xlu1 %1152  ;;  %v1790_v5 = vmul.f32 %v1758_v25, %v1157_v40  ;;  %v7645_v25 = vld [vmem:[#allocation45_spill] sm:$0xff] }
 0x430   :  { %v6004_v43 = vadd.f32 %v1669_v50, %v5844_v32  ;;  %v1773_v10 = vadd.f32 %v1741_v39, %v1693_v23  ;;  %v1789_v13 = vmul.f32 %v1757_v38, %v1153_v58  ;;  %v1806_v20 = vmul.f32 %v1774_v24, %v7639_v7  ;;  %v7647_v50 = vld [vmem:[#allocation68_spill] sm:$0xff] }
 0x431   :  { %v1603_v45 = vadd.f32 %v1571_v42, %v7640_v6  ;;  %v1663_v12 = vmul.f32 %v7641_v33, %v6001_v14  ;;  %v1743_v30 = vmul.f32 %v7642_v22, %v1679_v17  ;;  %v1786_v0 = vmul.f32 %v7643_v9, %v1141_v60  ;;  %v7648_v42 = vld [vmem:[#allocation83_spill] sm:$0xff]  ;;  %v7649_v58 = vld [vmem:[#allocation72_spill] sm:$0xff] }
 0x432   :  { %v1805_v1 = vmul.f32 %v1773_v10, %v7644_v4  ;;  %v1828_v26 = vsel %vm618_vm3, %v1789_v13, 0.0  ;;  %v1759_v32 = vadd.f32 %v1679_v17, %v5709_v57  ;;  %v1778_v44 = vadd.f32 %v5918_v16, %v1698_v36  ;;  %v7650_v13 = vld [vmem:[#allocation81_spill] sm:$0xff] }
 0x433   :  { %v1667_v39 = vmul.f32 %v7645_v25, %v1603_v45  ;;  %v1691_v38 = vadd.f32 %v1659_v11, %v1603_v45  ;;  %v1695_v63 = vadd.f32 %v1663_v12, %v7646_v18  ;;  %v1829_v40 = vadd.f32 %v1828_v26, %v1827_v8  ;;  %v1165_v59 = vpop.permute.xlu0 %1164  ;;  %v1161_v35 = vpop.permute.xlu1 %1160  ;;  %v7651_v16 = vld [vmem:[#allocation77_spill] sm:$0xff] }
 0x434   :  { %v1900_v54 = vsel %vm618_vm3, %v1805_v1, 0.0  ;;  %v1792_v24 = vmul.f32 %v5915_v49, %v1165_v59  ;;  %v1791_v52 = vmul.f32 %v1759_v32, %v1161_v35  ;;  %v1836_v11 = vsel %vm618_vm3, %v1790_v5, 0.0  ;;  %v7654_v59 = vld [vmem:[#allocation80_spill] sm:$0xff] }
 0x435   :  { %v6021_v23 = vadd.f32 %v1667_v39, %v7647_v50  ;;  %v1830_v28 = vrot.slane %v1829_v40, 4  ;;  %v1901_v57 = vadd.f32 %v1900_v54, %v1899_v47  ;;  %v1775_v17 = vadd.f32 %v1743_v30, %v1695_v63  ;;  %v7653_v63 = vld [vmem:[#allocation87_spill] sm:$0xff] }
 0x436   :  { %v6025_v60 = vmul.f32 %v1776_v51, %v7648_v42  ;;  %v1837_v8 = vsel %vm618_vm3, %v1791_v52, 0.0  ;;  %v1771_v10 = vadd.f32 %v7649_v58, %v1691_v38  ;;  %v6030_v49 = vmul.f32 %v1770_v56, %v7650_v13  ;;  %v7656_v13 = vld [vmem:[#allocation94_spill] sm:$0xff] }
 0x437   :  { %v1831_v7 = vadd.f32 %v1830_v28, %v1829_v40  ;;  %v1807_v36 = vmul.f32 %v1775_v17, %v7651_v16  ;;  %v1838_v6 = vadd.f32 %v1837_v8, %v1836_v11  ;;  %v1173_v45 = vpop.permute.xlu0 %1172  ;;  %v1145_v33 = vpop.permute.xlu1 %1144  ;;  %v1908_v47 = vsel %vm618_vm3, %v1806_v20, 0.0 }
 0x438   :  { %v1818_v5 = vsel %vm618_vm3, %v1786_v0, 0.0  ;;  %v1845_v51 = vsel %vm618_vm3, %v1792_v24, 0.0  ;;  %v1787_v12 = vmul.f32 %v5925_v41, %v1145_v33  ;;  %v1902_v30 = vrot.slane %v1901_v57, 4  ;;  %v7652_v41 = vld [vmem:[#allocation62_spill] sm:$0xff] }
 0x439   :  { %v1832_v22 = vrot.slane %v1831_v7, 2  ;;  %v1839_v9 = vrot.slane %v1838_v6, 4  ;;  %v1909_v56 = vsel %vm618_vm3, %v1807_v36, 0.0  ;;  %v1794_v1 = vmul.f32 %v5945_v37, %v1173_v45  ;;  %v7655_v37 = vld [vmem:[#allocation103_spill] sm:$0xff] }
 0x43a   :  { %v1910_v4 = vadd.f32 %v1909_v56, %v1908_v47  ;;  %v1819_v26 = vsel %vm618_vm3, %v1787_v12, 0.0  ;;  %v1780_v32 = vadd.f32 %v5949_v15, %v5963_v27  ;;  %v1745_v18 = vmul.f32 %v7652_v41, %v5985_v46  ;;  %v7661_v12 = vld [vmem:[#allocation70_spill] sm:$0xff]  ;;  %v7663_v56 = vld [vmem:[#allocation73_spill] sm:$0xff]  ;;  %v7665_v41 = vld [vmem:[#allocation107_spill] sm:$0xff] }
 0x43b   :  { %v1833_v20 = vadd.f32 %v1832_v22, %v1831_v7  ;;  %v1840_v25 = vadd.f32 %v1839_v9, %v1838_v6  ;;  %v1820_v0 = vadd.f32 %v1819_v26, %v1818_v5  ;;  %v1181_v39 = vpop.permute.xlu0 %1180  ;;  %v1169_v38 = vpop.permute.xlu1 %1168  ;;  %v6045_v40 = vmul.f32 %v1778_v44, %v7653_v63  ;;  %v7657_v7 = vld [vmem:[#allocation104_spill] sm:$0xff]  ;;  %v7666_v63 = vld [vmem:[#allocation65_spill] sm:$0xff] }
 0x43c   :  { %v6048_v35 = vmul.f32 %v1771_v10, %v7654_v59  ;;  %v1764_v54 = vadd.f32 %v7655_v37, %v5932_v2  ;;  %v1761_v15 = vadd.f32 %v5985_v46, %v5762_v29  ;;  %v1777_v50 = vadd.f32 %v1745_v18, %v5995_v21 }
 0x43d   :  { %v1834_v27 = vrot.slane %v1833_v20, 1  ;;  %v1841_v24 = vrot.slane %v1840_v25, 2  ;;  %v1821_v52 = vrot.slane %v1820_v0, 4  ;;  %v6055_v28 = vadd.f32 %v1902_v30, %v1901_v57  ;;  %v7658_v57 = vld [vmem:[#allocation76_spill] sm:$0xff]  ;;  %v7662_v30 = vld [vmem:[#allocation89_spill] sm:$0xff] }
 0x43e   :  { %v1854_v17 = vsel %vm618_vm3, %v1794_v1, 0.0  ;;  %v1793_v44 = vmul.f32 %v1761_v15, %v1169_v38  ;;  %v1686_v11 = vadd.f32 %v5911_v19, %v5957_v3  ;;  %v1911_v58 = vrot.slane %v1910_v4, 4  ;;  %v7660_v3 = vld [vmem:[#allocation102_spill] sm:$0xff] }
 0x43f   :  { %v1835_v42 = vadd.f32 %v1834_v27, %v1833_v20  ;;  %v1842_v8 = vadd.f32 %v1841_v24, %v1840_v25  ;;  %v1822_v2 = vadd.f32 %v1821_v52, %v1820_v0  ;;  %v1796_v10 = vmul.f32 %v1764_v54, %v1181_v39  ;;  %v1189_v47 = vpop.permute.xlu0 %1188  ;;  %v1177_v19 = vpop.permute.xlu1 %1176  ;;  %v7664_v39 = vld [vmem:[#allocation56_spill] sm:$0xff]  ;;  %v7667_v54 = vld [vmem:[#allocation82_spill] sm:$0xff] }
 0x440   :  { %v6061_v29 = vmul.f32 %v1780_v32, %v7656_v13  ;;  %v1846_v46 = vsel %vm618_vm3, %v1793_v44, 0.0  ;;  %v1750_v21 = vmul.f32 %v7657_v7, %v1686_v11  ;;  %v7659_v16 = vrot.slane %v7658_v57, 1  ;;  %v7669_v52 = vld [vmem:[#allocation108_spill] sm:$0xff] }
 0x441   :  { %v1843_v6 = vrot.slane %v1842_v8, 1  ;;  %v1823_v45 = vrot.slane %v1822_v2, 2  ;;  %v1847_v33 = vadd.f32 %v1846_v46, %v1845_v51  ;;  %v1766_v5 = vadd.f32 %v7660_v3, %v1686_v11 }
 0x442   :  { %v2001_v36 = vadd.f32 %v7659_v16, %v1835_v42  ;;  %v1782_v22 = vadd.f32 %v1750_v21, %v7661_v12  ;;  %v1683_v9 = vadd.f32 %v7662_v30, %v5940_v55  ;;  %v1688_v1 = vadd.f32 %v7663_v56, %v5921_v48  ;;  %v7676_v30 = vld [vmem:[#allocation86_spill] sm:$0xff] }
 0x443   :  { %v1844_v26 = vadd.f32 %v1843_v6, %v1842_v8  ;;  %v6073_v32 = vadd.f32 %v1911_v58, %v1910_v4  ;;  %v1824_v20 = vadd.f32 %v1823_v45, %v1822_v2  ;;  %v1848_v25 = vrot.slane %v1847_v33, 4  ;;  %v1185_v58 = vpop.permute.xlu1 %1184  ;;  %v1197_v45 = vpop.permute.xlu0 %1196 }
 0x444   :  { %v1863_v0 = vsel %vm618_vm3, %v1796_v10, 0.0  ;;  %v1798_v51 = vmul.f32 %v1766_v5, %v1189_v47  ;;  %v1747_v38 = vmul.f32 %v7664_v39, %v1683_v9  ;;  %v1763_v18 = vadd.f32 %v7665_v41, %v1683_v9  ;;  %v7670_v10 = vld [vmem:[#allocation100_spill] sm:$0xff]  ;;  %v7675_v5 = vld [vmem:[#allocation110_spill] sm:$0xff] }
 0x445   :  { %v2095_v59 = vmul.f32 %v7666_v63, %v2001_v36  ;;  %v1825_v37 = vrot.slane %v1824_v20, 1  ;;  %v1809_v55 = vmul.f32 %v1777_v50, %v7667_v54  ;;  %v1849_v15 = vadd.f32 %v1848_v25, %v1847_v33  ;;  %v7672_v33 = vld [vmem:[#allocation66_spill] sm:$0xff] }
 0x446   :  { %v7668_v48 = vrot.slane %v7658_v57, 2  ;;  %v1779_v4 = vadd.f32 %v1747_v38, %v6021_v23  ;;  %v1795_v24 = vmul.f32 %v1763_v18, %v1177_v19  ;;  %v1752_v44 = vmul.f32 %v7669_v52, %v1688_v1  ;;  %v7671_v23 = vld [vmem:[#allocation71_spill] sm:$0xff]  ;;  %v7673_v19 = vld [vmem:[#allocation109_spill] sm:$0xff]  ;;  %v7678_v18 = vld [vmem:[#allocation112_spill] sm:$0xff] }
 0x447   :  { %v1913_v11 = vrot.slane %v6073_v32, 2  ;;  %v1826_v42 = vadd.f32 %v1825_v37, %v1824_v20  ;;  %v1850_v8 = vrot.slane %v1849_v15, 2  ;;  %v1685_v2 = vadd.f32 %v5935_v53, %v5960_v31  ;;  %v7674_v53 = vld [vmem:[#allocation63_spill] sm:$0xff]  ;;  %v7677_v20 = vld [vmem:[#allocation57_spill] sm:$0xff]  ;;  %v1193_v41 = vpop.permute.xlu1 %1192  ;;  %v7679_v54 = vld [vmem:[#allocation106_spill] sm:$0xff] }
 0x448   :  { %v2002_v27 = vadd.f32 %v7668_v48, %v1844_v26  ;;  %v6088_v50 = vmul.f32 %v1782_v22, %v7670_v10  ;;  %v1872_v13 = vsel %vm618_vm3, %v1798_v51, 0.0  ;;  %v1855_v46 = vsel %vm618_vm3, %v1795_v24, 0.0  ;;  %v7681_v24 = vld [vmem:[#allocation69_spill] sm:$0xff] }
 0x449   :  { %v1784_v7 = vadd.f32 %v1752_v44, %v7671_v23  ;;  %v2134_v21 = vrot.slane %v2095_v59, 7  ;;  %v2000_v16 = vadd.f32 %v7658_v57, %v1826_v42  ;;  %v1851_v36 = vadd.f32 %v1850_v8, %v1849_v15 }
 0x44a   :  { %v1856_v6 = vadd.f32 %v1855_v46, %v1854_v17  ;;  %v2096_v47 = vmul.f32 %v7672_v33, %v2002_v27  ;;  %v1768_v3 = vadd.f32 %v7673_v19, %v1688_v1  ;;  %v1749_v31 = vmul.f32 %v7674_v53, %v1685_v2  ;;  %v7684_v46 = vld [vmem:[#allocation93_spill] sm:$0xff]  ;;  %v7685_v53 = vld [vmem:[#allocation114_spill] sm:$0xff] }
 0x44b   :  { %v1765_v12 = vadd.f32 %v7675_v5, %v1685_v2  ;;  %v1852_v22 = vrot.slane %v1851_v36, 1  ;;  %v1811_v9 = vmul.f32 %v1779_v4, %v7676_v30  ;;  %v1687_v26 = vadd.f32 %v5991_v34, %v6001_v14  ;;  %v7680_v34 = vld [vmem:[#allocation113_spill] sm:$0xff]  ;;  %v1201_v19 = vpop.permute.xlu1 %1200  ;;  %v7686_v5 = vld [vmem:[#allocation115_spill] sm:$0xff] }
 0x44c   :  { %v1857_v56 = vrot.slane %v1856_v6, 4  ;;  %v2094_v25 = vmul.f32 %v7677_v20, %v2000_v16  ;;  %v1800_v17 = vmul.f32 %v1768_v3, %v1197_v45  ;;  %v1781_v51 = vadd.f32 %v1749_v31, %v6004_v43  ;;  %v7687_v30 = vld [vmem:[#allocation67_spill] sm:$0xff] }
 0x44d   :  { %v1797_v39 = vmul.f32 %v1765_v12, %v1185_v58  ;;  %v1853_v38 = vadd.f32 %v1852_v22, %v1851_v36  ;;  %v1751_v63 = vmul.f32 %v7678_v18, %v1687_v26  ;;  %v1918_v59 = vsel %vm618_vm3, %v1809_v55, 0.0  ;;  %v7682_v55 = vld [vmem:[#allocation60_spill] sm:$0xff]  ;;  %v7689_v20 = vld [vmem:[#allocation23_spill] sm:$0xff] }
 0x44e   :  { %v1858_v1 = vadd.f32 %v1857_v56, %v1856_v6  ;;  %v2137_v37 = vrot.slane %v2096_v47, 6  ;;  %v6106_v15 = vmul.f32 %v1784_v7, %v7679_v54  ;;  %v1767_v14 = vadd.f32 %v7680_v34, %v1687_v26 }
 0x44f   :  { %v1864_v48 = vsel %vm618_vm3, %v1797_v39, 0.0  ;;  %v1783_v43 = vadd.f32 %v1751_v63, %v7681_v24  ;;  %v1917_v52 = vsel %vm618_vm3, %v6025_v60, 0.0  ;;  %v1881_v44 = vsel %vm618_vm3, %v1800_v17, 0.0  ;;  %v2055_v39 = vpop.permute.xlu0 %2054 }
 0x450   :  { %v1859_v27 = vrot.slane %v1858_v1, 2  ;;  %v1865_v4 = vadd.f32 %v1864_v48, %v1863_v0  ;;  %v1799_v42 = vmul.f32 %v1767_v14, %v1193_v41  ;;  %v1919_v8 = vadd.f32 %v1918_v59, %v1917_v52 }
 0x451   :  { %v1657_v58 = vmul.f32 %v7682_v55, %v5928_v61  ;;  %v7683_v2 = vrot.slane %v7658_v57, 3  ;;  %v1813_v23 = vmul.f32 %v1781_v51, %v7684_v46  ;;  %v2136_v0 = vsel %vm2135_vm8, %v2134_v21, %v2094_v25 }
 0x452   :  { %v1860_v7 = vadd.f32 %v1859_v27, %v1858_v1  ;;  %v1873_v16 = vsel %vm618_vm3, %v1799_v42, 0.0  ;;  %v1920_v36 = vrot.slane %v1919_v8, 4  ;;  %v1927_v6 = vsel %vm618_vm3, %v1811_v9, 0.0  ;;  %v7688_v9 = vld [vmem:[#allocation99_spill] sm:$0xff] }
 0x453   :  { %v2003_v10 = vadd.f32 %v7683_v2, %v1853_v38  ;;  %v1689_v60 = vadd.f32 %v1657_v58, %v5973_v62  ;;  %v1866_v45 = vrot.slane %v1865_v4, 4  ;;  %v1874_v47 = vadd.f32 %v1873_v16, %v1872_v13 }
 0x454   :  { %v1861_v33 = vrot.slane %v1860_v7, 1  ;;  %v1926_v61 = vsel %vm618_vm3, %v6045_v40, 0.0  ;;  %v1921_v3 = vadd.f32 %v1920_v36, %v1919_v8  ;;  %v6131_v62 = vsel %vm2138_vm9, %v2137_v37, %v2136_v0 }
 0x455   :  { %v1753_v31 = vmul.f32 %v7685_v53, %v1689_v60  ;;  %v1769_v12 = vadd.f32 %v7686_v5, %v1689_v60  ;;  %v1928_v21 = vadd.f32 %v1927_v6, %v1926_v61  ;;  %v6128_v56 = vmul.f32 %v7687_v30, %v2003_v10  ;;  %v2069_v10 = vpop.permute.xlu0 %2068  ;;  %v7691_v6 = vld [vmem:[#allocation105_spill] sm:$0xff] }
 0x456   :  { %v1862_v22 = vadd.f32 %v1861_v33, %v1860_v7  ;;  %v6134_v26 = vmul.f32 %v1783_v43, %v7688_v9  ;;  %v1922_v13 = vrot.slane %v1921_v3, 2  ;;  %v1867_v51 = vadd.f32 %v1866_v45, %v1865_v4  ;;  %v6147_v43 = vpop.permute.xlu1 %2062  ;;  %v7696_v9 = vld [vmem:[#allocation58_spill] sm:$0xff] }
 0x457   :  { %v1785_v25 = vadd.f32 %v1753_v31, %v7689_v20  ;;  %v1801_v40 = vmul.f32 %v1769_v12, %v1201_v19  ;;  %v1929_v17 = vrot.slane %v1928_v21, 4  ;;  %v1875_v38 = vrot.slane %v1874_v47, 4 }
 0x458   :  { %v1891_v1 = vsel %vm618_vm3, %v6048_v35, 0.0  ;;  %v1904_v41 = vrot.slane %v6055_v28, 2  ;;  %v1923_v18 = vadd.f32 %v1922_v13, %v1921_v3  ;;  %v1890_v37 = vsel %vm618_vm3, %v6030_v49, 0.0 }
 0x459   :  { %v1882_v63 = vsel %vm618_vm3, %v1801_v40, 0.0  ;;  %v1930_v59 = vadd.f32 %v1929_v17, %v1928_v21  ;;  %v2140_v54 = vrot.slane %v6128_v56, 5  ;;  %v1892_v34 = vadd.f32 %v1891_v1, %v1890_v37  ;;  %v7697_v17 = vld [vmem:[#allocation64_spill] sm:$0xff]  ;;  %v2071_v1 = vpop.permute.xlu0 %2070 }
 0x45a   :  { %v1883_v48 = vadd.f32 %v1882_v63, %v1881_v44  ;;  %v1905_v14 = vadd.f32 %v1904_v41, %v6055_v28  ;;  %v7690_v27 = vrot.slane %v7658_v57, 4  ;;  %v1924_v24 = vrot.slane %v1923_v18, 1  ;;  %v2057_v21 = vpop.permute.xlu1 %2056 }
 0x45b   :  { %v1931_v35 = vrot.slane %v1930_v59, 2  ;;  %v1914_v52 = vadd.f32 %v1913_v11, %v6073_v32  ;;  %v1876_v42 = vadd.f32 %v1875_v38, %v1874_v47  ;;  %v1893_v49 = vrot.slane %v1892_v34, 4  ;;  %v7692_v47 = vld [vmem:[#allocation79_spill] sm:$0xff] }
 0x45c   :  { %v2004_v4 = vadd.f32 %v7690_v27, %v1862_v22  ;;  %v1884_v8 = vrot.slane %v1883_v48, 4  ;;  %v1906_v55 = vrot.slane %v1905_v14, 1  ;;  %v1925_v58 = vadd.f32 %v1924_v24, %v1923_v18 }
 0x45d   :  { %v1932_v44 = vadd.f32 %v1931_v35, %v1930_v59  ;;  %v1915_v2 = vrot.slane %v1914_v52, 1  ;;  %v1936_v28 = vsel %vm618_vm3, %v1813_v23, 0.0  ;;  %v1894_v7 = vadd.f32 %v1893_v49, %v1892_v34 }
 0x45e   :  { %v1885_v46 = vadd.f32 %v1884_v8, %v1883_v48  ;;  %v1907_v0 = vadd.f32 %v1906_v55, %v1905_v14  ;;  %v1935_v16 = vsel %vm618_vm3, %v6061_v29, 0.0  ;;  %v6155_v36 = vmul.f32 %v2055_v39, %v2004_v4 }
 0x45f   :  { %v1933_v60 = vrot.slane %v1932_v44, 1  ;;  %v1916_v32 = vadd.f32 %v1915_v2, %v1914_v52  ;;  %v1937_v11 = vadd.f32 %v1936_v28, %v1935_v16  ;;  %v1817_v45 = vmul.f32 %v1785_v25, %v7691_v6 }
 0x460   :  { %v1895_v33 = vrot.slane %v1894_v7, 2  ;;  %v7693_v19 = vrot.slane %v7692_v47, 1  ;;  %v1868_v3 = vrot.slane %v1867_v51, 2  ;;  %v7694_v23 = vrot.slane %v7692_v47, 3 }
 0x461   :  { %v1934_v31 = vadd.f32 %v1933_v60, %v1932_v44  ;;  %v7695_v5 = vrot.slane %v7692_v47, 2  ;;  %v1938_v29 = vrot.slane %v1937_v11, 4  ;;  %v1886_v22 = vrot.slane %v1885_v46, 2 }
 0x462   :  { %v2009_v61 = vadd.f32 %v7693_v19, %v1907_v0  ;;  %v2011_v53 = vadd.f32 %v7694_v23, %v1925_v58  ;;  %v1896_v30 = vadd.f32 %v1895_v33, %v1894_v7  ;;  %v1869_v20 = vadd.f32 %v1868_v3, %v1867_v51  ;;  %v2059_v58 = vpop.permute.xlu1 %2058  ;;  %v2073_v23 = vpop.permute.xlu0 %2072 }
 0x463   :  { %v2010_v12 = vadd.f32 %v7695_v5, %v1916_v32  ;;  %v2143_v25 = vrot.slane %v6155_v36, 4  ;;  %v1939_v38 = vadd.f32 %v1938_v29, %v1937_v11  ;;  %v1944_v63 = vsel %vm618_vm3, %v6088_v50, 0.0 }
 0x464   :  { %v2103_v13 = vmul.f32 %v7696_v9, %v2009_v61  ;;  %v2105_v40 = vmul.f32 %v2069_v10, %v2011_v53  ;;  %v1897_v41 = vrot.slane %v1896_v30, 1  ;;  %v1870_v18 = vrot.slane %v1869_v20, 1 }
 0x465   :  { %v2104_v39 = vmul.f32 %v7697_v17, %v2010_v12  ;;  %v1945_v59 = vsel %vm618_vm3, %v6134_v26, 0.0  ;;  %v7698_v37 = vrot.slane %v7692_v47, 4  ;;  %v1940_v34 = vrot.slane %v1939_v38, 2 }
 0x466   :  { %v2155_v48 = vrot.slane %v2103_v13, 7  ;;  %v1946_v14 = vadd.f32 %v1945_v59, %v1944_v63  ;;  %v1898_v27 = vadd.f32 %v1897_v41, %v1896_v30  ;;  %v1871_v4 = vadd.f32 %v1870_v18, %v1869_v20  ;;  %v2061_v29 = vpop.permute.xlu1 %2060 }
 0x467   :  { %v2012_v51 = vadd.f32 %v7698_v37, %v1934_v31  ;;  %v1877_v24 = vrot.slane %v1876_v42, 2  ;;  %v1887_v35 = vadd.f32 %v1886_v22, %v1885_v46  ;;  %v2157_v8 = vrot.slane %v2104_v39, 6 }
 0x468   :  { %v1941_v49 = vadd.f32 %v1940_v34, %v1939_v38  ;;  %v1947_v55 = vrot.slane %v1946_v14, 4  ;;  %v2008_v50 = vadd.f32 %v7692_v47, %v1898_v27  ;;  %v7699_v44 = vrot.slane %v7658_v57, 5 }
 0x469   :  { %v2106_v52 = vmul.f32 %v2071_v1, %v2012_v51  ;;  %v1878_v2 = vadd.f32 %v1877_v24, %v1876_v42  ;;  %v1888_v28 = vrot.slane %v1887_v35, 1  ;;  %v1953_v0 = vsel %vm618_vm3, %v6106_v15, 0.0 }
 0x46a   :  { %v2005_v26 = vadd.f32 %v7699_v44, %v1871_v4  ;;  %v1942_v10 = vrot.slane %v1941_v49, 1  ;;  %v1948_v7 = vadd.f32 %v1947_v55, %v1946_v14  ;;  %v1954_v16 = vsel %vm618_vm3, %v1817_v45, 0.0 }
 0x46b   :  { %v2102_v46 = vmul.f32 %v6147_v43, %v2008_v50  ;;  %v1879_v32 = vrot.slane %v1878_v2, 1  ;;  %v1889_v11 = vadd.f32 %v1888_v28, %v1887_v35  ;;  %v2161_v6 = vrot.slane %v2106_v52, 4 }
 0x46c   :  { %v2099_v60 = vmul.f32 %v2057_v21, %v2005_v26  ;;  %v1943_v33 = vadd.f32 %v1942_v10, %v1941_v49  ;;  %v1949_v19 = vrot.slane %v1948_v7, 2  ;;  %v1955_v61 = vadd.f32 %v1954_v16, %v1953_v0 }
 0x46d   :  { %v2159_v3 = vrot.slane %v2105_v40, 5  ;;  %v2156_v42 = vsel %vm2135_vm8, %v2155_v48, %v2102_v46  ;;  %v1880_v53 = vadd.f32 %v1879_v32, %v1878_v2  ;;  %v7700_v31 = vrot.slane %v7658_v57, 7  ;;  %v2075_v48 = vpop.permute.xlu0 %2074  ;;  %v7703_v2 = vld [vmem:[#allocation13_spill] sm:$0xff] }
 0x46e   :  { %v2158_v15 = vsel %vm2138_vm9, %v2157_v8, %v2156_v42  ;;  %v7701_v45 = vrot.slane %v7692_v47, 5  ;;  %v1950_v12 = vadd.f32 %v1949_v19, %v1948_v7  ;;  %v1956_v21 = vrot.slane %v1955_v61, 4  ;;  %v2077_v8 = vpop.permute.xlu1 %2076  ;;  %v7705_v7 = vld [vmem:[#allocation12_spill] sm:$0xff] }
 0x46f   :  { %v2007_v5 = vadd.f32 %v7700_v31, %v1889_v11  ;;  %v2160_v22 = vsel %vm2141_vm10, %v2159_v3, %v2158_v15  ;;  %v2146_v30 = vrot.slane %v2099_v60, 3  ;;  %v7702_v9 = vrot.slane %v7658_v57, 6  ;;  %v4214_v31 = vld [vmem:[%s7368_s1 + $0x30] sm:$0xff]  ;;  %v4215_v15 = vld [vmem:[%s7368_s1 + $0x38] sm:$0xff] }
 0x470   :  { %v2013_v43 = vadd.f32 %v7701_v45, %v1943_v33  ;;  %v2162_v17 = vsel %vm2144_vm11, %v2161_v6, %v2160_v22  ;;  %v1951_v39 = vrot.slane %v1950_v12, 1  ;;  %v1957_v38 = vadd.f32 %v1956_v21, %v1955_v61 }
 0x471   :  { %v2006_v13 = vadd.f32 %v7702_v9, %v1880_v53  ;;  %v2101_v20 = vmul.f32 %v2061_v29, %v2007_v5  ;;  %v2142_v1 = vsel %vm2141_vm10, %v2140_v54, %v6131_v62  ;;  %v1982_v41 = vrot.slane %v7692_v47, 6  ;;  %v4213_v53 = vld [vmem:[%s7368_s1 + $0x28] sm:$0xff] }
 0x472   :  { %v2107_v40 = vmul.f32 %v2073_v23, %v2013_v43  ;;  %v1952_v59 = vadd.f32 %v1951_v39, %v1950_v12  ;;  %v1958_v57 = vrot.slane %v1957_v38, 2  ;;  %v2145_v51 = vsel %vm2144_vm11, %v2143_v25, %v2142_v1  ;;  %v4212_v23 = vld [vmem:[%s7368_s1 + $0x20] sm:$0xff]  ;;  %v6236_v9 = vld [vmem:[%s7373_s6 + $0x8] sm:$0x1f] }
 0x473   :  { %v2100_v18 = vmul.f32 %v2059_v58, %v2006_v13  ;;  %v2152_v37 = vrot.slane %v2101_v20, 1  ;;  %v2148_v62 = vsel %vm2147_vm12, %v2146_v30, %v2145_v51  ;;  %v1983_v25 = vrot.slane %v7692_v47, 7  ;;  %v7707_v13 = vld [vmem:[#allocation14_spill] sm:$0xff]  ;;  %v7708_v39 = vld [vmem:[#allocation15_spill] sm:$0xff] }
 0x474   :  { %v2163_v63 = vrot.slane %v2107_v40, 3  ;;  %v2014_v54 = vadd.f32 %v1982_v41, %v1952_v59  ;;  %v1959_v14 = vadd.f32 %v1958_v57, %v1957_v38  ;;  %v4436_v5 = vpack.c.bf16 %v4213_v53, %v4212_v23  ;;  %v4220_v57 = vld [vmem:[%s7370_s3 + $0x40] sm:$0xff]  ;;  %v4221_v51 = vld [vmem:[%s7370_s3 + $0x48] sm:$0xff] }
 0x475   :  { %v2149_v34 = vrot.slane %v2100_v18, 2  ;;  %v4440_v45 = vpack.c.bf16 %v4215_v15, %v4214_v31  ;;  %v2279_v20 = vrot.slane %v6236_v9, %v7707_v13  ;;  %v2285_v38 = vrot.slane %v6236_v9, %v7708_v39 }
 0x476   :  { %v2164_v56 = vsel %vm2147_vm12, %v2163_v63, %v2162_v17  ;;  %v2108_v4 = vmul.f32 %v2075_v48, %v2014_v54  ;;  %v1960_v24 = vrot.slane %v1959_v14, 1  ;;  %4437 = vmatprep.subr.bf16.mxu1 %v4436_v5  ;;  %v4444_v48 = vpack.c.bf16 %v4221_v51, %v4220_v57  ;;  %v4224_v54 = vld [vmem:[%s7370_s3 + $0x60] sm:$0xff] }
 0x477   :  { %v2151_v27 = vsel %vm2150_vm13, %v2149_v34, %v2148_v62  ;;  %4439 = vmatpush3.bf16.msra.mxu1 %v4436_v5  ;;  %v4222_v34 = vld [vmem:[%s7370_s3 + $0x50] sm:$0xff] }
 0x478   :  { %v2154_v35 = vsel %vm2153_vm14, %v2152_v37, %v2151_v27  ;;  %v2165_v36 = vrot.slane %v2108_v4, 2  ;;  %v1961_v52 = vadd.f32 %v1960_v24, %v1959_v14  ;;  %4441 = vmatprep.subr.bf16.mxu1 %v4440_v45  ;;  %4445 = vmatprep.subr.bf16.mxu0 %v4444_v48  ;;  %v4225_v14 = vld [vmem:[%s7370_s3 + $0x68] sm:$0xff]  ;;  %v4226_v4 = vld [vmem:[%s7370_s3 + $0x70] sm:$0xff]  ;;  %v4227_v24 = vld [vmem:[%s7370_s3 + $0x78] sm:$0xff] }
 0x479   :  { %4344 = vmatprep.mubr.msk.f32.mxu0 %vm618_vm3, %v2154_v35  ;;  %v4452_v27 = vpack.c.bf16 %v4225_v14, %v4224_v54  ;;  %v4456_v35 = vpack.c.bf16 %v4227_v24, %v4226_v4 }
 0x47a   :  { %v2166_v49 = vsel %vm2150_vm13, %v2165_v36, %v2164_v56  ;;  %v2015_v55 = vadd.f32 %v1983_v25, %v1961_v52  ;;  %v4223_v56 = vld [vmem:[%s7370_s3 + $0x58] sm:$0xff]  ;;  %v2375_v36 = vld [vmem:[#allocation5 + $0x4] sm:$0xf] }
 0x47b   :  { %4443 = vmatpush3.bf16.msra.mxu1 %v4440_v45  ;;  %v4448_v62 = vpack.c.bf16 %v4223_v56, %v4222_v34  ;;  %v2394_v25 = vrot.slane %v2375_v36, %v7708_v39 }
 0x47c   :  { %v2109_v58 = vmul.f32 %v2077_v8, %v2015_v55  ;;  %v7709_v8 = vld [vmem:[#allocation16_spill] sm:$0xff] }
 0x47e   :  { %v2167_v50 = vrot.slane %v2109_v58, 1 }
 0x480   :  { %v2168_v44 = vsel %vm2153_vm14, %v2167_v50, %v2166_v49  ;;  %v2413_v49 = vrot.slane %v2375_v36, %v7709_v8 }
 0x481   :  { %4345 = vmatmul.mubr.msk.f32.vlgmr.msra.gmra.mrb[2].mxu0 %vm618_vm3, %v2168_v44 }
 0x482   :  { %4447 = vmatpush3.bf16.msra.mxu0 %v4444_v48 }
 0x483   :  { %4449 = vmatprep.subr.bf16.mxu0 %v4448_v62 }
 0x486   :  { %4451 = vmatpush3.bf16.msra.mxu0 %v4448_v62 }
 0x487   :  { %4453 = vmatprep.subr.bf16.mxu0 %v4452_v27 }
 0x48a   :  { %4455 = vmatpush3.bf16.msra.mxu0 %v4452_v27 }
 0x48b   :  { %4457 = vmatprep.subr.bf16.mxu0 %v4456_v35 }
 0x48e   :  { %4459 = vmatpush3.bf16.msra.mxu0 %v4456_v35 }
 0x554   :  { %v4346_v26 = vpop.f32.mrb[2].mxu0 }
 0x555   :  { %v6208_v28 = vadd.f32 %v4346_v26, %v7703_v2  ;;  %v2239_v10 = vpop.f32.mrb[3].mxu0  ;;  %v2388_v2 = vrot.slane %v2375_v36, %v7707_v13 }
 0x556   :  { %v6211_v0 = vadd.f32 %v2239_v10, %v7705_v7 }
 0x557   :  { %7704 = vst [vmem:[#allocation85_spill] sm:$0xff] %v6208_v28  ;;  %v2253_v47 = vsel %vm111_vm0, %v6208_v28, 0.0 }
 0x558   :  { %7706 = vst [vmem:[#allocation92_spill] sm:$0xff] %v6211_v0  ;;  %2254 = vadd.xlane.f32.xlu1 %v2253_v47  ;;  %v2250_v16 = vsel %vm111_vm0, %v6211_v0, 0.0 }
 0x559   :  { %2251 = vadd.xlane.f32.xlu0 %v2250_v16 }
 0x5e5   :  { %v2255_v46 = vpop.xlane.xlu1 %2254 }
 0x5e6   :  { %v2257_v60 = vmul.f32 0.03125, %v2255_v46  ;;  %v2252_v32 = vpop.xlane.xlu0 %2251 }
 0x5e7   :  { %v2256_v11 = vmul.f32 0.03125, %v2252_v32 }
 0x5e8   :  { %v2259_v6 = vsub.f32 %v6208_v28, %v2257_v60 }
 0x5e9   :  { %v2258_v33 = vsub.f32 %v6211_v0, %v2256_v11 }
 0x5ea   :  { %v2261_v3 = vmul.f32 %v2259_v6, %v2259_v6 }
 0x5eb   :  { %v2260_v19 = vmul.f32 %v2258_v33, %v2258_v33 }
 0x5ec   :  { %v2265_v42 = vsel %vm111_vm0, %v2261_v3, 0.0 }
 0x5ed   :  { %v2262_v61 = vsel %vm111_vm0, %v2260_v19, 0.0 }
 0x5ee   :  { %2263 = vadd.xlane.f32.xlu0 %v2262_v61 }
 0x5f2   :  { %2266 = vadd.xlane.f32.xlu0 %v2265_v42 }
 0x67b   :  { %v2264_v43 = vpop.xlane.xlu0 %2263 }
 0x67c   :  { %v2268_v12 = vmul.f32 0.03125, %v2264_v43 }
 0x67e   :  { %v2270_v29 = vadd.f32 1e-05, %v2268_v12 }
 0x67f   :  { %v2267_v21 = vpop.xlane.xlu0 %2266 }
 0x680   :  { %4581 = vrsqrt.f32 %v2270_v29  ;;  %v2269_v22 = vmul.f32 0.03125, %v2267_v21 }
 0x682   :  { %v2271_v30 = vadd.f32 1e-05, %v2269_v22  ;;  %v2440_v22 = vrot.slane %v6236_v9, %v7709_v8 }
 0x684   :  { %4583 = vrsqrt.f32 %v2271_v30 }
 0x68a   :  { %v4582_v40 = vpop.eup %4581 }
 0x68b   :  { %v2274_v17 = vmul.f32 %v4582_v40, %v2258_v33 }
 0x68d   :  { %v2280_v1 = vmul.f32 %v2279_v20, %v2274_v17 }
 0x68e   :  { %v4584_v41 = vpop.eup %4583 }
 0x68f   :  { %v2275_v18 = vmul.f32 %v4584_v41, %v2259_v6  ;;  %v2286_v63 = vadd.f32 %v2285_v38, %v2280_v1  ;;  %v7710_v6 = vld [vmem:[#allocation17_spill] sm:$0xff] }
 0x690   :  { %v2432_v33 = vrot.slane %v2375_v36, %v7710_v6 }
 0x691   :  { %v2281_v59 = vmul.f32 %v2279_v20, %v2275_v18  ;;  %4355 = vmatprep.mubr.msk.f32.mxu1 %vm111_vm0, %v2286_v63 }
 0x693   :  { %v2287_v37 = vadd.f32 %v2285_v38, %v2281_v59 }
 0x695   :  { %4356 = vmatmul.mubr.msk.f32.vlgmr.msra.gmra.mrb[2].mxu1 %vm111_vm0, %v2287_v37 }
 0x768   :  { %v4357_v52 = vpop.f32.mrb[2].mxu1 }
 0x769   :  { %v2379_v55 = vrot.slane %v4357_v52, 2  ;;  %v4233_v58 = vmul.f32 -1.442695, %v4357_v52  ;;  %v2365_v50 = vpop.f32.mrb[3].mxu1  ;;  %v2390_v19 = vmul.f32 %v4357_v52, %v2388_v2 }
 0x76a   :  { %v2378_v44 = vrot.slane %v2365_v50, 2  ;;  %v4232_v26 = vmul.f32 -1.442695, %v2365_v50  ;;  %v2389_v53 = vmul.f32 %v2388_v2, %v2365_v50 }
 0x76b   :  { %v2397_v10 = vmul.f32 %v2394_v25, %v2379_v55  ;;  %4585 = vpow2.f32 %v4233_v58  ;;  %v2416_v7 = vmul.f32 %v2413_v49, %v2379_v55 }
 0x76c   :  { %v2380_v47 = vsel %vm529_vm1, %v2378_v44, %v2379_v55  ;;  %v2384_v16 = vsel %vm529_vm1, 0.0, %v2378_v44  ;;  %4587 = vpow2.f32 %v4232_v26  ;;  %v2550_v26 = vrot.slane %v6236_v9, %v7710_v6 }
 0x76d   :  { %v2395_v46 = vmul.f32 %v2394_v25, %v2384_v16  ;;  %v2396_v60 = vmul.f32 %v2394_v25, %v2380_v47  ;;  %v2414_v32 = vmul.f32 %v2413_v49, %v2384_v16  ;;  %v2415_v11 = vmul.f32 %v2413_v49, %v2380_v47 }
 0x76e   :  { %v2404_v61 = vrot.slane %v2397_v10, 4  ;;  %v2423_v23 = vrot.slane %v2416_v7, 2  ;;  %v2433_v40 = vmul.f32 %v2432_v33, %v2384_v16  ;;  %v2434_v17 = vmul.f32 %v2432_v33, %v2380_v47 }
 0x76f   :  { %v2401_v3 = vrot.slane %v2395_v46, 4  ;;  %v2402_v42 = vrot.slane %v2396_v60, 4  ;;  %v2420_v31 = vrot.slane %v2414_v32, 2  ;;  %v2421_v5 = vrot.slane %v2415_v11, 2 }
 0x771   :  { %v2403_v15 = vsel %vm553_vm2, %v2401_v3, %v2402_v42  ;;  %v2405_v45 = vsel %vm553_vm2, %v2402_v42, %v2404_v61  ;;  %v2422_v29 = vsel %vm529_vm1, %v2420_v31, %v2421_v5  ;;  %v2424_v21 = vsel %vm529_vm1, %v2421_v5, %v2423_v23  ;;  %v7711_v42 = vld [vmem:[#allocation18_spill] sm:$0xff] }
 0x772   :  { %v2408_v43 = vadd.f32 %v2403_v15, %v2389_v53  ;;  %v2409_v12 = vadd.f32 %v2405_v45, %v2390_v19  ;;  %v7712_v45 = vld [vmem:[#allocation19_spill] sm:$0xff] }
 0x774   :  { %v2427_v30 = vadd.f32 %v2422_v29, %v2408_v43  ;;  %v2428_v20 = vadd.f32 %v2424_v21, %v2409_v12  ;;  %v7713_v29 = vld [vmem:[#allocation20_spill] sm:$0xff] }
 0x775   :  { %v4586_v38 = vpop.eup %4585 }
 0x776   :  { %v4588_v1 = vpop.eup %4587  ;;  %v3871_v41 = vadd.f32 1.0, %v4586_v38  ;;  %v2436_v18 = vadd.f32 %v2434_v17, %v2428_v20  ;;  %v2435_v63 = vadd.f32 %v2433_v40, %v2427_v30  ;;  %v7714_v20 = vld [vmem:[#allocation21_spill] sm:$0xff] }
 0x777   :  { %v3870_v59 = vadd.f32 1.0, %v4588_v1 }
 0x778   :  { %4589 = vrcp.f32 %v3871_v41  ;;  %v2441_v37 = vadd.f32 %v2440_v22, %v2435_v63  ;;  %v2442_v57 = vadd.f32 %v2440_v22, %v2436_v18 }
 0x779   :  { %4591 = vrcp.f32 %v3870_v59 }
 0x77a   :  { %v4218_v51 = vmul.f32 -1.442695, %v2441_v37  ;;  %v4219_v48 = vmul.f32 -1.442695, %v2442_v57 }
 0x77c   :  { %4593 = vpow2.f32 %v4218_v51 }
 0x77d   :  { %4595 = vpow2.f32 %v4219_v48 }
 0x782   :  { %v4590_v34 = vpop.eup %4589 }
 0x783   :  { %v4592_v56 = vpop.eup %4591  ;;  %v6280_v62 = vmul.f32 %v4590_v34, %v4357_v52 }
 0x784   :  { %v6282_v54 = vmul.f32 %v4592_v56, %v2365_v50 }
 0x785   :  { %v3887_v14 = vrot.slane %v6280_v62, 1  ;;  %v3888_v35 = vrot.slane %v6280_v62, 2 }
 0x786   :  { %v4594_v27 = vpop.eup %4593  ;;  %3894 = vrot.lane.b32.xlu1 %v6282_v54, %s4755_s0  ;;  %v3880_v25 = vrot.slane %v6282_v54, 1  ;;  %v3881_v52 = vrot.slane %v6282_v54, 2  ;;  %v3882_v49 = vrot.slane %v6282_v54, 3 }
 0x787   :  { %v4596_v4 = vpop.eup %4595  ;;  %3912 = vrot.lane.b32.xlu0 %v3887_v14, %s4755_s0  ;;  %v2449_v24 = vadd.f32 1.0, %v4594_v27 }
 0x788   :  { %v2450_v36 = vadd.f32 1.0, %v4596_v4  ;;  %v7715_v4 = vld [vmem:[#allocation22_spill] sm:$0xff] }
 0x789   :  { %4597 = vrcp.f32 %v2449_v24 }
 0x78a   :  { %3914 = vrot.lane.b32.xlu1 %v3888_v35, %s4755_s0  ;;  %4599 = vrcp.f32 %v2450_v36 }
 0x78b   :  { %3896 = vrot.lane.b32.xlu0 %v3880_v25, %s4755_s0 }
 0x78e   :  { %3898 = vrot.lane.b32.xlu1 %v3881_v52, %s4755_s0 }
 0x78f   :  { %3900 = vrot.lane.b32.xlu0 %v3882_v49, %s4755_s0 }
 0x793   :  { %v4598_v55 = vpop.eup %4597 }
 0x794   :  { %v4600_v58 = vpop.eup %4599  ;;  %v6296_v50 = vmul.f32 %v4598_v55, %v2441_v37 }
 0x795   :  { %v6298_v44 = vmul.f32 %v4600_v58, %v2442_v57 }
 0x796   :  { %4374 = vmatprep.mubr.msk.f32.mxu0 %vm618_vm3, %v6296_v50 }
 0x797   :  { %4375 = vmatmul.mubr.msk.f32.vlgmr.msra.gmra.mrb[4].mxu0 %vm618_vm3, %v6298_v44 }
 0x86a   :  { %v4376_v2 = vpop.f32.mrb[4].mxu0 }
 0x86b   :  { %v2552_v10 = vadd.f32 %v4376_v2, %v2550_v26  ;;  %v6306_v7 = vpop.f32.mrb[5].mxu0  ;;  %v6309_v47 = vrot.slane %v4376_v2, %v7707_v13  ;;  %v2905_v9 = vrot.slane %v4376_v2, %v7708_v39  ;;  %v2917_v61 = vrot.slane %v4376_v2, %v7709_v8 }
 0x86c   :  { %v6312_v16 = vadd.f32 %v2550_v26, %v6306_v7  ;;  %v2929_v3 = vrot.slane %v4376_v2, %v7710_v6  ;;  %v2941_v23 = vrot.slane %v4376_v2, %v7711_v42  ;;  %v2953_v43 = vrot.slane %v4376_v2, %v7712_v45 }
 0x86d   :  { %v2560_v46 = vand.u32 2147483647, %v2552_v10  ;;  %2900 = vbcast.lane.b32.xlu1 %v6309_v47, 328  ;;  %2896 = vbcast.lane.b32.xlu0 %v6309_v47, 320  ;;  %v2965_v21 = vrot.slane %v4376_v2, %v7713_v29  ;;  %v6324_v40 = vrot.slane %v4376_v2, %v7714_v20  ;;  %v2554_v37 = vmax.f32 %v2552_v10, 0.0 }
 0x86e   :  { %v2559_v60 = vand.u32 2147483647, %v6312_v16  ;;  %vm2556_vm1 = vcmp.ne.f32.partialorder %v2552_v10, %v2552_v10  ;;  %v2553_v27 = vmax.f32 %v6312_v16, 0.0  ;;  %vm2555_vm4 = vcmp.ne.f32.partialorder %v6312_v16, %v6312_v16 }
 0x86f   :  { %v2562_v32 = vsub.f32 0.0, %v2560_v46 }
 0x870   :  { %v2561_v11 = vsub.f32 0.0, %v2559_v60 }
 0x871   :  { %v2565_v33 = vmul.f32 1.442695, %v2562_v32  ;;  %2912 = vbcast.lane.b32.xlu1 %v2905_v9, 328  ;;  %2908 = vbcast.lane.b32.xlu0 %v2905_v9, 320 }
 0x872   :  { %v2563_v19 = vmul.f32 1.442695, %v2561_v11 }
 0x873   :  { %4601 = vpow2.f32 %v2565_v33 }
 0x874   :  { %4603 = vpow2.f32 %v2563_v19 }
 0x875   :  { %2924 = vbcast.lane.b32.xlu1 %v2917_v61, 328  ;;  %2920 = vbcast.lane.b32.xlu0 %v2917_v61, 320 }
 0x879   :  { %2936 = vbcast.lane.b32.xlu1 %v2929_v3, 328  ;;  %2932 = vbcast.lane.b32.xlu0 %v2929_v3, 320 }
 0x87d   :  { %v4602_v53 = vpop.eup %4601  ;;  %2948 = vbcast.lane.b32.xlu1 %v2941_v23, 328  ;;  %2944 = vbcast.lane.b32.xlu0 %v2941_v23, 320 }
 0x87e   :  { %v4604_v31 = vpop.eup %4603  ;;  %v2576_v5 = vadd.f32 1.0, %v4602_v53  ;;  %v2579_v12 = vmul.f32 -0.5, %v4602_v53  ;;  %v2582_v17 = vand.u32 2147483647, %v4602_v53 }
 0x87f   :  { %v2567_v15 = vadd.f32 1.0, %v4604_v31  ;;  %v2570_v22 = vmul.f32 -0.5, %v4604_v31  ;;  %v2573_v59 = vand.u32 2147483647, %v4604_v31 }
 0x880   :  { %4605 = vlog2.f32 %v2576_v5  ;;  %v2580_v30 = vadd.f32 1.0, %v2579_v12  ;;  %vm2583_vm15 = vcmp.lt.f32.partialorder %v2582_v17, 0.0004427343  ;;  %v6395_v17 = vrot.slane %v6306_v7, %v7710_v6 }
 0x881   :  { %4607 = vlog2.f32 %v2567_v15  ;;  %2960 = vbcast.lane.b32.xlu1 %v2953_v43, 328  ;;  %2956 = vbcast.lane.b32.xlu0 %v2953_v43, 320  ;;  %v2571_v1 = vadd.f32 1.0, %v2570_v22  ;;  %vm2574_vm2 = vcmp.lt.f32.partialorder %v2573_v59, 0.0004427343 }
 0x882   :  { %v2581_v63 = vmul.f32 %v4602_v53, %v2580_v30 }
 0x883   :  { %v2572_v34 = vmul.f32 %v4604_v31, %v2571_v1 }
 0x885   :  { %2972 = vbcast.lane.b32.xlu1 %v2965_v21, 328  ;;  %2968 = vbcast.lane.b32.xlu0 %v2965_v21, 320 }
 0x889   :  { %2984 = vbcast.lane.b32.xlu1 %v6324_v40, 328  ;;  %2980 = vbcast.lane.b32.xlu0 %v6324_v40, 320 }
 0x88a   :  { %v4606_v38 = vpop.eup %4605 }
 0x88b   :  { %v4608_v41 = vpop.eup %4607  ;;  %v2578_v18 = vmul.f32 0.6931472, %v4606_v38 }
 0x88c   :  { %v2569_v57 = vmul.f32 0.6931472, %v4608_v41 }
 0x88d   :  { %v2584_v51 = vsel %vm2583_vm15, %v2581_v63, %v2578_v18  ;;  %3064 = vbcast.lane.b32.xlu1 %v2905_v9, 344  ;;  %3060 = vbcast.lane.b32.xlu0 %v2905_v9, 336 }
 0x88e   :  { %v2586_v48 = vadd.f32 %v2584_v51, %v2554_v37  ;;  %v2575_v14 = vsel %vm2574_vm2, %v2572_v34, %v2569_v57  ;;  %v6409_v51 = vrot.slane %v6306_v7, %v7711_v42 }
 0x88f   :  { %v2585_v35 = vadd.f32 %v2575_v14, %v2553_v27 }
 0x890   :  { %v6328_v56 = vsel %vm2556_vm1, %v2552_v10, %v2586_v48 }
 0x891   :  { %3072 = vbcast.lane.b32.xlu1 %v2917_v61, 344  ;;  %3068 = vbcast.lane.b32.xlu0 %v2917_v61, 336  ;;  %v2652_v24 = vrot.slane %v6328_v56, %v7715_v4  ;;  %v6338_v36 = vsel %vm2555_vm4, %v6312_v16, %v2585_v35  ;;  %v2645_v52 = vcombine.high %v6328_v56, %v6328_v56  ;;  %v6370_v61 = vld [vmem:[%s7371_s4 + $0x18] sm:$0xff] }
 0x892   :  { %v2596_v55 = vcombine.high %v6338_v36, %v6338_v36  ;;  %v2603_v9 = vrot.slane %v6338_v36, %v7715_v4 }
 0x893   :  { %v2660_v25 = vcombine.high %v2652_v24, %v2652_v24  ;;  %v6343_v49 = vrot.slane %v2652_v24, %v7715_v4  ;;  %v2659_v26 = vrot.slane %v2645_v52, %v7715_v4 }
 0x894   :  { %v2610_v10 = vrot.slane %v2596_v55, %v7715_v4  ;;  %v2611_v15 = vcombine.high %v2603_v9, %v2603_v9 }
 0x895   :  { %3056 = vbcast.lane.b32.xlu1 %v6309_v47, 344  ;;  %3052 = vbcast.lane.b32.xlu0 %v6309_v47, 336  ;;  %v6348_v58 = vrot.slane %v2660_v25, %v7715_v4  ;;  %v2690_v2 = vcombine.high %v6343_v49, %v6343_v49  ;;  %v2661_v16 = vcombine.high %v2659_v26, %v2659_v26 }
 0x896   :  { %v6358_v60 = vrot.slane %v2659_v26, %v7715_v4  ;;  %v2626_v32 = vrot.slane %v2610_v10, %v7715_v4  ;;  %v2612_v19 = vcombine.high %v2610_v10, %v2610_v10  ;;  %v6402_v37 = vrot.slane %v2611_v15, %v7715_v4 }
 0x897   :  { %v2692_v47 = vcombine.high %v6348_v58, %v6348_v58  ;;  %v3157_v46 = vrot.slane %v2690_v2, %v7707_v13  ;;  %v6365_v33 = vrot.slane %v2661_v16, %v7715_v4  ;;  %v6420_v25 = vrot.slane %v6306_v7, %v7707_v13 }
 0x898   :  { %v3165_v53 = vrot.slane %v6358_v60, %v7707_v13  ;;  %v2642_v5 = vcombine.high %v2626_v32, %v2626_v32  ;;  %v6389_v30 = vrot.slane %v2612_v19, %v7715_v4  ;;  %v3133_v41 = vrot.slane %v2626_v32, %v7707_v13 }
 0x899   :  { %3080 = vbcast.lane.b32.xlu1 %v2929_v3, 344  ;;  %3076 = vbcast.lane.b32.xlu0 %v2929_v3, 336  ;;  %v3161_v11 = vrot.slane %v2692_v47, %v7707_v13  ;;  %v3215_v3 = vmul.f32 %v6370_v61, %v3157_v46  ;;  %v2643_v10 = vcombine.high %v6402_v37, %v6402_v37 }
 0x89a   :  { %v3219_v1 = vmul.f32 %v6370_v61, %v3165_v53  ;;  %v3141_v59 = vrot.slane %v2642_v5, %v7707_v13  ;;  %v3137_v14 = vrot.slane %v6389_v30, %v7707_v13  ;;  %v3203_v5 = vmul.f32 %v6370_v61, %v3133_v41 }
 0x89b   :  { %v3217_v12 = vmul.f32 %v6370_v61, %v3161_v11  ;;  %v3268_v38 = vmul.f32 1.442695, %v3215_v3  ;;  %v3129_v32 = vrot.slane %v2643_v10, %v7707_v13  ;;  %v3149_v15 = vrot.slane %v6343_v49, %v7707_v13 }
 0x89c   :  { %v3276_v27 = vmul.f32 1.442695, %v3219_v1  ;;  %v3205_v49 = vmul.f32 %v6370_v61, %v3137_v14 }
 0x89d   :  { %3088 = vbcast.lane.b32.xlu1 %v2941_v23, 344  ;;  %3084 = vbcast.lane.b32.xlu0 %v2941_v23, 336  ;;  %v6376_v23 = vld [vmem:[%s7371_s4 + $0x10] sm:$0xff]  ;;  %v3272_v57 = vmul.f32 1.442695, %v3217_v12  ;;  %4609 = vpow2.f32 %v3268_v38  ;;  %v3153_v38 = vrot.slane %v6348_v58, %v7707_v13 }
 0x89e   :  { %v3214_v31 = vmul.f32 %v6376_v23, %v3157_v46  ;;  %v3216_v22 = vmul.f32 %v6376_v23, %v3161_v11  ;;  %v3218_v63 = vmul.f32 %v6376_v23, %v3165_v53  ;;  %v3206_v24 = vmul.f32 %v6376_v23, %v3141_v59 }
 0x89f   :  { %v3202_v55 = vmul.f32 %v6376_v23, %v3133_v41  ;;  %v3204_v16 = vmul.f32 %v6376_v23, %v3137_v14  ;;  %v3200_v3 = vmul.f32 %v6376_v23, %v3129_v32 }
 0x8a0   :  { %v3266_v18 = vmul.f32 1.442695, %v3214_v31  ;;  %v3270_v48 = vmul.f32 1.442695, %v3216_v22  ;;  %v3274_v52 = vmul.f32 1.442695, %v3218_v63  ;;  %v3207_v22 = vmul.f32 %v6370_v61, %v3141_v59 }
 0x8a1   :  { %3096 = vbcast.lane.b32.xlu1 %v2953_v43, 344  ;;  %3092 = vbcast.lane.b32.xlu0 %v2953_v43, 336  ;;  %v6382_v43 = vrot.slane %v2603_v9, %v7715_v4  ;;  %v3250_v46 = vmul.f32 1.442695, %v3206_v24  ;;  %v6432_v9 = vrot.slane %v6306_v7, %v7708_v39  ;;  %v3242_v11 = vmul.f32 1.442695, %v3202_v55 }
 0x8a2   :  { %4611 = vpow2.f32 %v3266_v18  ;;  %v3246_v31 = vmul.f32 1.442695, %v3204_v16  ;;  %v6443_v39 = vrot.slane %v6306_v7, %v7709_v8  ;;  %v3238_v12 = vmul.f32 1.442695, %v3200_v3 }
 0x8a3   :  { %v2641_v6 = vcombine.high %v6382_v43, %v6382_v43  ;;  %4613 = vpow2.f32 %v3272_v57  ;;  %v2644_v8 = vcombine.high %v6389_v30, %v6389_v30  ;;  %v3244_v63 = vmul.f32 1.442695, %v3203_v5 }
 0x8a4   :  { %4615 = vpow2.f32 %v3270_v48  ;;  %v3252_v58 = vmul.f32 1.442695, %v3207_v22  ;;  %v6485_v16 = vrot.slane %v6306_v7, %v7714_v20 }
 0x8a5   :  { %3104 = vbcast.lane.b32.xlu1 %v2965_v21, 344  ;;  %3100 = vbcast.lane.b32.xlu0 %v2965_v21, 336  ;;  %v3169_v21 = vrot.slane %v6365_v33, %v7707_v13  ;;  %v3125_v35 = vrot.slane %v2641_v6, %v7707_v13  ;;  %4617 = vpow2.f32 %v3276_v27  ;;  %v3145_v6 = vrot.slane %v2644_v8, %v7707_v13 }
 0x8a6   :  { %4619 = vpow2.f32 %v3274_v52  ;;  %v6469_v27 = vrot.slane %v6306_v7, %v7712_v45  ;;  %v3248_v52 = vmul.f32 1.442695, %v3205_v49 }
 0x8a7   :  { %v3220_v34 = vmul.f32 %v6376_v23, %v3169_v21  ;;  %v3198_v2 = vmul.f32 %v6376_v23, %v3125_v35  ;;  %v3199_v53 = vmul.f32 %v6370_v61, %v3125_v35  ;;  %v6449_v1 = vpop.eup %4609  ;;  %v3208_v24 = vmul.f32 %v6376_v23, %v3145_v6 }
 0x8a9   :  { %3112 = vbcast.lane.b32.xlu1 %v6324_v40, 344  ;;  %3108 = vbcast.lane.b32.xlu0 %v6324_v40, 336  ;;  %v3221_v40 = vmul.f32 %v6370_v61, %v3169_v21  ;;  %v3278_v47 = vmul.f32 1.442695, %v3220_v34  ;;  %v3234_v19 = vmul.f32 1.442695, %v3198_v2  ;;  %v3210_v21 = vmul.f32 %v6376_v23, %v3149_v15 }
 0x8aa   :  { %v3236_v41 = vmul.f32 1.442695, %v3199_v53  ;;  %v3201_v34 = vmul.f32 %v6370_v61, %v3129_v32  ;;  %v3211_v2 = vmul.f32 %v6370_v61, %v3149_v15  ;;  %v3213_v32 = vmul.f32 %v6370_v61, %v3153_v38 }
 0x8ab   :  { %v3280_v26 = vmul.f32 1.442695, %v3221_v40  ;;  %v3258_v57 = vmul.f32 1.442695, %v3210_v21  ;;  %v3212_v40 = vmul.f32 %v6376_v23, %v3153_v38  ;;  %v6501_v15 = vrot.slane %v6306_v7, %v7713_v29 }
 0x8ac   :  { %v6454_v18 = vpop.eup %4611  ;;  %v3240_v45 = vmul.f32 1.442695, %v3201_v34  ;;  %v3264_v53 = vmul.f32 1.442695, %v3213_v32 }
 0x8ad   :  { %2840 = vbcast.lane.b32.xlu1 %v6395_v17, 328  ;;  %2836 = vbcast.lane.b32.xlu0 %v6395_v17, 320  ;;  %4621 = vpow2.f32 %v3280_v26  ;;  %v6457_v59 = vpop.eup %4613  ;;  %v3262_v30 = vmul.f32 1.442695, %v3212_v40  ;;  %v3254_v26 = vmul.f32 1.442695, %v3208_v24 }
 0x8ae   :  { %4623 = vpow2.f32 %v3278_v47  ;;  %v6462_v48 = vpop.eup %4615 }
 0x8af   :  { %4625 = vpow2.f32 %v3250_v46  ;;  %v6465_v14 = vpop.eup %4617  ;;  %v3260_v46 = vmul.f32 1.442695, %v3211_v2 }
 0x8b0   :  { %4627 = vpow2.f32 %v3242_v11  ;;  %v6472_v35 = vpop.eup %4619 }
 0x8b1   :  { %2848 = vbcast.lane.b32.xlu0 %v6409_v51, 320  ;;  %2800 = vbcast.lane.b32.xlu1 %v6420_v25, 320  ;;  %4629 = vpow2.f32 %v3234_v19  ;;  %v3209_v19 = vmul.f32 %v6370_v61, %v3145_v6  ;;  %v6527_v49 = vmul.f32 %v6472_v35, %v6454_v18 }
 0x8b2   :  { %4631 = vpow2.f32 %v3246_v31 }
 0x8b3   :  { %4633 = vpow2.f32 %v3238_v12  ;;  %v3256_v20 = vmul.f32 1.442695, %v3209_v19  ;;  %7720 = vst [vmem:[#allocation41_spill] sm:$0xff] %v6527_v49  ;;  %v6587_v19 = vmul.f32 %v6465_v14, %v6449_v1 }
 0x8b4   :  { %4635 = vpow2.f32 %v3258_v57 }
 0x8b5   :  { %2812 = vbcast.lane.b32.xlu0 %v6432_v9, 320  ;;  %2804 = vbcast.lane.b32.xlu1 %v6420_v25, 328  ;;  %4637 = vpow2.f32 %v3236_v41  ;;  %7730 = vst [vmem:[#allocation55_spill] sm:$0xff] %v6587_v19 }
 0x8b6   :  { %4639 = vpow2.f32 %v3244_v63 }
 0x8b7   :  { %v6474_v55 = vpop.eup %4621  ;;  %4641 = vpow2.f32 %v3252_v58 }
 0x8b8   :  { %v6479_v10 = vpop.eup %4623  ;;  %4643 = vpow2.f32 %v3262_v30  ;;  %v2691_v30 = vcombine.high %v6358_v60, %v6358_v60 }
 0x8b9   :  { %2824 = vbcast.lane.b32.xlu0 %v6443_v39, 320  ;;  %2852 = vbcast.lane.b32.xlu1 %v6409_v51, 328  ;;  %v6481_v47 = vpop.eup %4625  ;;  %4645 = vpow2.f32 %v3254_v26  ;;  %v6583_v32 = vmul.f32 %v6479_v10, %v6462_v48 }
 0x8ba   :  { %7716 = vst [vmem:[#allocation88_spill] sm:$0xff] %v6481_v47  ;;  %v6488_v11 = vpop.eup %4627  ;;  %4647 = vpow2.f32 %v3248_v52 }
 0x8bb   :  { %7717 = vst [vmem:[#allocation90_spill] sm:$0xff] %v6488_v11  ;;  %v6491_v3 = vpop.eup %4629  ;;  %4649 = vpow2.f32 %v3260_v46  ;;  %v6505_v12 = vmul.f32 %v6488_v11, %v6481_v47  ;;  %7729 = vst [vmem:[#allocation47_spill] sm:$0xff] %v6583_v32 }
 0x8bc   :  { %v6495_v31 = vpop.eup %4631  ;;  %4651 = vpow2.f32 %v3240_v45  ;;  %v6511_v22 = vmul.f32 %v6491_v3, %v6488_v11 }
 0x8bd   :  { %2860 = vbcast.lane.b32.xlu0 %v6469_v27, 320  ;;  %2816 = vbcast.lane.b32.xlu1 %v6432_v9, 328  ;;  %v6497_v5 = vpop.eup %4633  ;;  %4653 = vpow2.f32 %v3264_v53 }
 0x8be   :  { %v6507_v21 = vpop.eup %4635  ;;  %4655 = vpow2.f32 %v3256_v20  ;;  %v6555_v34 = vmul.f32 %v6497_v5, %v6495_v31 }
 0x8bf   :  { %7718 = vst [vmem:[#allocation95_spill] sm:$0xff] %v6507_v21  ;;  %v6513_v38 = vpop.eup %4637  ;;  %v6519_v7 = vmul.f32 %v6507_v21, %v6481_v47  ;;  %v6523_v29 = vmul.f32 %v6507_v21, %v6454_v18 }
 0x8c0   :  { %v6529_v41 = vpop.eup %4639 }
 0x8c1   :  { %2884 = vbcast.lane.b32.xlu0 %v6485_v16, 320  ;;  %2828 = vbcast.lane.b32.xlu1 %v6443_v39, 328  ;;  %7719 = vst [vmem:[#allocation91_spill] sm:$0xff] %v6519_v7  ;;  %7721 = vst [vmem:[#allocation38_spill] sm:$0xff] %v6529_v41  ;;  %v6531_v8 = vpop.eup %4641  ;;  %v6535_v63 = vmul.f32 %v6523_v29, %v6505_v12  ;;  %v6539_v57 = vmul.f32 %v6519_v7, %v6511_v22 }
 0x8c2   :  { %7722 = vst [vmem:[#allocation24_spill] sm:$0xff] %v6531_v8  ;;  %v6543_v40 = vmul.f32 %v6527_v49, %v6519_v7  ;;  %v6545_v58 = vpop.eup %4643  ;;  %v6569_v2 = vmul.f32 %v6531_v8, %v6529_v41  ;;  %v6579_v46 = vmul.f32 %v6529_v41, %v6513_v38  ;;  %v3173_v41 = vrot.slane %v2691_v30, %v7707_v13 }
 0x8c3   :  { %7723 = vst [vmem:[#allocation26_spill] sm:$0xff] %v6535_v63  ;;  %7725 = vst [vmem:[#allocation25_spill] sm:$0xff] %v6545_v58  ;;  %v6547_v6 = vpop.eup %4645  ;;  %v6565_v26 = vmul.f32 %v6545_v58, %v6462_v48 }
 0x8c4   :  { %7724 = vst [vmem:[#allocation96_spill] sm:$0xff] %v6543_v40  ;;  %7726 = vst [vmem:[#allocation32_spill] sm:$0xff] %v6547_v6  ;;  %v6557_v24 = vpop.eup %4647  ;;  %v6561_v52 = vmul.f32 %v6547_v6, %v6545_v58  ;;  %v6573_v60 = vmul.f32 %v6547_v6, %v6495_v31  ;;  %v2693_v58 = vcombine.high %v6365_v33, %v6365_v33 }
 0x8c5   :  { %2872 = vbcast.lane.b32.xlu0 %v6501_v15, 320  ;;  %2864 = vbcast.lane.b32.xlu1 %v6469_v27, 328  ;;  %v6575_v45 = vpop.eup %4649  ;;  %v6622_v6 = vmul.f32 %v6474_v55, %v6457_v59 }
 0x8c6   :  { %7727 = vst [vmem:[#allocation27_spill] sm:$0xff] %v6561_v52  ;;  %7728 = vst [vmem:[#allocation28_spill] sm:$0xff] %v6575_v45  ;;  %v6589_v53 = vpop.eup %4651  ;;  %v6593_v20 = vmul.f32 %v6575_v45, %v6531_v8  ;;  %v6597_v0 = vmul.f32 %v6561_v52, %v6555_v34  ;;  %v6601_v28 = vmul.f32 %v6575_v45, %v6449_v1 }
 0x8c7   :  { %v6605_v49 = vmul.f32 %v6565_v26, %v6573_v60  ;;  %v6607_v21 = vpop.eup %4653  ;;  %v6616_v40 = vmul.f32 %v6583_v32, %v6561_v52  ;;  %7737 = vst [vmem:[#allocation42_spill] sm:$0xff] %v6622_v6  ;;  %v6636_v32 = vpop.permute.xlu1 %3894  ;;  %v6642_v52 = vmul.f32 %v6589_v53, %v6557_v24 }
 0x8c8   :  { %7731 = vst [vmem:[#allocation97_spill] sm:$0xff] %v6593_v20  ;;  %7732 = vst [vmem:[#allocation49_spill] sm:$0xff] %v6597_v0  ;;  %v6618_v45 = vpop.eup %4655  ;;  %v6626_v63 = vmul.f32 %v6601_v28, %v6569_v2  ;;  %v6630_v30 = vmul.f32 %v6593_v20, %v6579_v46  ;;  %v6634_v33 = vmul.f32 %v6587_v19, %v6593_v20 }
 0x8c9   :  { %2996 = vbcast.lane.b32.xlu0 %v6432_v9, 336  ;;  %2888 = vbcast.lane.b32.xlu1 %v6485_v16, 328  ;;  %7733 = vst [vmem:[#allocation33_spill] sm:$0xff] %v6605_v49  ;;  %7734 = vst [vmem:[#allocation35_spill] sm:$0xff] %v6607_v21  ;;  %v6646_v7 = vmul.f32 %v6618_v45, %v6607_v21  ;;  %v6654_v19 = vmul.f32 %v6618_v45, %v6557_v24 }
 0x8ca   :  { %7735 = vst [vmem:[#allocation37_spill] sm:$0xff] %v6616_v40  ;;  %7736 = vst [vmem:[#allocation40_spill] sm:$0xff] %v6618_v45  ;;  %v6638_v40 = vpop.permute.xlu0 %3912  ;;  %v3223_v45 = vmul.f32 %v6370_v61, %v3173_v41  ;;  %v3177_v20 = vrot.slane %v2693_v58, %v7707_v13 }
 0x8cb   :  { %7738 = vst [vmem:[#allocation98_spill] sm:$0xff] %v6626_v63  ;;  %7739 = vst [vmem:[#allocation29_spill] sm:$0xff] %v6630_v30  ;;  %v6650_v63 = vmul.f32 %v6607_v21, %v6457_v59  ;;  %v2593_v21 = vmul.f32 %v6328_v56, %v6298_v44  ;;  %v6675_v49 = vpop.permute.xlu1 %3914 }
 0x8cc   :  { %7740 = vst [vmem:[#allocation39_spill] sm:$0xff] %v6634_v33  ;;  %7741 = vst [vmem:[#allocation36_spill] sm:$0xff] %v6636_v32  ;;  %v6668_v33 = vmul.f32 %v6622_v6, %v6646_v7  ;;  %v3225_v6 = vmul.f32 %v6370_v61, %v3177_v20 }
 0x8cd   :  { %3004 = vbcast.lane.b32.xlu0 %v6443_v39, 336  ;;  %2876 = vbcast.lane.b32.xlu1 %v6501_v15, 328  ;;  %7742 = vst [vmem:[#allocation31_spill] sm:$0xff] %v6638_v40  ;;  %7743 = vst [vmem:[#allocation61_spill] sm:$0xff] %v6646_v7  ;;  %v6660_v40 = vmul.f32 %v6646_v7, %v6642_v52  ;;  %v6664_v32 = vmul.f32 %v6650_v63, %v6654_v19 }
 0x8ce   :  { %7744 = vst [vmem:[#allocation51_spill] sm:$0xff] %v6654_v19  ;;  %7747 = vst [vmem:[#allocation30_spill] sm:$0xff] %v6668_v33  ;;  %v3284_v33 = vmul.f32 1.442695, %v3223_v45  ;;  %v3224_v7 = vmul.f32 %v6376_v23, %v3177_v20 }
 0x8cf   :  { %7745 = vst [vmem:[#allocation44_spill] sm:$0xff] %v6660_v40  ;;  %7746 = vst [vmem:[#allocation46_spill] sm:$0xff] %v6664_v32  ;;  %v6677_v40 = vpop.permute.xlu0 %3896  ;;  %v2752_v32 = vrot.slane %v2593_v21, %v7715_v4 }
 0x8d0   :  { %7748 = vst [vmem:[#allocation52_spill] sm:$0xff] %v6675_v49  ;;  %7749 = vst [vmem:[#allocation59_spill] sm:$0xff] %v6677_v40  ;;  %v6687_v49 = vpop.permute.xlu1 %3898  ;;  %4657 = vpow2.f32 %v3284_v33  ;;  %v3286_v45 = vmul.f32 1.442695, %v3224_v7 }
 0x8d1   :  { %2988 = vbcast.lane.b32.xlu0 %v6420_v25, 336  ;;  %3000 = vbcast.lane.b32.xlu1 %v6432_v9, 344  ;;  %v3222_v9 = vmul.f32 %v6376_v23, %v3173_v41  ;;  %v2768_v41 = vrot.slane %v2752_v32, %v7715_v4  ;;  %v2760_v58 = vcombine.high %v2752_v32, %v2752_v32 }
 0x8d2   :  { %7750 = vst [vmem:[#allocation50_spill] sm:$0xff] %v6687_v49  ;;  %v2745_v32 = vcombine.high %v2593_v21, %v2593_v21 }
 0x8d3   :  { %v3282_v56 = vmul.f32 1.442695, %v3222_v9  ;;  %v6689_v40 = vpop.permute.xlu0 %3900  ;;  %v3325_v20 = vrot.slane %v2768_v41, %v7707_v13  ;;  %v2782_v9 = vrot.slane %v2760_v58, %v7715_v4  ;;  %v2790_v33 = vcombine.high %v2768_v41, %v2768_v41 }
 0x8d4   :  { %7751 = vst [vmem:[#allocation34_spill] sm:$0xff] %v6689_v40  ;;  %v2759_v58 = vrot.slane %v2745_v32, %v7715_v4 }
 0x8d5   :  { %3012 = vbcast.lane.b32.xlu0 %v6395_v17, 336  ;;  %3008 = vbcast.lane.b32.xlu1 %v6443_v39, 344  ;;  %v3288_v39 = vmul.f32 1.442695, %v3225_v6  ;;  %4659 = vpow2.f32 %v3282_v56  ;;  %v3329_v6 = vrot.slane %v2782_v9, %v7707_v13  ;;  %v3333_v41 = vrot.slane %v2790_v33, %v7707_v13 }
 0x8d7   :  { %4661 = vpow2.f32 %v3288_v39 }
 0x8d8   :  { %4663 = vpow2.f32 %v3286_v45  ;;  %v2792_v45 = vcombine.high %v2782_v9, %v2782_v9  ;;  %v2775_v9 = vrot.slane %v2759_v58, %v7715_v4 }
 0x8d9   :  { %3020 = vbcast.lane.b32.xlu0 %v6409_v51, 336  ;;  %2992 = vbcast.lane.b32.xlu1 %v6420_v25, 344 }
 0x8da   :  { %v3337_v40 = vrot.slane %v2792_v45, %v7707_v13  ;;  %v3341_v0 = vrot.slane %v2775_v9, %v7707_v13 }
 0x8dd   :  { %3028 = vbcast.lane.b32.xlu0 %v6469_v27, 336  ;;  %3016 = vbcast.lane.b32.xlu1 %v6395_v17, 344 }
 0x8df   :  { %v2901_v25 = vpop.permute.xlu1 %2900  ;;  %v2897_v8 = vpop.permute.xlu0 %2896 }
 0x8e0   :  { %v6695_v30 = vmul.f32 %v3325_v20, %v2901_v25  ;;  %v6697_v49 = vmul.f32 %v3325_v20, %v2897_v8  ;;  %v4658_v20 = vpop.eup %4657 }
 0x8e1   :  { %3036 = vbcast.lane.b32.xlu0 %v6501_v15, 336  ;;  %3024 = vbcast.lane.b32.xlu1 %v6409_v51, 344  ;;  %v4660_v51 = vpop.eup %4659 }
 0x8e2   :  { %7752 = vst [vmem:[#allocation75_spill] sm:$0xff] %v6695_v30  ;;  %7753 = vst [vmem:[#allocation53_spill] sm:$0xff] %v6697_v49  ;;  %v3423_v17 = vmul.f32 %v6449_v1, %v6695_v30  ;;  %v3422_v7 = vmul.f32 %v6454_v18, %v6697_v49  ;;  %v6722_v30 = vmul.f32 %v4658_v20, %v6465_v14 }
 0x8e3   :  { %v2913_v56 = vpop.permute.xlu1 %2912  ;;  %v2909_v21 = vpop.permute.xlu0 %2908 }
 0x8e4   :  { %v6707_v8 = vmul.f32 %v3329_v6, %v2913_v56  ;;  %v6709_v39 = vmul.f32 %v3329_v6, %v2909_v21  ;;  %v3883_v6 = vrot.slane %v6282_v54, 4 }
 0x8e5   :  { %3044 = vbcast.lane.b32.xlu0 %v6485_v16, 336  ;;  %3032 = vbcast.lane.b32.xlu1 %v6469_v27, 344  ;;  %v4662_v27 = vpop.eup %4661 }
 0x8e6   :  { %7754 = vst [vmem:[#allocation43_spill] sm:$0xff] %v6707_v8  ;;  %7755 = vst [vmem:[#allocation78_spill] sm:$0xff] %v6709_v39  ;;  %v3425_v1 = vmul.f32 %v6457_v59, %v6707_v8  ;;  %v3424_v18 = vmul.f32 %v6462_v48, %v6709_v39  ;;  %v6725_v59 = vmul.f32 %v4660_v51, %v6472_v35  ;;  %v4664_v33 = vpop.eup %4663  ;;  %v3889_v39 = vrot.slane %v6280_v62, 3 }
 0x8e7   :  { %v2925_v25 = vpop.permute.xlu1 %2924  ;;  %v2921_v32 = vpop.permute.xlu0 %2920  ;;  %v2761_v48 = vcombine.high %v2759_v58, %v2759_v58 }
 0x8e8   :  { %v3391_v56 = vmul.f32 %v3333_v41, %v2925_v25  ;;  %v3390_v21 = vmul.f32 %v3333_v41, %v2921_v32 }
 0x8e9   :  { %3902 = vrot.lane.b32.xlu0 %v3883_v6, %s4755_s0  ;;  %3040 = vbcast.lane.b32.xlu1 %v6501_v15, 344 }
 0x8ea   :  { %v3427_v8 = vmul.f32 %v6465_v14, %v3391_v56  ;;  %v6730_v49 = vadd.f32 %v3423_v17, %v3391_v56  ;;  %v3426_v41 = vmul.f32 %v6472_v35, %v3390_v21  ;;  %v6733_v45 = vadd.f32 %v3422_v7, %v3390_v21 }
 0x8eb   :  { %v2937_v25 = vpop.permute.xlu1 %2936  ;;  %v2933_v32 = vpop.permute.xlu0 %2932  ;;  %v6742_v17 = vmul.f32 %v4662_v27, %v6474_v55  ;;  %v6745_v35 = vmul.f32 %v4664_v33, %v6479_v10  ;;  %v2789_v7 = vrot.slane %v2761_v48, %v7715_v4 }
 0x8ec   :  { %7756 = vst [vmem:[#allocation101_spill] sm:$0xff] %v6730_v49  ;;  %7757 = vst [vmem:[#allocation48_spill] sm:$0xff] %v6733_v45  ;;  %v3519_v6 = vmul.f32 %v6722_v30, %v6730_v49  ;;  %v3518_v15 = vmul.f32 %v6725_v59, %v6733_v45  ;;  %v3393_v58 = vmul.f32 %v3337_v40, %v2937_v25  ;;  %v3890_v45 = vrot.slane %v6280_v62, 4 }
 0x8ed   :  { %v3392_v14 = vmul.f32 %v3337_v40, %v2933_v32  ;;  %3916 = vrot.lane.b32.xlu0 %v3889_v39, %s4755_s0  ;;  %3048 = vbcast.lane.b32.xlu1 %v6485_v16, 344 }
 0x8ee   :  { %v3429_v56 = vmul.f32 %v6474_v55, %v3393_v58  ;;  %v6751_v21 = vadd.f32 %v3425_v1, %v3393_v58  ;;  %v3345_v55 = vrot.slane %v2789_v7, %v7707_v13 }
 0x8ef   :  { %v3428_v49 = vmul.f32 %v6479_v10, %v3392_v14  ;;  %v6754_v25 = vadd.f32 %v3424_v18, %v3392_v14  ;;  %v2949_v40 = vpop.permute.xlu1 %2948  ;;  %v2945_v32 = vpop.permute.xlu0 %2944  ;;  %v2791_v10 = vcombine.high %v2775_v9, %v2775_v9 }
 0x8f0   :  { %7758 = vst [vmem:[#allocation54_spill] sm:$0xff] %v6751_v21  ;;  %v3521_v11 = vmul.f32 %v6742_v17, %v6751_v21  ;;  %v3395_v39 = vmul.f32 %v3341_v0, %v2949_v40  ;;  %v3394_v48 = vmul.f32 %v3341_v0, %v2945_v32  ;;  %v3884_v0 = vrot.slane %v6282_v54, 5 }
 0x8f1   :  { %7759 = vst [vmem:[#allocation84_spill] sm:$0xff] %v6754_v25  ;;  %v3520_v16 = vmul.f32 %v6745_v35, %v6754_v25  ;;  %3918 = vrot.lane.b32.xlu0 %v3890_v45, %s4755_s0  ;;  %3910 = vrot.lane.b32.xlu1 %v6280_v62, %s4755_s0  ;;  %v3891_v25 = vrot.slane %v6280_v62, 5  ;;  %v3349_v9 = vrot.slane %v2791_v10, %v7707_v13 }
 0x8f2   :  { %v3431_v1 = vmul.f32 %v4658_v20, %v3395_v39  ;;  %v6765_v18 = vadd.f32 %v3427_v8, %v3395_v39  ;;  %v3430_v58 = vmul.f32 %v4660_v51, %v3394_v48  ;;  %v6767_v14 = vadd.f32 %v3426_v41, %v3394_v48 }
 0x8f3   :  { %v2961_v21 = vpop.permute.xlu1 %2960  ;;  %v2957_v47 = vpop.permute.xlu0 %2956  ;;  %v2793_v20 = vcombine.high %v2789_v7, %v2789_v7 }
 0x8f4   :  { %7760 = vst [vmem:[#allocation74_spill] sm:$0xff] %v6765_v18  ;;  %v3397_v40 = vmul.f32 %v3345_v55, %v2961_v21  ;;  %v3396_v45 = vmul.f32 %v3345_v55, %v2957_v47  ;;  %v3892_v18 = vrot.slane %v6280_v62, 6  ;;  %v3885_v21 = vrot.slane %v6282_v54, 6 }
 0x8f5   :  { %3920 = vrot.lane.b32.xlu0 %v3891_v25, %s4755_s0  ;;  %3904 = vrot.lane.b32.xlu1 %v3884_v0, %s4755_s0 }
 0x8f6   :  { %v3433_v8 = vmul.f32 %v4662_v27, %v3397_v40  ;;  %v6774_v32 = vadd.f32 %v3429_v56, %v3397_v40  ;;  %v3432_v51 = vmul.f32 %v4664_v33, %v3396_v45  ;;  %v6776_v41 = vadd.f32 %v3428_v49, %v3396_v45 }
 0x8f7   :  { %v2973_v39 = vpop.permute.xlu1 %2972  ;;  %v2969_v48 = vpop.permute.xlu0 %2968  ;;  %v3353_v27 = vrot.slane %v2793_v20, %v7707_v13  ;;  %v3886_v49 = vrot.slane %v6282_v54, 7 }
 0x8f8   :  { %7761 = vst [vmem:[#allocation45_spill] sm:$0xff] %v6774_v32  ;;  %v3399_v47 = vmul.f32 %v3349_v9, %v2973_v39  ;;  %v3398_v55 = vmul.f32 %v3349_v9, %v2969_v48 }
 0x8f9   :  { %3922 = vrot.lane.b32.xlu0 %v3892_v18, %s4755_s0  ;;  %3906 = vrot.lane.b32.xlu1 %v3885_v21, %s4755_s0 }
 0x8fa   :  { %v3463_v25 = vadd.f32 %v3431_v1, %v3399_v47  ;;  %v3462_v7 = vadd.f32 %v3430_v58, %v3398_v55  ;;  %v3893_v58 = vrot.slane %v6280_v62, 7  ;;  %v4234_v62 = vld [vmem:[%s7372_s5 + $0x40] sm:$0xff]  ;;  %v2592_v47 = vmul.f32 %v6338_v36, %v6296_v50  ;;  %v4237_v36 = vld [vmem:[%s7372_s5 + $0x58] sm:$0xff] }
 0x8fb   :  { %v2985_v56 = vpop.permute.xlu1 %2984  ;;  %v2981_v33 = vpop.permute.xlu0 %2980 }
 0x8fc   :  { %v6784_v10 = vadd.f32 %v3519_v6, %v3463_v25  ;;  %v6786_v0 = vadd.f32 %v3518_v15, %v3462_v7  ;;  %v3401_v40 = vmul.f32 %v3353_v27, %v2985_v56  ;;  %v3400_v45 = vmul.f32 %v3353_v27, %v2981_v33  ;;  %v4238_v56 = vld [vmem:[%s7372_s5 + $0x60] sm:$0xff] }
 0x8fd   :  { %3908 = vrot.lane.b32.xlu1 %v3886_v49, %s4755_s0  ;;  %v3117_v15 = vrot.slane %v6382_v43, %v7707_v13  ;;  %v2696_v33 = vcombine.high %v2592_v47, %v2592_v47 }
 0x8fe   :  { %7762 = vst [vmem:[#allocation111_spill] sm:$0xff] %v6784_v10  ;;  %7763 = vst [vmem:[#allocation68_spill] sm:$0xff] %v6786_v0  ;;  %v3465_v9 = vadd.f32 %v3433_v8, %v3401_v40  ;;  %v3464_v18 = vadd.f32 %v3432_v51, %v3400_v45  ;;  %v4239_v40 = vld [vmem:[%s7372_s5 + $0x68] sm:$0xff] }
 0x8ff   :  { %v6789_v39 = vpop.permute.xlu1 %3064  ;;  %v6791_v1 = vpop.permute.xlu0 %3060  ;;  %v3194_v43 = vmul.f32 %v6376_v23, %v3117_v15  ;;  %v3195_v7 = vmul.f32 %v6370_v61, %v3117_v15 }
 0x900   :  { %7764 = vst [vmem:[#allocation83_spill] sm:$0xff] %v6789_v39  ;;  %v6794_v20 = vadd.f32 %v3521_v11, %v3465_v9  ;;  %v6796_v48 = vadd.f32 %v3520_v16, %v3464_v18  ;;  %v4235_v11 = vld [vmem:[%s7372_s5 + $0x48] sm:$0xff]  ;;  %v3121_v16 = vrot.slane %v6402_v37, %v7707_v13  ;;  %v4236_v37 = vld [vmem:[%s7372_s5 + $0x50] sm:$0xff]  ;;  %v4468_v9 = vpack.c.bf16 %v4239_v40, %v4238_v56 }
 0x901   :  { %3924 = vrot.lane.b32.xlu1 %v3893_v58, %s4755_s0  ;;  %v4460_v21 = vpack.c.bf16 %v4235_v11, %v4234_v62  ;;  %v4464_v49 = vpack.c.bf16 %v4237_v36, %v4236_v37  ;;  %v3226_v45 = vmul.f32 1.442695, %v3194_v43  ;;  %v3228_v15 = vmul.f32 1.442695, %v3195_v7  ;;  %v4678_v37 = vld [vmem:[%s7373_s6 + $0x8] sm:$0x1f] }
 0x902   :  { %7765 = vst [vmem:[#allocation72_spill] sm:$0xff] %v6794_v20  ;;  %7766 = vst [vmem:[#allocation81_spill] sm:$0xff] %v6796_v48  ;;  %v3196_v27 = vmul.f32 %v6376_v23, %v3121_v16  ;;  %v2703_v23 = vrot.slane %v2592_v47, %v7715_v4  ;;  %v3197_v11 = vmul.f32 %v6370_v61, %v3121_v16  ;;  %v4240_v7 = vld [vmem:[%s7372_s5 + $0x70] sm:$0xff]  ;;  %v4241_v61 = vld [vmem:[%s7372_s5 + $0x78] sm:$0xff] }
 0x903   :  { %v6799_v54 = vpop.permute.xlu1 %3072  ;;  %v6801_v6 = vpop.permute.xlu0 %3068  ;;  %4461 = vmatprep.subr.bf16.mxu1 %v4460_v21  ;;  %v3813_v47 = vrot.slane %v4678_v37, %v7711_v42  ;;  %4665 = vpow2.f32 %v3226_v45  ;;  %v4472_v36 = vpack.c.bf16 %v4241_v61, %v4240_v7 }
 0x904   :  { %7767 = vst [vmem:[#allocation77_spill] sm:$0xff] %v6799_v54  ;;  %4463 = vmatpush3.bf16.msra.mxu1 %v4460_v21  ;;  %v3230_v62 = vmul.f32 1.442695, %v3196_v27  ;;  %v2710_v21 = vrot.slane %v2696_v33, %v7715_v4  ;;  %v2711_v43 = vcombine.high %v2703_v23, %v2703_v23  ;;  %4667 = vpow2.f32 %v3228_v15 }
 0x905   :  { %4465 = vmatprep.subr.bf16.mxu1 %v4464_v49  ;;  %v3232_v56 = vmul.f32 1.442695, %v3197_v11  ;;  %v6860_v33 = vmul.f32 %v3813_v47, %v6296_v50  ;;  %v6864_v40 = vmul.f32 %v3813_v47, %v6298_v44  ;;  %v2719_v15 = vrot.slane %v2703_v23, %v7715_v4 }
 0x906   :  { %4669 = vpow2.f32 %v3230_v62  ;;  %v2712_v42 = vcombine.high %v2710_v21, %v2710_v21  ;;  %v2726_v11 = vrot.slane %v2710_v21, %v7715_v4 }
 0x907   :  { %v6805_v8 = vpop.permute.xlu1 %3056  ;;  %v6807_v51 = vpop.permute.xlu0 %3052  ;;  %7775 = vst [vmem:[#allocation102_spill] sm:$0xff] %v6860_v33  ;;  %7776 = vst [vmem:[#allocation70_spill] sm:$0xff] %v6864_v40  ;;  %4671 = vpow2.f32 %v3232_v56  ;;  %v3293_v21 = vrot.slane %v2719_v15, %v7707_v13 }
 0x908   :  { %7768 = vst [vmem:[#allocation62_spill] sm:$0xff] %v6805_v8  ;;  %7769 = vst [vmem:[#allocation87_spill] sm:$0xff] %v6807_v51  ;;  %4467 = vmatpush3.bf16.msra.mxu1 %v4464_v49  ;;  %v2733_v49 = vrot.slane %v2711_v43, %v7715_v4 }
 0x909   :  { %4469 = vmatprep.subr.bf16.mxu1 %v4468_v9 }
 0x90a   :  { %v2743_v62 = vcombine.high %v2733_v49, %v2733_v49  ;;  %v6898_v47 = vrot.slane %v2733_v49, %v7707_v13 }
 0x90b   :  { %v6820_v55 = vpop.permute.xlu1 %3080  ;;  %v6822_v25 = vpop.permute.xlu0 %3076 }
 0x90c   :  { %7770 = vst [vmem:[#allocation80_spill] sm:$0xff] %v6820_v55  ;;  %4471 = vmatpush3.bf16.msra.mxu1 %v4468_v9  ;;  %v2740_v9 = vrot.slane %v2712_v42, %v7715_v4  ;;  %v3305_v61 = vrot.slane %v2743_v62, %v7707_v13  ;;  %v6892_v4 = vrot.slane %v2726_v11, %v7707_v13 }
 0x90d   :  { %4473 = vmatprep.subr.bf16.mxu1 %v4472_v36  ;;  %v4666_v23 = vpop.eup %4665 }
 0x90e   :  { %v4668_v50 = vpop.eup %4667  ;;  %v3554_v62 = vmul.f32 %v4666_v23, %v6511_v22 }
 0x90f   :  { %v6839_v18 = vpop.permute.xlu1 %3088  ;;  %v6841_v58 = vpop.permute.xlu0 %3084  ;;  %v3467_v44 = vmul.f32 %v4668_v50, %v6513_v38  ;;  %v6916_v55 = vmul.f32 0.0, %v4668_v50 }
 0x910   :  { %7771 = vst [vmem:[#allocation103_spill] sm:$0xff] %v6839_v18  ;;  %7772 = vst [vmem:[#allocation94_spill] sm:$0xff] %v6841_v58  ;;  %4475 = vmatpush3.bf16.msra.mxu1 %v4472_v36  ;;  %v4670_v20 = vpop.eup %4669  ;;  %v2742_v36 = vcombine.high %v2726_v11, %v2726_v11 }
 0x911   :  { %v3468_v40 = vmul.f32 %v4670_v20, %v6497_v5  ;;  %v3556_v18 = vmul.f32 %v4670_v20, %v6555_v34  ;;  %v6914_v49 = vmul.f32 0.0, %v4670_v20  ;;  %v6929_v20 = vmul.f32 0.0, %v3554_v62 }
 0x912   :  { %v6919_v0 = vrot.slane %v2742_v36, %v7707_v13 }
 0x913   :  { %v6855_v16 = vpop.permute.xlu1 %3096  ;;  %v6857_v27 = vpop.permute.xlu0 %3092  ;;  %v6931_v58 = vmul.f32 0.0, %v3556_v18  ;;  %v6949_v18 = vmul.f32 %v6745_v35, %v6565_v26 }
 0x914   :  { %7773 = vst [vmem:[#allocation104_spill] sm:$0xff] %v6855_v16  ;;  %7774 = vst [vmem:[#allocation76_spill] sm:$0xff] %v6857_v27  ;;  %v3466_v16 = vmul.f32 %v4666_v23, %v6491_v3  ;;  %v6924_v27 = vmul.f32 0.0, %v3468_v40 }
 0x915   :  { %7781 = vst [vmem:[#allocation65_spill] sm:$0xff] %v6931_v58  ;;  %7785 = vst [vmem:[#allocation71_spill] sm:$0xff] %v6949_v18  ;;  %v7801_v18 = vld [vmem:[#allocation32_spill] sm:$0xff] }
 0x916   :  { %v3558_v56 = vmul.f32 %v6505_v12, %v3466_v16 }
 0x917   :  { %v6866_v45 = vpop.permute.xlu1 %3104  ;;  %v6868_v37 = vpop.permute.xlu0 %3100 }
 0x918   :  { %7777 = vst [vmem:[#allocation89_spill] sm:$0xff] %v6866_v45  ;;  %7778 = vst [vmem:[#allocation73_spill] sm:$0xff] %v6868_v37  ;;  %v2744_v45 = vcombine.high %v2740_v9, %v2740_v9  ;;  %v4672_v37 = vpop.eup %4671  ;;  %v6933_v39 = vmul.f32 0.0, %v3558_v56 }
 0x919   :  { %v3557_v36 = vmul.f32 %v4672_v37, %v6642_v52 }
 0x91a   :  { %v6912_v48 = vrot.slane %v2744_v45, %v7707_v13  ;;  %v3559_v45 = vmul.f32 %v6569_v2, %v3467_v44  ;;  %7782 = vst [vmem:[#allocation82_spill] sm:$0xff] %v6933_v39 }
 0x91b   :  { %v6874_v7 = vpop.permute.xlu1 %3112  ;;  %v6876_v43 = vpop.permute.xlu0 %3108 }
 0x91c   :  { %7779 = vst [vmem:[#allocation56_spill] sm:$0xff] %v6874_v7  ;;  %7780 = vst [vmem:[#allocation107_spill] sm:$0xff] %v6876_v43  ;;  %v2741_v7 = vcombine.high %v2719_v15, %v2719_v15  ;;  %v6903_v43 = vmul.f32 0.0, %v4666_v23  ;;  %v6909_v15 = vrot.slane %v2740_v9, %v7707_v13  ;;  %v3555_v23 = vmul.f32 %v4668_v50, %v6579_v46 }
 0x91d   :  { %v6926_v9 = vmul.f32 0.0, %v3467_v44  ;;  %v3469_v50 = vmul.f32 %v4672_v37, %v6589_v53  ;;  %v6943_v44 = vmul.f32 %v6725_v59, %v6523_v29 }
 0x91e   :  { %v6906_v11 = vrot.slane %v2741_v7, %v7707_v13  ;;  %v6922_v7 = vmul.f32 0.0, %v3466_v16  ;;  %v6935_v13 = vmul.f32 0.0, %v4672_v37  ;;  %v3560_v16 = vmul.f32 %v6573_v60, %v3468_v40 }
 0x91f   :  { %v2841_v42 = vpop.permute.xlu1 %2840  ;;  %v2837_v10 = vpop.permute.xlu0 %2836  ;;  %7783 = vst [vmem:[#allocation108_spill] sm:$0xff] %v6943_v44  ;;  %v6953_v40 = vmul.f32 0.0, %v3559_v45  ;;  %v3561_v37 = vmul.f32 %v6654_v19, %v3469_v50 }
 0x920   :  { %v6951_v56 = vmul.f32 %v3305_v61, %v2841_v42  ;;  %v3376_v62 = vmul.f32 %v3305_v61, %v2837_v10  ;;  %v6961_v35 = vmul.f32 0.0, %v3560_v16  ;;  %v6963_v42 = vmul.f32 0.0, %v3557_v36  ;;  %v7792_v36 = vld [vmem:[#allocation88_spill] sm:$0xff] }
 0x921   :  { %7786 = vst [vmem:[#allocation66_spill] sm:$0xff] %v6953_v40  ;;  %v6967_v10 = vmul.f32 %v6722_v30, %v6601_v28 }
 0x922   :  { %7787 = vst [vmem:[#allocation109_spill] sm:$0xff] %v6961_v35  ;;  %7788 = vst [vmem:[#allocation63_spill] sm:$0xff] %v6963_v42 }
 0x923   :  { %v2849_v33 = vpop.permute.xlu0 %2848  ;;  %v2801_v8 = vpop.permute.xlu1 %2800  ;;  %7789 = vst [vmem:[#allocation110_spill] sm:$0xff] %v6967_v10 }
 0x924   :  { %v3370_v54 = vmul.f32 %v3293_v21, %v2801_v8  ;;  %v6945_v8 = vmul.f32 0.0, %v3555_v23  ;;  %v3378_v51 = vmul.f32 %v6892_v4, %v2849_v33 }
 0x926   :  { %v3434_v32 = vadd.f32 %v6903_v43, %v3370_v54  ;;  %7784 = vst [vmem:[#allocation100_spill] sm:$0xff] %v6945_v8  ;;  %v6959_v8 = vmul.f32 0.0, %v3469_v50  ;;  %v3406_v19 = vmul.f32 %v6491_v3, %v3370_v54 }
 0x927   :  { %v2813_v39 = vpop.permute.xlu0 %2812  ;;  %v2805_v58 = vpop.permute.xlu1 %2804 }
 0x928   :  { %v3372_v59 = vmul.f32 %v6898_v47, %v2813_v39  ;;  %v3371_v44 = vmul.f32 %v3293_v21, %v2805_v58  ;;  %v3522_v23 = vadd.f32 %v3434_v32, %v6903_v43  ;;  %v6974_v39 = vmul.f32 %v6742_v17, %v6650_v63 }
 0x929   :  { %v6978_v58 = vmul.f32 %v6557_v24, %v6951_v56  ;;  %v3412_v21 = vmul.f32 %v6495_v31, %v3376_v62  ;;  %v3498_v24 = vmul.f32 %v6511_v22, %v3434_v32  ;;  %v7795_v32 = vld [vmem:[#allocation29_spill] sm:$0xff] }
 0x92a   :  { %v3408_v61 = vmul.f32 %v6497_v5, %v3372_v59  ;;  %v3436_v45 = vadd.f32 %v6914_v49, %v3372_v59  ;;  %v3435_v33 = vadd.f32 %v6916_v55, %v3371_v44  ;;  %7790 = vst [vmem:[#allocation86_spill] sm:$0xff] %v6974_v39  ;;  %v6982_v30 = vmul.f32 %v6539_v57, %v3522_v23 }
 0x92b   :  { %v2825_v50 = vpop.permute.xlu0 %2824  ;;  %v2853_v16 = vpop.permute.xlu1 %2852  ;;  %v6984_v5 = vmul.f32 0.0, %v3561_v37  ;;  %v6987_v59 = vmul.f32 %v7792_v36, %v3378_v51  ;;  %v3407_v57 = vmul.f32 %v6513_v38, %v3371_v44  ;;  %v7793_v37 = vld [vmem:[#allocation90_spill] sm:$0xff]  ;;  %v7001_v22 = vadd.f32 %v3522_v23, %v6903_v43 }
 0x92c   :  { %v3440_v17 = vadd.f32 %v3408_v61, %v3376_v62  ;;  %v3374_v39 = vmul.f32 %v6906_v11, %v2825_v50  ;;  %v3379_v40 = vmul.f32 %v6892_v4, %v2853_v16  ;;  %v3524_v31 = vadd.f32 %v3436_v45, %v6914_v49  ;;  %v7794_v61 = vld [vmem:[#allocation49_spill] sm:$0xff] }
 0x92d   :  { %7791 = vst [vmem:[#allocation57_spill] sm:$0xff] %v6984_v5  ;;  %v3523_v10 = vadd.f32 %v3435_v33, %v6916_v55  ;;  %v3500_v3 = vmul.f32 %v6555_v34, %v3436_v45  ;;  %v7007_v16 = vmul.f32 %v6579_v46, %v3435_v33  ;;  %v7799_v46 = vld [vmem:[#allocation91_spill] sm:$0xff] }
 0x92e   :  { %v3410_v5 = vmul.f32 %v7793_v37, %v3374_v39  ;;  %v3438_v42 = vadd.f32 %v3406_v19, %v3374_v39  ;;  %v3528_v36 = vadd.f32 %v6924_v27, %v3440_v17  ;;  %v3588_v50 = vmul.f32 %v7794_v61, %v3524_v31  ;;  %v7796_v39 = vld [vmem:[#allocation24_spill] sm:$0xff]  ;;  %v7797_v37 = vld [vmem:[#allocation33_spill] sm:$0xff] }
 0x92f   :  { %v2861_v54 = vpop.permute.xlu0 %2860  ;;  %v2817_v62 = vpop.permute.xlu1 %2816  ;;  %v7004_v4 = vmul.f32 %v7795_v32, %v3523_v10  ;;  %v7012_v34 = vmul.f32 %v7796_v39, %v3379_v40  ;;  %v7017_v43 = vmul.f32 %v6573_v60, %v3440_v17  ;;  %v7800_v39 = vld [vmem:[#allocation26_spill] sm:$0xff]  ;;  %v7802_v17 = vld [vmem:[#allocation27_spill] sm:$0xff] }
 0x930   :  { %v3442_v38 = vadd.f32 %v3410_v5, %v3378_v51  ;;  %v3380_v19 = vmul.f32 %v6909_v15, %v2861_v54  ;;  %v3373_v44 = vmul.f32 %v6898_v47, %v2817_v62  ;;  %v3526_v45 = vadd.f32 %v6922_v7, %v3438_v42 }
 0x931   :  { %v3592_v61 = vmul.f32 %v7797_v37, %v3528_v36  ;;  %7798 = vst [vmem:[#allocation112_spill] sm:$0xff] %v7017_v43  ;;  %v7020_v23 = vmul.f32 %v6505_v12, %v3438_v42  ;;  %v3604_v5 = vadd.f32 %v3524_v31, %v6914_v49  ;;  %v7033_v49 = vadd.f32 %v3528_v36, %v6924_v27 }
 0x932   :  { %v3506_v33 = vmul.f32 %v7799_v46, %v3442_v38  ;;  %v3444_v51 = vadd.f32 %v3412_v21, %v3380_v19  ;;  %v3409_v47 = vmul.f32 %v6589_v53, %v3373_v44  ;;  %v3437_v54 = vadd.f32 %v6935_v13, %v3373_v44  ;;  %v7803_v53 = vld [vmem:[#allocation96_spill] sm:$0xff] }
 0x933   :  { %v2885_v62 = vpop.permute.xlu0 %2884  ;;  %v2829_v32 = vpop.permute.xlu1 %2828  ;;  %v3590_v35 = vmul.f32 %v7800_v39, %v3526_v45  ;;  %v3530_v37 = vadd.f32 %v3498_v24, %v3442_v38  ;;  %v3416_v60 = vmul.f32 %v7801_v18, %v3380_v19  ;;  %v7039_v44 = vadd.f32 %v3523_v10, %v6916_v55  ;;  %v7804_v24 = vld [vmem:[#allocation25_spill] sm:$0xff]  ;;  %v7805_v19 = vld [vmem:[#allocation38_spill] sm:$0xff]  ;;  %v7806_v39 = vld [vmem:[#allocation44_spill] sm:$0xff] }
 0x934   :  { %v3508_v43 = vmul.f32 %v7802_v17, %v3444_v51  ;;  %v3384_v12 = vmul.f32 %v6912_v48, %v2885_v62  ;;  %v3375_v42 = vmul.f32 %v6906_v11, %v2829_v32  ;;  %v3525_v21 = vadd.f32 %v3437_v54, %v6935_v13  ;;  %v7807_v17 = vld [vmem:[#allocation78_spill] sm:$0xff] }
 0x935   :  { %v7036_v31 = vmul.f32 %v7803_v53, %v3530_v37  ;;  %v7046_v62 = vadd.f32 %v3526_v45, %v6922_v7  ;;  %v7049_v11 = vadd.f32 %v3409_v47, %v6951_v56  ;;  %v7052_v27 = vmul.f32 %v6642_v52, %v3437_v54  ;;  %v7808_v47 = vld [vmem:[#allocation37_spill] sm:$0xff] }
 0x936   :  { %v3420_v38 = vmul.f32 %v7804_v24, %v3384_v12  ;;  %v7042_v18 = vadd.f32 %v3416_v60, %v3384_v12  ;;  %v3411_v46 = vmul.f32 %v7805_v19, %v3375_v42  ;;  %v3589_v55 = vmul.f32 %v7806_v39, %v3525_v21 }
 0x937   :  { %v2873_v36 = vpop.permute.xlu0 %2872  ;;  %v2865_v32 = vpop.permute.xlu1 %2864  ;;  %v7055_v10 = vadd.f32 %v3500_v3, %v3444_v51  ;;  %v7063_v7 = vadd.f32 %v6929_v20, %v3530_v37  ;;  %v3439_v56 = vadd.f32 %v3407_v57, %v3375_v42  ;;  %v7809_v3 = vld [vmem:[#allocation47_spill] sm:$0xff] }
 0x938   :  { %v3452_v60 = vadd.f32 %v3420_v38, %v7807_v17  ;;  %v3512_v12 = vmul.f32 %v6565_v26, %v7042_v18  ;;  %v7060_v53 = vadd.f32 %v3411_v46, %v3379_v40  ;;  %v3382_v52 = vmul.f32 %v6919_v0, %v2873_v36  ;;  %v7810_v38 = vld [vmem:[#allocation84_spill] sm:$0xff]  ;;  %v7811_v26 = vld [vmem:[#allocation97_spill] sm:$0xff]  ;;  %v7812_v46 = vld [vmem:[#allocation95_spill] sm:$0xff] }
 0x939   :  { %v3381_v45 = vmul.f32 %v6909_v15, %v2865_v32  ;;  %v7069_v54 = vmul.f32 %v7808_v47, %v7055_v10  ;;  %v3605_v36 = vadd.f32 %v3525_v21, %v6935_v13  ;;  %v7816_v13 = vld [vmem:[#allocation35_spill] sm:$0xff] }
 0x93a   :  { %v3516_v51 = vmul.f32 %v7809_v3, %v3452_v60  ;;  %v3540_v24 = vadd.f32 %v3508_v43, %v3452_v60  ;;  %v3544_v19 = vadd.f32 %v3512_v12, %v7810_v38  ;;  %v3507_v40 = vmul.f32 %v7811_v26, %v7060_v53  ;;  %v7813_v43 = vld [vmem:[#allocation40_spill] sm:$0xff]  ;;  %v7814_v12 = vld [vmem:[#allocation53_spill] sm:$0xff] }
 0x93b   :  { %v3418_v20 = vmul.f32 %v7812_v46, %v3382_v52  ;;  %v7077_v57 = vadd.f32 %v6987_v59, %v3382_v52  ;;  %v7080_v37 = vadd.f32 %v6978_v58, %v3381_v45  ;;  %v2997_v15 = vpop.permute.xlu0 %2996  ;;  %v2889_v42 = vpop.permute.xlu1 %2888  ;;  %v3417_v39 = vmul.f32 %v7813_v43, %v3381_v45  ;;  %v7815_v58 = vld [vmem:[#allocation61_spill] sm:$0xff] }
 0x93c   :  { %v7084_v32 = vadd.f32 %v3516_v51, %v6776_v41  ;;  %v3620_v17 = vadd.f32 %v3588_v50, %v3540_v24  ;;  %v3385_v60 = vmul.f32 %v6912_v48, %v2889_v42  ;;  %v3624_v3 = vadd.f32 %v3592_v61, %v3544_v19  ;;  %v7817_v48 = vld [vmem:[#allocation41_spill] sm:$0xff]  ;;  %v7818_v24 = vld [vmem:[#allocation48_spill] sm:$0xff] }
 0x93d   :  { %v3450_v47 = vadd.f32 %v3418_v20, %v7814_v12  ;;  %v3510_v59 = vmul.f32 %v6523_v29, %v7077_v57  ;;  %v3509_v52 = vmul.f32 %v7815_v58, %v7080_v37  ;;  %v7099_v50 = vadd.f32 %v6959_v8, %v7049_v11  ;;  %v7822_v58 = vld [vmem:[#allocation28_spill] sm:$0xff] }
 0x93e   :  { %v3652_v38 = vmul.f32 %v3620_v17, %v6791_v1  ;;  %v3421_v21 = vmul.f32 %v7816_v13, %v3385_v60  ;;  %v7095_v41 = vadd.f32 %v3417_v39, %v3385_v60  ;;  %v7104_v20 = vmul.f32 %v3624_v3, %v6822_v25  ;;  %v7819_v1 = vld [vmem:[#allocation43_spill] sm:$0xff]  ;;  %v7820_v25 = vld [vmem:[#allocation42_spill] sm:$0xff] }
 0x93f   :  { %v3514_v45 = vmul.f32 %v7817_v48, %v3450_v47  ;;  %v3538_v51 = vadd.f32 %v3506_v33, %v3450_v47  ;;  %v3542_v26 = vadd.f32 %v3510_v59, %v7818_v24  ;;  %v3005_v29 = vpop.permute.xlu0 %3004  ;;  %v2877_v46 = vpop.permute.xlu1 %2876  ;;  %v3636_v61 = vmul.f32 %v3604_v5, %v2997_v15  ;;  %v7821_v15 = vld [vmem:[#allocation54_spill] sm:$0xff] }
 0x940   :  { %v3453_v19 = vadd.f32 %v3421_v21, %v7819_v1  ;;  %v3513_v42 = vmul.f32 %v6650_v63, %v7095_v41  ;;  %v3527_v43 = vadd.f32 %v6926_v9, %v3439_v56  ;;  %v3383_v33 = vmul.f32 %v6919_v0, %v2877_v46  ;;  %v7823_v0 = vld [vmem:[#allocation87_spill] sm:$0xff]  ;;  %v7826_v24 = vld [vmem:[#allocation98_spill] sm:$0xff] }
 0x941   :  { %v3546_v39 = vadd.f32 %v3514_v45, %v6767_v14  ;;  %v3622_v17 = vadd.f32 %v3590_v35, %v3542_v26  ;;  %v3618_v60 = vadd.f32 %v6982_v30, %v3538_v51  ;;  %v7114_v12 = vmul.f32 %v6569_v2, %v3439_v56  ;;  %v7824_v56 = vld [vmem:[#allocation45_spill] sm:$0xff]  ;;  %v7827_v1 = vld [vmem:[#allocation83_spill] sm:$0xff] }
 0x942   :  { %v3517_v47 = vmul.f32 %v7820_v25, %v3453_v19  ;;  %v3541_v5 = vadd.f32 %v3509_v52, %v3453_v19  ;;  %v7118_v59 = vadd.f32 %v3513_v42, %v7821_v15  ;;  %v3419_v3 = vmul.f32 %v7822_v58, %v3383_v33 }
 0x943   :  { %v3654_v63 = vmul.f32 %v3622_v17, %v6801_v6  ;;  %v7123_v14 = vadd.f32 %v7012_v34, %v3383_v33  ;;  %v2989_v35 = vpop.permute.xlu0 %2988  ;;  %v7126_v13 = vmul.f32 %v3618_v60, %v7823_v0  ;;  %v3001_v30 = vpop.permute.xlu1 %3000  ;;  %v3675_v2 = vsel %vm618_vm3, %v3636_v61, 0.0  ;;  %v7825_v6 = vld [vmem:[#allocation75_spill] sm:$0xff]  ;;  %v7829_v33 = vld [vmem:[#allocation101_spill] sm:$0xff] }
 0x944   :  { %v7130_v21 = vadd.f32 %v3517_v47, %v7824_v56  ;;  %v3621_v52 = vadd.f32 %v3589_v55, %v3541_v5  ;;  %v3637_v48 = vmul.f32 %v3605_v36, %v3001_v30  ;;  %v3747_v45 = vsel %vm618_vm3, %v3652_v38, 0.0  ;;  %v7828_v17 = vld [vmem:[#allocation55_spill] sm:$0xff]  ;;  %v7831_v30 = vld [vmem:[#allocation94_spill] sm:$0xff] }
 0x945   :  { %v3451_v51 = vadd.f32 %v3419_v3, %v7825_v6  ;;  %v3511_v34 = vmul.f32 %v6601_v28, %v7123_v14  ;;  %v3591_v26 = vmul.f32 %v7826_v24, %v3527_v43  ;;  %v3638_v46 = vmul.f32 %v7046_v62, %v3005_v29  ;;  %v7830_v29 = vld [vmem:[#allocation74_spill] sm:$0xff] }
 0x946   :  { %v3653_v19 = vmul.f32 %v3621_v52, %v7827_v1  ;;  %v3676_v61 = vsel %vm618_vm3, %v3637_v48, 0.0  ;;  %v3607_v42 = vadd.f32 %v3527_v43, %v6926_v9  ;;  %v3634_v28 = vmul.f32 %v7001_v22, %v2989_v35  ;;  %v7832_v52 = vld [vmem:[#allocation77_spill] sm:$0xff] }
 0x947   :  { %v3515_v55 = vmul.f32 %v7828_v17, %v3451_v51  ;;  %v3539_v36 = vadd.f32 %v3507_v40, %v3451_v51  ;;  %v3543_v38 = vadd.f32 %v3511_v34, %v7829_v33  ;;  %v3677_v60 = vadd.f32 %v3676_v61, %v3675_v2  ;;  %v3013_v25 = vpop.permute.xlu0 %3012  ;;  %v3009_v47 = vpop.permute.xlu1 %3008 }
 0x948   :  { %v3748_v5 = vsel %vm618_vm3, %v3653_v19, 0.0  ;;  %v3639_v15 = vmul.f32 %v3607_v42, %v3009_v47  ;;  %v3626_v62 = vadd.f32 %v7036_v31, %v3546_v39  ;;  %v3684_v40 = vsel %vm618_vm3, %v3638_v46, 0.0  ;;  %v7833_v42 = vld [vmem:[#allocation65_spill] sm:$0xff]  ;;  %v7834_v47 = vld [vmem:[#allocation76_spill] sm:$0xff] }
 0x949   :  { %v7147_v58 = vadd.f32 %v3515_v55, %v7830_v29  ;;  %v3678_v3 = vrot.slane %v3677_v60, 4  ;;  %v3749_v9 = vadd.f32 %v3748_v5, %v3747_v45  ;;  %v3623_v43 = vadd.f32 %v3591_v26, %v3543_v38 }
 0x94a   :  { %v3685_v0 = vsel %vm618_vm3, %v3639_v15, 0.0  ;;  %v7152_v2 = vmul.f32 %v3626_v62, %v7831_v30  ;;  %v3619_v22 = vadd.f32 %v7004_v4, %v3539_v36  ;;  %v3756_v51 = vsel %vm618_vm3, %v3654_v63, 0.0 }
 0x94b   :  { %v3679_v35 = vadd.f32 %v3678_v3, %v3677_v60  ;;  %v3750_v56 = vrot.slane %v3749_v9, 4  ;;  %v3655_v48 = vmul.f32 %v3623_v43, %v7832_v52  ;;  %v3686_v31 = vadd.f32 %v3685_v0, %v3684_v40  ;;  %v3021_v39 = vpop.permute.xlu0 %3020  ;;  %v2993_v6 = vpop.permute.xlu1 %2992  ;;  %v7836_v52 = vld [vmem:[#allocation62_spill] sm:$0xff] }
 0x94c   :  { %v3666_v45 = vsel %vm618_vm3, %v3634_v28, 0.0  ;;  %v3640_v34 = vmul.f32 %v7033_v49, %v3013_v25  ;;  %v3635_v24 = vmul.f32 %v7039_v44, %v2993_v6  ;;  %v3642_v4 = vmul.f32 %v7063_v7, %v3021_v39  ;;  %v7835_v28 = vld [vmem:[#allocation46_spill] sm:$0xff] }
 0x94d   :  { %v3680_v26 = vrot.slane %v3679_v35, 2  ;;  %v3687_v46 = vrot.slane %v3686_v31, 4  ;;  %v3757_v1 = vsel %vm618_vm3, %v3655_v48, 0.0  ;;  %v3612_v17 = vadd.f32 %v7833_v42, %v7055_v10  ;;  %v7838_v6 = vld [vmem:[#allocation102_spill] sm:$0xff] }
 0x94e   :  { %v3758_v19 = vadd.f32 %v3757_v1, %v3756_v51  ;;  %v3667_v61 = vsel %vm618_vm3, %v3635_v24, 0.0  ;;  %v3628_v63 = vadd.f32 %v7069_v54, %v7084_v32  ;;  %v7167_v36 = vadd.f32 %v3750_v56, %v3749_v9 }
 0x94f   :  { %v3681_v55 = vadd.f32 %v3680_v26, %v3679_v35  ;;  %v3688_v49 = vadd.f32 %v3687_v46, %v3686_v31  ;;  %v3668_v44 = vadd.f32 %v3667_v61, %v3666_v45  ;;  %v3029_v33 = vpop.permute.xlu0 %3028  ;;  %v3017_v38 = vpop.permute.xlu1 %3016  ;;  %v3593_v5 = vmul.f32 %v7835_v28, %v7099_v50  ;;  %v7840_v46 = vld [vmem:[#allocation68_spill] sm:$0xff] }
 0x950   :  { %v3759_v60 = vrot.slane %v3758_v19, 4  ;;  %v3644_v25 = vmul.f32 %v3612_v17, %v3029_v33  ;;  %v7170_v7 = vmul.f32 %v3628_v63, %v7834_v47  ;;  %v3609_v54 = vadd.f32 %v7099_v50, %v6959_v8  ;;  %v7837_v8 = vld [vmem:[#allocation108_spill] sm:$0xff] }
 0x951   :  { %v3682_v15 = vrot.slane %v3681_v55, 1  ;;  %v3689_v10 = vrot.slane %v3688_v49, 2  ;;  %v3669_v62 = vrot.slane %v3668_v44, 4  ;;  %v3693_v32 = vsel %vm618_vm3, %v3640_v34, 0.0  ;;  %v7842_v17 = vld [vmem:[#allocation80_spill] sm:$0xff] }
 0x952   :  { %v3760_v29 = vadd.f32 %v3759_v60, %v3758_v19  ;;  %v3625_v3 = vadd.f32 %v3593_v5, %v7118_v59  ;;  %v3534_v9 = vadd.f32 %v7020_v23, %v7077_v57  ;;  %v3641_v30 = vmul.f32 %v3609_v54, %v3017_v38  ;;  %v7841_v19 = vld [vmem:[#allocation82_spill] sm:$0xff]  ;;  %v7844_v33 = vld [vmem:[#allocation112_spill] sm:$0xff]  ;;  %v7846_v5 = vld [vmem:[#allocation39_spill] sm:$0xff] }
 0x953   :  { %v3683_v43 = vadd.f32 %v3682_v15, %v3681_v55  ;;  %v3690_v40 = vadd.f32 %v3689_v10, %v3688_v49  ;;  %v3670_v0 = vadd.f32 %v3669_v62, %v3668_v44  ;;  %v3752_v35 = vrot.slane %v7167_v36, 2  ;;  %v3025_v57 = vpop.permute.xlu1 %3024  ;;  %v3037_v26 = vpop.permute.xlu0 %3036  ;;  %v7843_v49 = vld [vmem:[#allocation73_spill] sm:$0xff]  ;;  %v7847_v10 = vld [vmem:[#allocation59_spill] sm:$0xff] }
 0x954   :  { %v3702_v56 = vsel %vm618_vm3, %v3642_v4, 0.0  ;;  %v7183_v48 = vmul.f32 %v3619_v22, %v7836_v52  ;;  %v3598_v50 = vmul.f32 %v7837_v8, %v3534_v9  ;;  %v7187_v59 = vsel %vm618_vm3, %v3644_v25, 0.0 }
 0x955   :  { %v3691_v31 = vrot.slane %v3690_v40, 1  ;;  %v3671_v39 = vrot.slane %v3670_v0, 2  ;;  %v3694_v23 = vsel %vm618_vm3, %v3641_v30, 0.0  ;;  %v7839_v51 = vrot.slane %v7838_v6, 1  ;;  %v7850_v30 = vld [vmem:[#allocation50_spill] sm:$0xff] }
 0x956   :  { %v3761_v34 = vrot.slane %v3760_v29, 2  ;;  %v3695_v24 = vadd.f32 %v3694_v23, %v3693_v32  ;;  %v3630_v1 = vadd.f32 %v3598_v50, %v7840_v46  ;;  %v3614_v61 = vadd.f32 %v7841_v19, %v3534_v9  ;;  %v7849_v32 = vld [vmem:[#allocation71_spill] sm:$0xff] }
 0x957   :  { %v3849_v45 = vadd.f32 %v7839_v51, %v3683_v43  ;;  %v3692_v22 = vadd.f32 %v3691_v31, %v3690_v40  ;;  %v3672_v4 = vadd.f32 %v3671_v39, %v3670_v0  ;;  %v3531_v42 = vadd.f32 %v7007_v16, %v7060_v53  ;;  %v7848_v16 = vld [vmem:[#allocation100_spill] sm:$0xff]  ;;  %v3045_v31 = vpop.permute.xlu0 %3044  ;;  %v7851_v39 = vld [vmem:[#allocation81_spill] sm:$0xff] }
 0x958   :  { %v3657_v63 = vmul.f32 %v3625_v3, %v7842_v17  ;;  %v3696_v55 = vrot.slane %v3695_v24, 4  ;;  %v7198_v44 = vmul.f32 %v3630_v1, %v7843_v49  ;;  %v3536_v38 = vadd.f32 %v7844_v33, %v7042_v18  ;;  %v3033_v18 = vpop.permute.xlu1 %3032  ;;  %v7856_v33 = vld [vmem:[#allocation36_spill] sm:$0xff] }
 0x959   :  { %v7845_v60 = vrot.slane %v7838_v6, 2  ;;  %v3673_v47 = vrot.slane %v3672_v4, 1  ;;  %v3646_v28 = vmul.f32 %v3614_v61, %v3037_v26  ;;  %v3595_v15 = vmul.f32 %v7846_v5, %v3531_v42 }
 0x95a   :  { %v3943_v62 = vmul.f32 %v7847_v10, %v3849_v45  ;;  %v3697_v54 = vadd.f32 %v3696_v55, %v3695_v24  ;;  %v3611_v53 = vadd.f32 %v7848_v16, %v3531_v42  ;;  %v3600_v3 = vmul.f32 %v7849_v32, %v3536_v38  ;;  %v7853_v24 = vld [vmem:[#allocation30_spill] sm:$0xff] }
 0x95b   :  { %v3850_v25 = vadd.f32 %v7845_v60, %v3692_v22  ;;  %v7208_v9 = vadd.f32 %v3761_v34, %v3760_v29  ;;  %v3674_v43 = vadd.f32 %v3673_v47, %v3672_v4  ;;  %v3627_v40 = vadd.f32 %v3595_v15, %v7147_v58  ;;  %v7852_v29 = vld [vmem:[#allocation109_spill] sm:$0xff]  ;;  %v7855_v4 = vld [vmem:[#allocation63_spill] sm:$0xff]  ;;  %v7858_v15 = vld [vmem:[#allocation110_spill] sm:$0xff] }
 0x95c   :  { %v3533_v0 = vadd.f32 %v7052_v27, %v7080_v37  ;;  %v3698_v8 = vrot.slane %v3697_v54, 2  ;;  %v3643_v50 = vmul.f32 %v3611_v53, %v3025_v57  ;;  %v3632_v23 = vadd.f32 %v3600_v3, %v7851_v39  ;;  %v7854_v27 = vld [vmem:[#allocation107_spill] sm:$0xff]  ;;  %v3041_v5 = vpop.permute.xlu1 %3040 }
 0x95d   :  { %v3944_v52 = vmul.f32 %v7850_v30, %v3850_v25  ;;  %v3848_v51 = vadd.f32 %v7838_v6, %v3674_v43  ;;  %v3720_v45 = vsel %vm618_vm3, %v3646_v28, 0.0  ;;  %v3616_v34 = vadd.f32 %v7852_v29, %v3536_v38  ;;  %v7857_v60 = vld [vmem:[#allocation103_spill] sm:$0xff] }
 0x95e   :  { %v3597_v26 = vmul.f32 %v7853_v24, %v3533_v0  ;;  %v3983_v58 = vrot.slane %v3943_v62, 7  ;;  %v3699_v46 = vadd.f32 %v3698_v8, %v3697_v54  ;;  %v3703_v1 = vsel %vm618_vm3, %v3643_v50, 0.0  ;;  %v7859_v62 = vld [vmem:[#allocation66_spill] sm:$0xff] }
 0x95f   :  { %v7221_v37 = vmul.f32 %v3632_v23, %v7854_v27  ;;  %v3704_v22 = vadd.f32 %v3703_v1, %v3702_v56  ;;  %v3648_v57 = vmul.f32 %v3616_v34, %v3045_v31  ;;  %v3613_v19 = vadd.f32 %v7855_v4, %v3533_v0  ;;  %v7863_v31 = vld [vmem:[#allocation34_spill] sm:$0xff] }
 0x960   :  { %v3629_v61 = vadd.f32 %v3597_v26, %v7130_v21  ;;  %v3985_v42 = vrot.slane %v3944_v52, 6  ;;  %v3700_v17 = vrot.slane %v3699_v46, 1  ;;  %v3535_v55 = vadd.f32 %v7114_v12, %v7123_v14  ;;  %v3049_v34 = vpop.permute.xlu1 %3048  ;;  %v7864_v24 = vld [vmem:[#allocation86_spill] sm:$0xff] }
 0x961   :  { %v3766_v49 = vsel %vm618_vm3, %v3657_v63, 0.0  ;;  %v3942_v38 = vmul.f32 %v7856_v33, %v3848_v51  ;;  %v3659_v25 = vmul.f32 %v3627_v40, %v7857_v60  ;;  %v3705_v47 = vrot.slane %v3704_v22, 4  ;;  %v7860_v63 = vld [vmem:[#allocation51_spill] sm:$0xff]  ;;  %v7868_v33 = vld [vmem:[#allocation89_spill] sm:$0xff] }
 0x962   :  { %v3645_v28 = vmul.f32 %v3613_v19, %v3033_v18  ;;  %v3701_v56 = vadd.f32 %v3700_v17, %v3699_v46  ;;  %v3599_v10 = vmul.f32 %v7858_v15, %v3535_v55  ;;  %v3615_v54 = vadd.f32 %v7859_v62, %v3535_v55  ;;  %v7862_v40 = vld [vmem:[#allocation111_spill] sm:$0xff]  ;;  %v7865_v46 = vld [vmem:[#allocation104_spill] sm:$0xff] }
 0x963   :  { %v3765_v21 = vsel %vm618_vm3, %v7104_v20, 0.0  ;;  %v3706_v16 = vadd.f32 %v3705_v47, %v3704_v22  ;;  %v3505_v53 = vmul.f32 %v7860_v63, %v7049_v11  ;;  %v7861_v32 = vrot.slane %v7838_v6, 3  ;;  %v7866_v22 = vld [vmem:[#allocation57_spill] sm:$0xff]  ;;  %v7867_v17 = vld [vmem:[#allocation72_spill] sm:$0xff] }
 0x964   :  { %v3712_v12 = vsel %vm618_vm3, %v3645_v28, 0.0  ;;  %v3767_v14 = vadd.f32 %v3766_v49, %v3765_v21  ;;  %v3631_v18 = vadd.f32 %v3599_v10, %v7862_v40  ;;  %v3647_v0 = vmul.f32 %v3615_v54, %v3041_v5  ;;  %v3903_v49 = vpop.permute.xlu0 %3902  ;;  %v3911_v40 = vpop.permute.xlu1 %3910 }
 0x965   :  { %v3851_v3 = vadd.f32 %v7861_v32, %v3701_v56  ;;  %v3713_v43 = vadd.f32 %v3712_v12, %v7187_v59  ;;  %v3707_v30 = vrot.slane %v3706_v16, 2  ;;  %v3729_v52 = vsel %vm618_vm3, %v3648_v57, 0.0 }
 0x966   :  { %v3768_v8 = vrot.slane %v3767_v14, 4  ;;  %v3537_v20 = vadd.f32 %v3505_v53, %v7095_v41  ;;  %v3984_v11 = vsel %vm2135_vm8, %v3983_v58, %v3942_v38  ;;  %v3721_v23 = vsel %vm618_vm3, %v3647_v0, 0.0 }
 0x967   :  { %v3714_v50 = vrot.slane %v3713_v43, 4  ;;  %v7244_v39 = vmul.f32 %v7863_v31, %v3851_v3  ;;  %v3708_v51 = vadd.f32 %v3707_v30, %v3706_v16  ;;  %v3722_v29 = vadd.f32 %v3721_v23, %v3720_v45 }
 0x968   :  { %v3769_v59 = vadd.f32 %v3768_v8, %v3767_v14  ;;  %v3601_v26 = vmul.f32 %v7864_v24, %v3537_v20  ;;  %v3661_v1 = vmul.f32 %v3629_v61, %v7865_v46  ;;  %v3617_v57 = vadd.f32 %v7866_v22, %v3537_v20  ;;  %v7870_v8 = vld [vmem:[#allocation70_spill] sm:$0xff] }
 0x969   :  { %v3715_v27 = vadd.f32 %v3714_v50, %v3713_v43  ;;  %v3775_v41 = vsel %vm618_vm3, %v3659_v25, 0.0  ;;  %v3709_v4 = vrot.slane %v3708_v51, 1  ;;  %v3774_v58 = vsel %vm618_vm3, %v7152_v2, 0.0 }
 0x96a   :  { %v3770_v19 = vrot.slane %v3769_v59, 2  ;;  %v3633_v55 = vadd.f32 %v3601_v26, %v7867_v17  ;;  %v7256_v45 = vsel %vm2138_vm9, %v3985_v42, %v3984_v11  ;;  %v3663_v38 = vmul.f32 %v3631_v18, %v7868_v33  ;;  %v3917_v18 = vpop.permute.xlu0 %3916  ;;  %v7873_v26 = vld [vmem:[#allocation56_spill] sm:$0xff] }
 0x96b   :  { %v3649_v60 = vmul.f32 %v3617_v57, %v3049_v34  ;;  %v3776_v61 = vadd.f32 %v3775_v41, %v3774_v58  ;;  %v3710_v47 = vadd.f32 %v3709_v4, %v3708_v51  ;;  %v3987_v28 = vrot.slane %v7244_v39, 5 }
 0x96c   :  { %v3723_v5 = vrot.slane %v3722_v29, 4  ;;  %v3771_v25 = vadd.f32 %v3770_v19, %v3769_v59  ;;  %v3716_v56 = vrot.slane %v3715_v27, 2  ;;  %v3739_v2 = vsel %vm618_vm3, %v7183_v48, 0.0  ;;  %v7875_v19 = vld [vmem:[#allocation52_spill] sm:$0xff] }
 0x96d   :  { %v3730_v15 = vsel %vm618_vm3, %v3649_v60, 0.0  ;;  %v3777_v10 = vrot.slane %v3776_v61, 4  ;;  %v7869_v62 = vrot.slane %v7838_v6, 4  ;;  %v3738_v16 = vsel %vm618_vm3, %v7126_v13, 0.0 }
 0x96e   :  { %v3772_v54 = vrot.slane %v3771_v25, 1  ;;  %v3731_v21 = vadd.f32 %v3730_v15, %v3729_v52  ;;  %v3740_v14 = vadd.f32 %v3739_v2, %v3738_v16  ;;  %v3753_v63 = vadd.f32 %v3752_v35, %v7167_v36 }
 0x96f   :  { %v3852_v42 = vadd.f32 %v7869_v62, %v3710_v47  ;;  %v3778_v12 = vadd.f32 %v3777_v10, %v3776_v61  ;;  %v3763_v53 = vrot.slane %v7208_v9, 1  ;;  %v3724_v3 = vadd.f32 %v3723_v5, %v3722_v29  ;;  %v3919_v5 = vpop.permute.xlu0 %3918 }
 0x970   :  { %v3773_v48 = vadd.f32 %v3772_v54, %v3771_v25  ;;  %v3732_v43 = vrot.slane %v3731_v21, 4  ;;  %v3741_v30 = vrot.slane %v3740_v14, 4  ;;  %v3754_v52 = vrot.slane %v3753_v63, 1 }
 0x971   :  { %v7271_v32 = vmul.f32 %v3903_v49, %v3852_v42  ;;  %v3779_v0 = vrot.slane %v3778_v12, 2  ;;  %v3764_v13 = vadd.f32 %v3763_v53, %v7208_v9  ;;  %v7871_v20 = vrot.slane %v7870_v8, 3  ;;  %v3905_v49 = vpop.permute.xlu1 %3904 }
 0x972   :  { %v3733_v31 = vadd.f32 %v3732_v43, %v3731_v21  ;;  %v3783_v36 = vsel %vm618_vm3, %v7170_v7, 0.0  ;;  %v3784_v35 = vsel %vm618_vm3, %v3661_v1, 0.0  ;;  %v3742_v23 = vadd.f32 %v3741_v30, %v3740_v14  ;;  %v7877_v21 = vld [vmem:[#allocation31_spill] sm:$0xff] }
 0x973   :  { %v3859_v50 = vadd.f32 %v7871_v20, %v3773_v48  ;;  %v3780_v11 = vadd.f32 %v3779_v0, %v3778_v12  ;;  %v3755_v51 = vadd.f32 %v3754_v52, %v3753_v63  ;;  %v7872_v29 = vrot.slane %v7870_v8, 2 }
 0x974   :  { %v3725_v34 = vrot.slane %v3724_v3, 2  ;;  %v3665_v9 = vmul.f32 %v3633_v55, %v7873_v26  ;;  %v3785_v46 = vadd.f32 %v3784_v35, %v3783_v36  ;;  %v3989_v22 = vrot.slane %v7271_v32, 4 }
 0x975   :  { %v3858_v59 = vadd.f32 %v7872_v29, %v3764_v13  ;;  %v7281_v24 = vmul.f32 %v3917_v18, %v3859_v50  ;;  %v3781_v57 = vrot.slane %v3780_v11, 1  ;;  %v3743_v41 = vrot.slane %v3742_v23, 2 }
 0x976   :  { %v7874_v7 = vrot.slane %v7870_v8, 1  ;;  %v3734_v1 = vrot.slane %v3733_v31, 2  ;;  %v3786_v58 = vrot.slane %v3785_v46, 4  ;;  %v3717_v33 = vadd.f32 %v3716_v56, %v3715_v27 }
 0x977   :  { %v3952_v17 = vmul.f32 %v7875_v19, %v3858_v59  ;;  %v4001_v60 = vrot.slane %v7281_v24, 5  ;;  %v3782_v61 = vadd.f32 %v3781_v57, %v3780_v11  ;;  %v3744_v47 = vadd.f32 %v3743_v41, %v3742_v23 }
 0x978   :  { %v3857_v4 = vadd.f32 %v7874_v7, %v3755_v51  ;;  %v3792_v55 = vsel %vm618_vm3, %v7198_v44, 0.0  ;;  %v3787_v25 = vadd.f32 %v3786_v58, %v3785_v46  ;;  %v3718_v15 = vrot.slane %v3717_v33, 1  ;;  %v3921_v46 = vpop.permute.xlu0 %3920 }
 0x979   :  { %v3793_v10 = vsel %vm618_vm3, %v3663_v38, 0.0  ;;  %v3726_v2 = vadd.f32 %v3725_v34, %v3724_v3  ;;  %v7876_v62 = vrot.slane %v7870_v8, 4  ;;  %v3745_v54 = vrot.slane %v3744_v47, 1  ;;  %v3907_v3 = vpop.permute.xlu1 %3906 }
 0x97a   :  { %v3951_v16 = vmul.f32 %v7877_v21, %v3857_v4  ;;  %v3794_v27 = vadd.f32 %v3793_v10, %v3792_v55  ;;  %v3788_v56 = vrot.slane %v3787_v25, 2  ;;  %v3719_v12 = vadd.f32 %v3718_v15, %v3717_v33 }
 0x97b   :  { %v3860_v42 = vadd.f32 %v7876_v62, %v3782_v61  ;;  %v3727_v14 = vrot.slane %v3726_v2, 1  ;;  %v3735_v63 = vadd.f32 %v3734_v1, %v3733_v31  ;;  %v3746_v48 = vadd.f32 %v3745_v54, %v3744_v47 }
 0x97c   :  { %v3999_v44 = vrot.slane %v3952_v17, 6  ;;  %v3795_v43 = vrot.slane %v3794_v27, 4  ;;  %v3789_v18 = vadd.f32 %v3788_v56, %v3787_v25  ;;  %v7878_v0 = vrot.slane %v7838_v6, 5  ;;  %v3923_v54 = vpop.permute.xlu0 %3922 }
 0x97d   :  { %v3954_v53 = vmul.f32 %v3919_v5, %v3860_v42  ;;  %v3728_v30 = vadd.f32 %v3727_v14, %v3726_v2  ;;  %v3736_v52 = vrot.slane %v3735_v63, 1  ;;  %v3856_v13 = vadd.f32 %v7870_v8, %v3746_v48  ;;  %v3909_v61 = vpop.permute.xlu1 %3908 }
 0x97e   :  { %v3853_v38 = vadd.f32 %v7878_v0, %v3719_v12  ;;  %v3796_v20 = vadd.f32 %v3795_v43, %v3794_v27  ;;  %v3801_v50 = vsel %vm618_vm3, %v7221_v37, 0.0  ;;  %v3802_v36 = vsel %vm618_vm3, %v3665_v9, 0.0 }
 0x97f   :  { %v3790_v31 = vrot.slane %v3789_v18, 1  ;;  %v7879_v11 = vrot.slane %v7838_v6, 6  ;;  %v3737_v51 = vadd.f32 %v3736_v52, %v3735_v63  ;;  %v3950_v29 = vmul.f32 %v3911_v40, %v3856_v13  ;;  %v7883_v13 = vld [vmem:[#allocation92_spill] sm:$0xff] }
 0x980   :  { %v3947_v35 = vmul.f32 %v3905_v49, %v3853_v38  ;;  %v3997_v59 = vrot.slane %v3951_v16, 7  ;;  %v3797_v34 = vrot.slane %v3796_v20, 2  ;;  %v3803_v24 = vadd.f32 %v3802_v36, %v3801_v50 }
 0x981   :  { %v3854_v23 = vadd.f32 %v7879_v11, %v3728_v30  ;;  %v4003_v26 = vrot.slane %v3954_v53, 4  ;;  %v3791_v57 = vadd.f32 %v3790_v31, %v3789_v18  ;;  %v7880_v7 = vrot.slane %v7838_v6, 7  ;;  %v3925_v53 = vpop.permute.xlu1 %3924 }
 0x982   :  { %v3998_v37 = vsel %vm2135_vm8, %v3997_v59, %v3950_v29  ;;  %v3991_v9 = vrot.slane %v3947_v35, 3  ;;  %v3798_v1 = vadd.f32 %v3797_v34, %v3796_v20  ;;  %v3804_v19 = vrot.slane %v3803_v24, 4 }
 0x983   :  { %v3948_v41 = vmul.f32 %v3907_v3, %v3854_v23  ;;  %v3855_v4 = vadd.f32 %v7880_v7, %v3737_v51  ;;  %v3988_v40 = vsel %vm2141_vm10, %v3987_v28, %v7256_v45  ;;  %v4000_v17 = vsel %vm2138_vm9, %v3999_v44, %v3998_v37  ;;  %v7882_v3 = vld [vmem:[#allocation85_spill] sm:$0xff] }
 0x984   :  { %v7881_v58 = vrot.slane %v7870_v8, 5  ;;  %v4002_v6 = vsel %vm2141_vm10, %v4001_v60, %v4000_v17  ;;  %v3799_v47 = vrot.slane %v3798_v1, 1  ;;  %v3805_v5 = vadd.f32 %v3804_v19, %v3803_v24  ;;  %v4245_v19 = vld [vmem:[%s7374_s7 + $0x1] ss:$0 sm:$0xff] }
 0x985   :  { %v3993_v33 = vrot.slane %v3948_v41, 2  ;;  %v3949_v55 = vmul.f32 %v3909_v61, %v3855_v4  ;;  %v3990_v25 = vsel %vm2144_vm11, %v3989_v22, %v3988_v40  ;;  %v4004_v39 = vsel %vm2144_vm11, %v4003_v26, %v4002_v6  ;;  %v7884_v61 = vld [vmem:[#allocation11_spill] sm:$0xff] }
 0x986   :  { %v3861_v49 = vadd.f32 %v7881_v58, %v3791_v57  ;;  %v3830_v45 = vrot.slane %v7870_v8, 6  ;;  %v3992_v28 = vsel %vm2147_vm12, %v3991_v9, %v3990_v25  ;;  %v3800_v10 = vadd.f32 %v3799_v47, %v3798_v1  ;;  %v4244_v9 = vld [vmem:[%s7374_s7] ss:$0 sm:$0xff]  ;;  %s4763_s7 = smov [#allocation7]  }
 0x987   :  { %v3995_v2 = vrot.slane %v3949_v55, 1  ;;  %v3806_v62 = vrot.slane %v3805_v5, 2  ;;  %v3994_v60 = vsel %vm2150_vm13, %v3993_v33, %v3992_v28  ;;  %v3831_v14 = vrot.slane %v7870_v8, 7  ;;  %s4188_s20 = sshll.u32 %s4763_s7, 4  ;;  %s4189_s20 = int_to_ptr.vmem [resolvable:$true] %s4188_s20 }
 0x988   :  { %v3955_v15 = vmul.f32 %v3921_v46, %v3861_v49  ;;  %v3862_v21 = vadd.f32 %v3830_v45, %v3800_v10  ;;  %s4723_s3 = scalar_lea.vmem %s4189_s20, 256  ;;  %p4728_p3 = scmp.lt.s32.totalorder %s4189_s20, %s4189_s20 }
 0x989   :  { %v3807_v16 = vadd.f32 %v3806_v62, %v3805_v5  ;;  %v3996_v32 = vsel %vm2153_vm14, %v3995_v2, %v3994_v60  ;;  %p4724_p2 = scmp.ne.s32.totalorder %s4189_s20, %s4723_s3  ;;  %p4729_p4 = scmp.lt.s32.totalorder %s4723_s3, %s4723_s3 }
 0x98a   :  { %v4005_v42 = vrot.slane %v3955_v15, 3  ;;  %4393 = vmatprep.mubr.msk.f32.mxu1 %vm618_vm3, %v3996_v32  ;;  %v3956_v27 = vmul.f32 %v3923_v54, %v3862_v21 }
 0x98b   :  { %v3808_v56 = vrot.slane %v3807_v16, 1  ;;  %p4730_p5 = por %p4729_p4, %p4728_p3 }
 0x98c   :  { %v4006_v22 = vsel %vm2147_vm12, %v4005_v42, %v4004_v39  ;;  %v4007_v12 = vrot.slane %v3956_v27, 2 }
 0x98d   :  { %v3809_v63 = vadd.f32 %v3808_v56, %v3807_v16  ;;  %p4731_p6 = pnand %p4730_p5, %p4724_p2 }
 0x98e   :  { %v4008_v48 = vsel %vm2150_vm13, %v4007_v12, %v4006_v22 }
 0x98f   :  { %v3863_v44 = vadd.f32 %v3831_v14, %v3809_v63 }
 0x991   :  { %v3957_v43 = vmul.f32 %v3925_v53, %v3863_v44 }
 0x993   :  { %v4009_v18 = vrot.slane %v3957_v43, 1 }
 0x995   :  { %v4010_v0 = vsel %vm2153_vm14, %v4009_v18, %v4008_v48 }
 0x996   :  { %4394 = vmatmul.mubr.msk.f32.vlgmr.msra.gmra.mrb[4].mxu1 %vm618_vm3, %v4010_v0 }
 0xa69   :  { %v4395_v38 = vpop.f32.mrb[4].mxu1 }
 0xa6a   :  { %v4087_v30 = vadd.f32 %v4395_v38, %v7882_v3  ;;  %v4081_v52 = vpop.f32.mrb[5].mxu1 }
 0xa6b   :  { %v4082_v20 = vadd.f32 %v4081_v52, %v7883_v13 }
 0xa6c   :  { %v4095_v50 = vsel %vm111_vm0, %v4087_v30, 0.0 }
 0xa6d   :  { %4096 = vadd.xlane.f32.xlu1 %v4095_v50  ;;  %v4092_v8 = vsel %vm111_vm0, %v4082_v20, 0.0 }
 0xa6e   :  { %4093 = vadd.xlane.f32.xlu0 %v4092_v8 }
 0xafa   :  { %v4097_v36 = vpop.xlane.xlu1 %4096 }
 0xafb   :  { %v4099_v31 = vmul.f32 0.03125, %v4097_v36  ;;  %v4094_v35 = vpop.xlane.xlu0 %4093 }
 0xafc   :  { %v4098_v11 = vmul.f32 0.03125, %v4094_v35 }
 0xafd   :  { %v4101_v23 = vsub.f32 %v4087_v30, %v4099_v31 }
 0xafe   :  { %v4100_v51 = vsub.f32 %v4082_v20, %v4098_v11 }
 0xaff   :  { %v4103_v34 = vmul.f32 %v4101_v23, %v4101_v23 }
 0xb00   :  { %v4102_v29 = vmul.f32 %v4100_v51, %v4100_v51 }
 0xb01   :  { %v4107_v24 = vsel %vm111_vm0, %v4103_v34, 0.0 }
 0xb02   :  { %v4104_v59 = vsel %vm111_vm0, %v4102_v29, 0.0  ;;  %vm4174_vm0 = vcmask 254976  }
 0xb03   :  { %4105 = vadd.xlane.f32.xlu0 %v4104_v59 }
 0xb07   :  { %4108 = vadd.xlane.f32.xlu0 %v4107_v24 }
 0xb90   :  { %v4106_v26 = vpop.xlane.xlu0 %4105 }
 0xb91   :  { %v4110_v46 = vmul.f32 0.03125, %v4106_v26 }
 0xb93   :  { %v4112_v57 = vadd.f32 1e-05, %v4110_v46 }
 0xb94   :  { %v4109_v41 = vpop.xlane.xlu0 %4108 }
 0xb95   :  { %4673 = vrsqrt.f32 %v4112_v57  ;;  %v4111_v7 = vmul.f32 0.03125, %v4109_v41 }
 0xb97   :  { %v4113_v4 = vadd.f32 1e-05, %v4111_v7 }
 0xb99   :  { %4675 = vrsqrt.f32 %v4113_v4 }
 0xb9f   :  { %v4674_v37 = vpop.eup %4673 }
 0xba0   :  { %v4116_v1 = vmul.f32 %v4674_v37, %v4100_v51 }
 0xba2   :  { %v4122_v40 = vmul.f32 %v4244_v9, %v4116_v1 }
 0xba3   :  { %v4676_v17 = vpop.eup %4675 }
 0xba4   :  { %v4128_v58 = vadd.f32 %v4245_v19, %v4122_v40  ;;  %v4117_v49 = vmul.f32 %v4676_v17, %v4101_v23 }
 0xba6   :  { %v4132_v33 = vcombine.high %v4128_v58, %v4128_v58  ;;  %v4139_v6 = vrot.slane %v4128_v58, %v7884_v61  ;;  %v4123_v47 = vmul.f32 %v4244_v9, %v4117_v49 }
 0xba8   :  { %v4146_v55 = vrot.slane %v4132_v33, %v7884_v61  ;;  %v4147_v5 = vcombine.high %v4139_v6, %v4139_v6  ;;  %4175 = vst.msk [vmem:[#allocation7] sm:$0x3] %vm4174_vm0, %v4139_v6  ;;  %v4129_v25 = vadd.f32 %v4245_v19, %v4123_v47 }
 0xbaa   :  { %v4148_v15 = vcombine.high %v4146_v55, %v4146_v55  ;;  %4176 = vst.msk [vmem:[#allocation7 + $0x2] sm:$0x3] %vm4174_vm0, %v4147_v5  ;;  %4177 = vst.msk [vmem:[#allocation7 + $0x4] sm:$0x3] %vm4174_vm0, %v4146_v55  ;;  %v4149_v39 = vcombine.high %v4129_v25, %v4129_v25  ;;  %v4156_v45 = vrot.slane %v4129_v25, %v7884_v61 }
 0xbac   :  { %4178 = vst.msk [vmem:[#allocation7 + $0x6] sm:$0x3] %vm4174_vm0, %v4148_v15  ;;  %v4163_v28 = vrot.slane %v4149_v39, %v7884_v61  ;;  %v4164_v10 = vcombine.high %v4156_v45, %v4156_v45  ;;  %4179 = vst.msk [vmem:[#allocation7 + $0x8] sm:$0x3] %vm4174_vm0, %v4156_v45 }
 0xbae   :  { %v4165_v2 = vcombine.high %v4163_v28, %v4163_v28  ;;  %4180 = vst.msk [vmem:[#allocation7 + $0xa] sm:$0x3] %vm4174_vm0, %v4164_v10  ;;  %4181 = vst.msk [vmem:[#allocation7 + $0xc] sm:$0x3] %vm4174_vm0, %v4163_v28 }
 0xbb0   :  { %4182 = vst.msk [vmem:[#allocation7 + $0xe] sm:$0x3] %vm4174_vm0, %v4165_v2 }
 0xbb1   :  { %4734 = shalt.err (!%p4731_p6)
}
 0xbb2   :  { %s4735_s23 = scalar_lea.hbm %s7375_s8, 256 }
 0xbb3   :  { %p4736_p7 = scmp.ne.s32.totalorder %s7375_s8, %s4735_s23  ;;  %p4739_p8 = scmp.lt.u32.totalorder %s4735_s23, %s7375_s8 }
 0xbb5   :  { %p4741_p9 = pnand %p4739_p8, %p4736_p7 }
 0xbb7   :  { %4744 = shalt.err (!%p4741_p9)
}
 0xbb8   :  { %4194 = dma.vmem_to_hbm [thread:$0]  %s4189_s20, 256, %s7375_s8, [#allocation4], %s4752_s15, %s4752_s15, %s4753_s16  }
 0xbb9   :  { %4749 = dma.done.wait [#allocation4], 256  }
 0xbba   :  { %4750 = vsyncadd [#allocation4], 4294967040 }
 0xbbb   :  { %4198 = vsyncpa [#allocation3], 1 }
 0xbbc   :  { %4199 = vsyncpa [#allocation6], 1 }
 0xbbd   :  { %4200 = vsyncpa [#allocation4], 1 }

</bundles_post_ra>
